<compile_context>
chip_gen: v7x
topology: tpu7x:2x2x1
jax: 0.10.0
libtpu: 0.0.40
codegen_flags: <defaults>
</compile_context>

<pallas_src>
import functools

import jax
import jax.numpy as jnp
import numpy as np
from jax.experimental import pallas as pl
from jax.experimental.pallas import tpu as pltpu

BN_EPS = 1e-5    # nn.BatchNorm2d default
IB_EPS = 1e-8    # SubnetConv2d.epsilon
LANE = 128       # TPU lane width (channel padding target)


def _round_up(x, m):
    return ((x + m - 1) // m) * m


# ----------------------------- Pallas kernels ----------------------------- #

def _conv_stats_kernel(xph_ref, w_ref, o_ref, st_ref, *, ksize, stride, nphase, hq):
    """Fused conv (k*k shifted MXU matmuls, bf16 in / f32 acc) + BN partial stats.

    xph_ref : (1, nphase*nphase*hq, wq, Cin_pad)  bf16  phase-split padded slab
    w_ref   : (k*k, Cin_pad, Cout_pad)            bf16  pruned weights
    o_ref   : (1, Ho, Wo, Cout_pad)               f32   raw conv output
    st_ref  : (1, 2, Cout_pad)                    f32   [sum, sum_of_squares]
    """
    ho, wo, cout = o_ref.shape[1], o_ref.shape[2], o_ref.shape[3]
    cin = xph_ref.shape[-1]

    acc = jnp.zeros((ho * wo, cout), jnp.float32)
    for kh in range(ksize):
        for kw in range(ksize):
            ph = (kh % stride) * nphase + (kw % stride)
            oh = ph * hq + kh // stride
            ow = kw // stride
            a = xph_ref[0, oh:oh + ho, ow:ow + wo, :].reshape(ho * wo, cin)
            acc += jnp.dot(a, w_ref[kh * ksize + kw],
                           preferred_element_type=jnp.float32)

    o_ref[...] = acc.reshape(1, ho, wo, cout)
    st_ref[0, 0:1, :] = jnp.sum(acc, axis=0, keepdims=True)
    st_ref[0, 1:2, :] = jnp.sum(acc * acc, axis=0, keepdims=True)


def _bn_relu_pad_kernel(x_ref, ss_ref, o_ref):
    """y = relu(x*scale + shift); write zero-padded bf16 slab (conv2 input)."""
    ho, wo = x_ref.shape[1], x_ref.shape[2]
    x = x_ref[0]                                             # (ho, wo, C) f32
    y = jnp.maximum(x * ss_ref[0:1, :] + ss_ref[1:2, :], 0.0)
    o_ref[...] = jnp.zeros_like(o_ref)                       # zero halo
    o_ref[0, 1:1 + ho, 1:1 + wo, :] = y.astype(o_ref.dtype)  # interior


def _bn2_add_relu_kernel(x_ref, ssx_ref, i_ref, ssi_ref, o_ref):
    """out = relu(bn2(conv2_out) + bn3_or_identity(identity)) — all fused."""
    y = x_ref[...] * ssx_ref[0:1, :] + ssx_ref[1:2, :]
    z = i_ref[...] * ssi_ref[0:1, :] + ssi_ref[1:2, :]
    o_ref[...] = jnp.maximum(y + z, 0.0)


# --------------------------- pallas_call wrappers -------------------------- #

_PARALLEL = pltpu.CompilerParams(dimension_semantics=("parallel",))


def conv_stats(xph, w_mat, *, ksize, stride, nphase, hq, ho, wo):
    n, hs, wq, cin_p = xph.shape
    k2, _, cout_p = w_mat.shape
    kern = functools.partial(_conv_stats_kernel, ksize=ksize, stride=stride,
                             nphase=nphase, hq=hq)
    return pl.pallas_call(
        kern,
        grid=(n,),
        in_specs=[
            pl.BlockSpec((1, hs, wq, cin_p), lambda i: (i, 0, 0, 0)),
            pl.BlockSpec((k2, cin_p, cout_p), lambda i: (0, 0, 0)),
        ],
        out_specs=[
            pl.BlockSpec((1, ho, wo, cout_p), lambda i: (i, 0, 0, 0)),
            pl.BlockSpec((1, 2, cout_p), lambda i: (i, 0, 0)),
        ],
        out_shape=[
            jax.ShapeDtypeStruct((n, ho, wo, cout_p), jnp.float32),
            jax.ShapeDtypeStruct((n, 2, cout_p), jnp.float32),
        ],
        compiler_params=_PARALLEL,
    )(xph, w_mat)


def bn_relu_pad(o_raw, ss):
    n, ho, wo, cp = o_raw.shape
    return pl.pallas_call(
        _bn_relu_pad_kernel,
        grid=(n,),
        in_specs=[pl.BlockSpec((1, ho, wo, cp), lambda i: (i, 0, 0, 0)),
                  pl.BlockSpec((2, cp), lambda i: (0, 0))],
        out_specs=pl.BlockSpec((1, ho + 2, wo + 2, cp), lambda i: (i, 0, 0, 0)),
        out_shape=jax.ShapeDtypeStruct((n, ho + 2, wo + 2, cp), jnp.bfloat16),
        compiler_params=_PARALLEL,
    )(o_raw, ss)


def bn2_add_relu(o2, ss2, iden, ssi):
    n, ho, wo, cp = o2.shape
    return pl.pallas_call(
        _bn2_add_relu_kernel,
        grid=(n,),
        in_specs=[pl.BlockSpec((1, ho, wo, cp), lambda i: (i, 0, 0, 0)),
                  pl.BlockSpec((2, cp), lambda i: (0, 0)),
                  pl.BlockSpec((1, ho, wo, cp), lambda i: (i, 0, 0, 0)),
                  pl.BlockSpec((2, cp), lambda i: (0, 0))],
        out_specs=pl.BlockSpec((1, ho, wo, cp), lambda i: (i, 0, 0, 0)),
        out_shape=jax.ShapeDtypeStruct((n, ho, wo, cp), jnp.float32),
        compiler_params=_PARALLEL,
    )(o2, ss2, iden, ssi)


# ------------------------------- JAX glue ---------------------------------- #

def _prep_weight(p, cin_pad, cout_pad):
    """Fold pruning once: (w * test_zscale * mask) -> (k*k, Cin_pad, Cout_pad) bf16."""
    w_eff = p["w"] * p["z"] * p["m"]                       # (Cout, Cin, k, k) f32
    cout, cin, k, _ = w_eff.shape
    w = jnp.transpose(w_eff, (2, 3, 1, 0)).reshape(k * k, cin, cout)
    w = jnp.pad(w, ((0, 0), (0, cin_pad - cin), (0, cout_pad - cout)))
    return w.astype(jnp.bfloat16)


def _phase_split(x_nhwc, ksize, stride, pad, cpad):
    """Zero-pad, channel-pad, phase-split (space-to-depth along H) and cast to bf16.

    Returns a (N, nphase*nphase*hq, wq, cpad) slab so every in-kernel tap slice
    is a static unit-stride window. For stride==1 this is just the padded input.
    """
    n, h, w, c = x_nhwc.shape
    ho = (h + 2 * pad - ksize) // stride + 1
    wo = (w + 2 * pad - ksize) // stride + 1
    hq = (ksize - 1) // stride + ho
    wq = (ksize - 1) // stride + wo
    sp = min(stride, ksize)
    xp = jnp.pad(x_nhwc, ((0, 0), (pad, pad), (pad, pad), (0, cpad - c)))
    slabs = []
    for ph in range(sp):
        for pw in range(sp):
            s = xp[:, ph::stride, pw::stride, :][:, :hq, :wq, :]
            dh, dw = hq - s.shape[1], wq - s.shape[2]
            if dh or dw:
                s = jnp.pad(s, ((0, 0), (0, dh), (0, dw), (0, 0)))
            slabs.append(s)
    xph = jnp.concatenate(slabs, axis=1) if len(slabs) > 1 else slabs[0]
    return xph.astype(jnp.bfloat16), ho, wo, hq, sp


def _scale_shift(stats, count):
    """Reduce per-image partial stats -> (scale, shift) so bn(x) = x*scale+shift."""
    s = jnp.sum(stats, axis=0)                              # (2, Cpad)
    mean = s[0] / count
    var = jnp.maximum(s[1] / count - mean * mean, 0.0)
    inv = jax.lax.rsqrt(var + BN_EPS)
    return jnp.stack([inv, -mean * inv], axis=0).astype(jnp.float32)


def make_subnet_conv_params(key, cin, cout, ksize, init_mag=9.0, init_var=0.01,
                            mask_thresh=0.0):
    kw_, kmu, klog = jax.random.split(key, 3)
    fan_in = cin * ksize * ksize
    bound = 1.0 / np.sqrt(fan_in)
    w = jax.random.uniform(kw_, (cout, cin, ksize, ksize),
                           minval=-bound, maxval=bound, dtype=jnp.float32)
    mu = 1.0 + init_var * jax.random.normal(kmu, (cout, cin, ksize, ksize), jnp.float32)
    log_d = -init_mag + init_var * jax.random.normal(klog, (cout, cin, ksize, ksize),
                                                     jnp.float32)
    zscale = mu + jnp.exp(0.5 * log_d)                       # reparameterize(sampling=False)
    logalpha = log_d - jnp.log(mu ** 2 + IB_EPS)
    mask = (logalpha < mask_thresh).astype(jnp.float32)      # get_mask_hard(0)
    return {"w": w, "z": zscale, "m": mask}


def basic_block_forward(x_nchw, p_conv1, p_conv2, p_conv3, stride):
    """Pallas implementation of BasicBlock.forward (mode='test')."""
    n, cin, h, w = x_nchw.shape
    planes = p_conv1["w"].shape[0]
    short = (stride != 1) or (cin != planes)
    cin_p, cout_p = _round_up(cin, LANE), _round_up(planes, LANE)

    x = jnp.transpose(x_nchw, (0, 2, 3, 1)).astype(jnp.float32)   # NCHW -> NHWC

    # conv1 + bn1 stats (fused)
    xph1, ho, wo, hq1, sp1 = _phase_split(x, 3, stride, 1, cin_p)
    w1 = _prep_weight(p_conv1, cin_p, cout_p)
    o1_raw, st1 = conv_stats(xph1, w1, ksize=3, stride=stride, nphase=sp1,
                             hq=hq1, ho=ho, wo=wo)
    ss1 = _scale_shift(st1, n * ho * wo)

    # bn1 normalize + relu + zero-pad + bf16 cast  (conv2's input slab)
    o1_pad = bn_relu_pad(o1_raw, ss1)                 # (N, ho+2, wo+2, Cp) bf16

    # conv2 + bn2 stats (fused); stride 1, so o1_pad is already the phase slab
    w2 = _prep_weight(p_conv2, cout_p, cout_p)
    o2_raw, st2 = conv_stats(o1_pad, w2, ksize=3, stride=1, nphase=1,
                             hq=ho + 2, ho=ho, wo=wo)
    ss2 = _scale_shift(st2, n * ho * wo)

    # identity / shortcut branch
    if short:
        xph3, ho3, wo3, hq3, sp3 = _phase_split(x, 1, stride, 0, cin_p)
        assert (ho3, wo3) == (ho, wo)
        w3 = _prep_weight(p_conv3, cin_p, cout_p)
        i_raw, st3 = conv_stats(xph3, w3, ksize=1, stride=stride, nphase=sp3,
                                hq=hq3, ho=ho, wo=wo)
        ssi = _scale_shift(st3, n * ho * wo)          # bn3, fused into final kernel
    else:
        i_raw = jnp.pad(x, ((0, 0), (0, 0), (0, 0), (0, cout_p - cin)))
        ssi = jnp.stack([jnp.ones((cout_p,), jnp.float32),
                         jnp.zeros((cout_p,), jnp.float32)])

    # bn2 + bn3/identity + add + relu (fused)
    out = bn2_add_relu(o2_raw, ss2, i_raw, ssi)       # (N, ho, wo, Cp) f32
    out = out[..., :planes]                           # drop lane padding
    return jnp.transpose(out, (0, 3, 1, 2))           # NHWC -> NCHW


# ------------------------- pure-JAX reference checks ------------------------ #

def _ref_forward(x, p1, p2, p3, stride, use_bf16):
    def conv(t, p, s, pad):
        w_eff = p["w"] * p["z"] * p["m"]
        if use_bf16:
            t, w_eff = t.astype(jnp.bfloat16), w_eff.astype(jnp.bfloat16)
        return jax.lax.conv_general_dilated(
            t, w_eff, (s, s), [(pad, pad), (pad, pad)],
            dimension_numbers=("NCHW", "OIHW", "NCHW"),
            preferred_element_type=jnp.float32)

    def bn(t):
        mean = t.mean(axis=(0, 2, 3), keepdims=True)
        var = ((t - mean) ** 2).mean(axis=(0, 2, 3), keepdims=True)
        return (t - mean) / jnp.sqrt(var + BN_EPS)

    in_planes, planes = x.shape[1], p1["w"].shape[0]
    short = (stride != 1) or (in_planes != planes)
    o1 = jax.nn.relu(bn(conv(x, p1, stride, 1)))
    o2 = bn(conv(o1, p2, 1, 1))
    iden = bn(conv(x, p3, stride, 0)) if short else x
    return jax.nn.relu(o2 + iden)


def _check(out, x, p1, p2, p3, stride):
    # Tight check vs a reference that mirrors the kernel's bf16-at-MXU precision.
    ref_bf16 = jax.block_until_ready(_ref_forward(x, p1, p2, p3, stride, True))
    np.testing.assert_allclose(np.asarray(out), np.asarray(ref_bf16),
                               rtol=5e-3, atol=5e-3)
    # Loose check vs the exact f32 module semantics (bounds bf16 precision loss).
    ref_f32 = jax.block_until_ready(_ref_forward(x, p1, p2, p3, stride, False))
    np.testing.assert_allclose(np.asarray(out), np.asarray(ref_f32),
                               rtol=5e-2, atol=5e-2)


# ---------------------------------- main ----------------------------------- #

if __name__ == "__main__":
    key = jax.random.PRNGKey(0)
    kx, k1, k2, k3, kx2, k4, k5 = jax.random.split(key, 7)

    fwd = jax.jit(basic_block_forward, static_argnums=(4,))

    # Test 1: stride-2 block with 1x1-conv shortcut (in_planes != planes).
    N, IN_PLANES, H, W = 2, 4, 16, 16
    PLANES, STRIDE = 8, 2
    x = jax.random.normal(kx, (N, IN_PLANES, H, W), dtype=jnp.float32)
    p1 = make_subnet_conv_params(k1, IN_PLANES, PLANES, 3)
    p2 = make_subnet_conv_params(k2, PLANES, PLANES, 3)
    p3 = make_subnet_conv_params(k3, IN_PLANES, PLANES, 1)

    out = jax.block_until_ready(fwd(x, p1, p2, p3, STRIDE))
    assert out.shape == (N, PLANES, H // STRIDE, W // STRIDE), out.shape
    _check(out, x, p1, p2, p3, STRIDE)

    # Test 2: stride-1 identity block (no shortcut conv).
    x2 = jax.random.normal(kx2, (N, PLANES, H, W), dtype=jnp.float32)
    q1 = make_subnet_conv_params(k4, PLANES, PLANES, 3)
    q2 = make_subnet_conv_params(k5, PLANES, PLANES, 3)

    out2 = jax.block_until_ready(fwd(x2, q1, q2, None, 1))
    assert out2.shape == (N, PLANES, H, W), out2.shape
    _check(out2, x2, q1, q2, None, 1)

    print("KERNEL_OK")
</pallas_src>

<mosaic_0001>
module attributes {stable_mosaic.version = 11 : i64} {
  func.func @_conv_stats_kernel(%arg0: i32, %arg1: memref<1x36x9x128xbf16, #tpu.memory_space<vmem>>, %arg2: memref<9x128x128xbf16, #tpu.memory_space<vmem>>, %arg3: memref<1x8x8x128xf32, #tpu.memory_space<vmem>>, %arg4: memref<1x2x128xf32, #tpu.memory_space<vmem>>) attributes {dimension_semantics = [#tpu.dimension_semantics<parallel>], iteration_bounds = array<i64: 2>, scalar_prefetch = 0 : i64, scratch_operands = 0 : i64, tpu.core_type = #tpu.core_type<tc>, window_params = [{transform_indices = @transform_0, window_bounds = array<i64: 1, 36, 9, 128>}, {pipeline_mode = #tpu.pipeline_mode<synchronous>, transform_indices = @transform_1, window_bounds = array<i64: 9, 128, 128>}, {transform_indices = @transform_2, window_bounds = array<i64: 1, 8, 8, 128>}, {transform_indices = @transform_3, window_bounds = array<i64: 1, 2, 128>}]} {
    %cst = arith.constant 0.000000e+00 : f32
    %0 = vector.broadcast %cst : f32 to vector<64x128xf32>
    %c0 = arith.constant 0 : index
    %c0_0 = arith.constant 0 : index
    %c0_1 = arith.constant 0 : index
    %c0_2 = arith.constant 0 : index
    %1 = vector.load %arg1[%c0, %c0_0, %c0_1, %c0_2] : memref<1x36x9x128xbf16, #tpu.memory_space<vmem>>, vector<1x8x8x128xbf16>
    %2 = vector.shape_cast %1 : vector<1x8x8x128xbf16> to vector<8x8x128xbf16>
    %3 = vector.shape_cast %2 : vector<8x8x128xbf16> to vector<64x128xbf16>
    %c0_3 = arith.constant 0 : index
    %c0_4 = arith.constant 0 : index
    %c0_5 = arith.constant 0 : index
    %4 = vector.load %arg2[%c0_3, %c0_4, %c0_5] : memref<9x128x128xbf16, #tpu.memory_space<vmem>>, vector<1x128x128xbf16>
    %5 = vector.shape_cast %4 : vector<1x128x128xbf16> to vector<128x128xbf16>
    %cst_6 = arith.constant dense<0.000000e+00> : vector<64x128xf32>
    %6 = tpu.matmul %3, %5, %cst_6 {dimension_numbers = #tpu.dot_dimension_numbers<[1], [0], [0], [1], [0, 0, 1, 1], [], []>} : vector<64x128xbf16>, vector<128x128xbf16>, vector<64x128xf32> -> vector<64x128xf32>
    %7 = arith.addf %0, %6 : vector<64x128xf32>
    %c0_7 = arith.constant 0 : index
    %c9 = arith.constant 9 : index
    %c0_8 = arith.constant 0 : index
    %c0_9 = arith.constant 0 : index
    %8 = vector.load %arg1[%c0_7, %c9, %c0_8, %c0_9] : memref<1x36x9x128xbf16, #tpu.memory_space<vmem>>, vector<1x8x8x128xbf16>
    %9 = vector.shape_cast %8 : vector<1x8x8x128xbf16> to vector<8x8x128xbf16>
    %10 = vector.shape_cast %9 : vector<8x8x128xbf16> to vector<64x128xbf16>
    %c1 = arith.constant 1 : index
    %c0_10 = arith.constant 0 : index
    %c0_11 = arith.constant 0 : index
    %11 = vector.load %arg2[%c1, %c0_10, %c0_11] : memref<9x128x128xbf16, #tpu.memory_space<vmem>>, vector<1x128x128xbf16>
    %12 = vector.shape_cast %11 : vector<1x128x128xbf16> to vector<128x128xbf16>
    %cst_12 = arith.constant dense<0.000000e+00> : vector<64x128xf32>
    %13 = tpu.matmul %10, %12, %cst_12 {dimension_numbers = #tpu.dot_dimension_numbers<[1], [0], [0], [1], [0, 0, 1, 1], [], []>} : vector<64x128xbf16>, vector<128x128xbf16>, vector<64x128xf32> -> vector<64x128xf32>
    %14 = arith.addf %7, %13 : vector<64x128xf32>
    %c0_13 = arith.constant 0 : index
    %c0_14 = arith.constant 0 : index
    %c1_15 = arith.constant 1 : index
    %c0_16 = arith.constant 0 : index
    %15 = vector.load %arg1[%c0_13, %c0_14, %c1_15, %c0_16] : memref<1x36x9x128xbf16, #tpu.memory_space<vmem>>, vector<1x8x8x128xbf16>
    %16 = vector.shape_cast %15 : vector<1x8x8x128xbf16> to vector<8x8x128xbf16>
    %17 = vector.shape_cast %16 : vector<8x8x128xbf16> to vector<64x128xbf16>
    %c2 = arith.constant 2 : index
    %c0_17 = arith.constant 0 : index
    %c0_18 = arith.constant 0 : index
    %18 = vector.load %arg2[%c2, %c0_17, %c0_18] : memref<9x128x128xbf16, #tpu.memory_space<vmem>>, vector<1x128x128xbf16>
    %19 = vector.shape_cast %18 : vector<1x128x128xbf16> to vector<128x128xbf16>
    %cst_19 = arith.constant dense<0.000000e+00> : vector<64x128xf32>
    %20 = tpu.matmul %17, %19, %cst_19 {dimension_numbers = #tpu.dot_dimension_numbers<[1], [0], [0], [1], [0, 0, 1, 1], [], []>} : vector<64x128xbf16>, vector<128x128xbf16>, vector<64x128xf32> -> vector<64x128xf32>
    %21 = arith.addf %14, %20 : vector<64x128xf32>
    %c0_20 = arith.constant 0 : index
    %c18 = arith.constant 18 : index
    %c0_21 = arith.constant 0 : index
    %c0_22 = arith.constant 0 : index
    %22 = vector.load %arg1[%c0_20, %c18, %c0_21, %c0_22] : memref<1x36x9x128xbf16, #tpu.memory_space<vmem>>, vector<1x8x8x128xbf16>
    %23 = vector.shape_cast %22 : vector<1x8x8x128xbf16> to vector<8x8x128xbf16>
    %24 = vector.shape_cast %23 : vector<8x8x128xbf16> to vector<64x128xbf16>
    %c3 = arith.constant 3 : index
    %c0_23 = arith.constant 0 : index
    %c0_24 = arith.constant 0 : index
    %25 = vector.load %arg2[%c3, %c0_23, %c0_24] : memref<9x128x128xbf16, #tpu.memory_space<vmem>>, vector<1x128x128xbf16>
    %26 = vector.shape_cast %25 : vector<1x128x128xbf16> to vector<128x128xbf16>
    %cst_25 = arith.constant dense<0.000000e+00> : vector<64x128xf32>
    %27 = tpu.matmul %24, %26, %cst_25 {dimension_numbers = #tpu.dot_dimension_numbers<[1], [0], [0], [1], [0, 0, 1, 1], [], []>} : vector<64x128xbf16>, vector<128x128xbf16>, vector<64x128xf32> -> vector<64x128xf32>
    %28 = arith.addf %21, %27 : vector<64x128xf32>
    %c0_26 = arith.constant 0 : index
    %c27 = arith.constant 27 : index
    %c0_27 = arith.constant 0 : index
    %c0_28 = arith.constant 0 : index
    %29 = vector.load %arg1[%c0_26, %c27, %c0_27, %c0_28] : memref<1x36x9x128xbf16, #tpu.memory_space<vmem>>, vector<1x8x8x128xbf16>
    %30 = vector.shape_cast %29 : vector<1x8x8x128xbf16> to vector<8x8x128xbf16>
    %31 = vector.shape_cast %30 : vector<8x8x128xbf16> to vector<64x128xbf16>
    %c4 = arith.constant 4 : index
    %c0_29 = arith.constant 0 : index
    %c0_30 = arith.constant 0 : index
    %32 = vector.load %arg2[%c4, %c0_29, %c0_30] : memref<9x128x128xbf16, #tpu.memory_space<vmem>>, vector<1x128x128xbf16>
    %33 = vector.shape_cast %32 : vector<1x128x128xbf16> to vector<128x128xbf16>
    %cst_31 = arith.constant dense<0.000000e+00> : vector<64x128xf32>
    %34 = tpu.matmul %31, %33, %cst_31 {dimension_numbers = #tpu.dot_dimension_numbers<[1], [0], [0], [1], [0, 0, 1, 1], [], []>} : vector<64x128xbf16>, vector<128x128xbf16>, vector<64x128xf32> -> vector<64x128xf32>
    %35 = arith.addf %28, %34 : vector<64x128xf32>
    %c0_32 = arith.constant 0 : index
    %c18_33 = arith.constant 18 : index
    %c1_34 = arith.constant 1 : index
    %c0_35 = arith.constant 0 : index
    %36 = vector.load %arg1[%c0_32, %c18_33, %c1_34, %c0_35] : memref<1x36x9x128xbf16, #tpu.memory_space<vmem>>, vector<1x8x8x128xbf16>
    %37 = vector.shape_cast %36 : vector<1x8x8x128xbf16> to vector<8x8x128xbf16>
    %38 = vector.shape_cast %37 : vector<8x8x128xbf16> to vector<64x128xbf16>
    %c5 = arith.constant 5 : index
    %c0_36 = arith.constant 0 : index
    %c0_37 = arith.constant 0 : index
    %39 = vector.load %arg2[%c5, %c0_36, %c0_37] : memref<9x128x128xbf16, #tpu.memory_space<vmem>>, vector<1x128x128xbf16>
    %40 = vector.shape_cast %39 : vector<1x128x128xbf16> to vector<128x128xbf16>
    %cst_38 = arith.constant dense<0.000000e+00> : vector<64x128xf32>
    %41 = tpu.matmul %38, %40, %cst_38 {dimension_numbers = #tpu.dot_dimension_numbers<[1], [0], [0], [1], [0, 0, 1, 1], [], []>} : vector<64x128xbf16>, vector<128x128xbf16>, vector<64x128xf32> -> vector<64x128xf32>
    %42 = arith.addf %35, %41 : vector<64x128xf32>
    %c0_39 = arith.constant 0 : index
    %c1_40 = arith.constant 1 : index
    %c0_41 = arith.constant 0 : index
    %c0_42 = arith.constant 0 : index
    %43 = vector.load %arg1[%c0_39, %c1_40, %c0_41, %c0_42] : memref<1x36x9x128xbf16, #tpu.memory_space<vmem>>, vector<1x8x8x128xbf16>
    %44 = vector.shape_cast %43 : vector<1x8x8x128xbf16> to vector<8x8x128xbf16>
    %45 = vector.shape_cast %44 : vector<8x8x128xbf16> to vector<64x128xbf16>
    %c6 = arith.constant 6 : index
    %c0_43 = arith.constant 0 : index
    %c0_44 = arith.constant 0 : index
    %46 = vector.load %arg2[%c6, %c0_43, %c0_44] : memref<9x128x128xbf16, #tpu.memory_space<vmem>>, vector<1x128x128xbf16>
    %47 = vector.shape_cast %46 : vector<1x128x128xbf16> to vector<128x128xbf16>
    %cst_45 = arith.constant dense<0.000000e+00> : vector<64x128xf32>
    %48 = tpu.matmul %45, %47, %cst_45 {dimension_numbers = #tpu.dot_dimension_numbers<[1], [0], [0], [1], [0, 0, 1, 1], [], []>} : vector<64x128xbf16>, vector<128x128xbf16>, vector<64x128xf32> -> vector<64x128xf32>
    %49 = arith.addf %42, %48 : vector<64x128xf32>
    %c0_46 = arith.constant 0 : index
    %c10 = arith.constant 10 : index
    %c0_47 = arith.constant 0 : index
    %c0_48 = arith.constant 0 : index
    %50 = vector.load %arg1[%c0_46, %c10, %c0_47, %c0_48] : memref<1x36x9x128xbf16, #tpu.memory_space<vmem>>, vector<1x8x8x128xbf16>
    %51 = vector.shape_cast %50 : vector<1x8x8x128xbf16> to vector<8x8x128xbf16>
    %52 = vector.shape_cast %51 : vector<8x8x128xbf16> to vector<64x128xbf16>
    %c7 = arith.constant 7 : index
    %c0_49 = arith.constant 0 : index
    %c0_50 = arith.constant 0 : index
    %53 = vector.load %arg2[%c7, %c0_49, %c0_50] : memref<9x128x128xbf16, #tpu.memory_space<vmem>>, vector<1x128x128xbf16>
    %54 = vector.shape_cast %53 : vector<1x128x128xbf16> to vector<128x128xbf16>
    %cst_51 = arith.constant dense<0.000000e+00> : vector<64x128xf32>
    %55 = tpu.matmul %52, %54, %cst_51 {dimension_numbers = #tpu.dot_dimension_numbers<[1], [0], [0], [1], [0, 0, 1, 1], [], []>} : vector<64x128xbf16>, vector<128x128xbf16>, vector<64x128xf32> -> vector<64x128xf32>
    %56 = arith.addf %49, %55 : vector<64x128xf32>
    %c0_52 = arith.constant 0 : index
    %c1_53 = arith.constant 1 : index
    %c1_54 = arith.constant 1 : index
    %c0_55 = arith.constant 0 : index
    %57 = vector.load %arg1[%c0_52, %c1_53, %c1_54, %c0_55] : memref<1x36x9x128xbf16, #tpu.memory_space<vmem>>, vector<1x8x8x128xbf16>
    %58 = vector.shape_cast %57 : vector<1x8x8x128xbf16> to vector<8x8x128xbf16>
    %59 = vector.shape_cast %58 : vector<8x8x128xbf16> to vector<64x128xbf16>
    %c8 = arith.constant 8 : index
    %c0_56 = arith.constant 0 : index
    %c0_57 = arith.constant 0 : index
    %60 = vector.load %arg2[%c8, %c0_56, %c0_57] : memref<9x128x128xbf16, #tpu.memory_space<vmem>>, vector<1x128x128xbf16>
    %61 = vector.shape_cast %60 : vector<1x128x128xbf16> to vector<128x128xbf16>
    %cst_58 = arith.constant dense<0.000000e+00> : vector<64x128xf32>
    %62 = tpu.matmul %59, %61, %cst_58 {dimension_numbers = #tpu.dot_dimension_numbers<[1], [0], [0], [1], [0, 0, 1, 1], [], []>} : vector<64x128xbf16>, vector<128x128xbf16>, vector<64x128xf32> -> vector<64x128xf32>
    %63 = arith.addf %56, %62 : vector<64x128xf32>
    %64 = vector.shape_cast %63 : vector<64x128xf32> to vector<1x8x8x128xf32>
    %c0_59 = arith.constant 0 : index
    %c0_60 = arith.constant 0 : index
    %c0_61 = arith.constant 0 : index
    %c0_62 = arith.constant 0 : index
    %65 = vector.load %arg3[%c0_59, %c0_60, %c0_61, %c0_62] : memref<1x8x8x128xf32, #tpu.memory_space<vmem>>, vector<1x8x8x128xf32>
    tpu.vector_store %arg3[%c0_59, %c0_60, %c0_61, %c0_62], %64 {strides = array<i32>} : memref<1x8x8x128xf32, #tpu.memory_space<vmem>>, vector<1x8x8x128xf32>,
    %cst_63 = arith.constant dense<0.000000e+00> : vector<128xf32>
    %66 = vector.multi_reduction <add>, %63, %cst_63 [0] : vector<64x128xf32> to vector<128xf32>
    %67 = vector.shape_cast %66 : vector<128xf32> to vector<1x128xf32>
    %c0_64 = arith.constant 0 : index
    %c0_65 = arith.constant 0 : index
    %c0_66 = arith.constant 0 : index
    %68 = vector.load %arg4[%c0_64, %c0_65, %c0_66] : memref<1x2x128xf32, #tpu.memory_space<vmem>>, vector<1x1x128xf32>
    %69 = vector.shape_cast %68 : vector<1x1x128xf32> to vector<1x128xf32>
    %70 = vector.shape_cast %67 : vector<1x128xf32> to vector<1x1x128xf32>
    tpu.vector_store %arg4[%c0_64, %c0_65, %c0_66], %70 {strides = array<i32>} : memref<1x2x128xf32, #tpu.memory_space<vmem>>, vector<1x1x128xf32>,
    %71 = arith.mulf %63, %63 : vector<64x128xf32>
    %cst_67 = arith.constant dense<0.000000e+00> : vector<128xf32>
    %72 = vector.multi_reduction <add>, %71, %cst_67 [0] : vector<64x128xf32> to vector<128xf32>
    %73 = vector.shape_cast %72 : vector<128xf32> to vector<1x128xf32>
    %c0_68 = arith.constant 0 : index
    %c1_69 = arith.constant 1 : index
    %c0_70 = arith.constant 0 : index
    %74 = vector.load %arg4[%c0_68, %c1_69, %c0_70] : memref<1x2x128xf32, #tpu.memory_space<vmem>>, vector<1x1x128xf32>
    %75 = vector.shape_cast %74 : vector<1x1x128xf32> to vector<1x128xf32>
    %76 = vector.shape_cast %73 : vector<1x128xf32> to vector<1x1x128xf32>
    tpu.vector_store %arg4[%c0_68, %c1_69, %c0_70], %76 {strides = array<i32>} : memref<1x2x128xf32, #tpu.memory_space<vmem>>, vector<1x1x128xf32>,
    return
  }
  func.func @transform_0(%arg0: i32) -> (i32, i32, i32, i32) {
    %c0_i32 = arith.constant 0 : i32
    %c0_i32_0 = arith.constant 0 : i32
    %c0_i32_1 = arith.constant 0 : i32
    %c0_i32_2 = arith.constant 0 : i32
    return %arg0, %c0_i32, %c0_i32_0, %c0_i32_1 : i32, i32, i32, i32
  }
  func.func @transform_1(%arg0: i32) -> (i32, i32, i32) {
    %c0_i32 = arith.constant 0 : i32
    %c0_i32_0 = arith.constant 0 : i32
    %c0_i32_1 = arith.constant 0 : i32
    %c0_i32_2 = arith.constant 0 : i32
    return %c0_i32, %c0_i32_0, %c0_i32_1 : i32, i32, i32
  }
  func.func @transform_2(%arg0: i32) -> (i32, i32, i32, i32) {
    %c0_i32 = arith.constant 0 : i32
    %c0_i32_0 = arith.constant 0 : i32
    %c0_i32_1 = arith.constant 0 : i32
    %c0_i32_2 = arith.constant 0 : i32
    return %arg0, %c0_i32, %c0_i32_0, %c0_i32_1 : i32, i32, i32, i32
  }
  func.func @transform_3(%arg0: i32) -> (i32, i32, i32) {
    %c0_i32 = arith.constant 0 : i32
    %c0_i32_0 = arith.constant 0 : i32
    %c0_i32_1 = arith.constant 0 : i32
    return %arg0, %c0_i32, %c0_i32_0 : i32, i32, i32
  }
}

module attributes {stable_mosaic.version = 11 : i64} {
  func.func @_conv_stats_kernel(%arg0: i32, %arg1: memref<1x8x8x128xbf16, #tpu.memory_space<vmem>>, %arg2: memref<1x128x128xbf16, #tpu.memory_space<vmem>>, %arg3: memref<1x8x8x128xf32, #tpu.memory_space<vmem>>, %arg4: memref<1x2x128xf32, #tpu.memory_space<vmem>>) attributes {dimension_semantics = [#tpu.dimension_semantics<parallel>], iteration_bounds = array<i64: 2>, scalar_prefetch = 0 : i64, scratch_operands = 0 : i64, tpu.core_type = #tpu.core_type<tc>, window_params = [{transform_indices = @transform_0, window_bounds = array<i64: 1, 8, 8, 128>}, {pipeline_mode = #tpu.pipeline_mode<synchronous>, transform_indices = @transform_1, window_bounds = array<i64: 1, 128, 128>}, {transform_indices = @transform_2, window_bounds = array<i64: 1, 8, 8, 128>}, {transform_indices = @transform_3, window_bounds = array<i64: 1, 2, 128>}]} {
    %cst = arith.constant 0.000000e+00 : f32
    %0 = vector.broadcast %cst : f32 to vector<64x128xf32>
    %c0 = arith.constant 0 : index
    %c0_0 = arith.constant 0 : index
    %c0_1 = arith.constant 0 : index
    %c0_2 = arith.constant 0 : index
    %1 = vector.load %arg1[%c0, %c0_0, %c0_1, %c0_2] : memref<1x8x8x128xbf16, #tpu.memory_space<vmem>>, vector<1x8x8x128xbf16>
    %2 = vector.shape_cast %1 : vector<1x8x8x128xbf16> to vector<8x8x128xbf16>
    %3 = vector.shape_cast %2 : vector<8x8x128xbf16> to vector<64x128xbf16>
    %c0_3 = arith.constant 0 : index
    %c0_4 = arith.constant 0 : index
    %c0_5 = arith.constant 0 : index
    %4 = vector.load %arg2[%c0_3, %c0_4, %c0_5] : memref<1x128x128xbf16, #tpu.memory_space<vmem>>, vector<1x128x128xbf16>
    %5 = vector.shape_cast %4 : vector<1x128x128xbf16> to vector<128x128xbf16>
    %cst_6 = arith.constant dense<0.000000e+00> : vector<64x128xf32>
    %6 = tpu.matmul %3, %5, %cst_6 {dimension_numbers = #tpu.dot_dimension_numbers<[1], [0], [0], [1], [0, 0, 1, 1], [], []>} : vector<64x128xbf16>, vector<128x128xbf16>, vector<64x128xf32> -> vector<64x128xf32>
    %7 = arith.addf %0, %6 : vector<64x128xf32>
    %8 = vector.shape_cast %7 : vector<64x128xf32> to vector<1x8x8x128xf32>
    %c0_7 = arith.constant 0 : index
    %c0_8 = arith.constant 0 : index
    %c0_9 = arith.constant 0 : index
    %c0_10 = arith.constant 0 : index
    %9 = vector.load %arg3[%c0_7, %c0_8, %c0_9, %c0_10] : memref<1x8x8x128xf32, #tpu.memory_space<vmem>>, vector<1x8x8x128xf32>
    tpu.vector_store %arg3[%c0_7, %c0_8, %c0_9, %c0_10], %8 {strides = array<i32>} : memref<1x8x8x128xf32, #tpu.memory_space<vmem>>, vector<1x8x8x128xf32>,
    %cst_11 = arith.constant dense<0.000000e+00> : vector<128xf32>
    %10 = vector.multi_reduction <add>, %7, %cst_11 [0] : vector<64x128xf32> to vector<128xf32>
    %11 = vector.shape_cast %10 : vector<128xf32> to vector<1x128xf32>
    %c0_12 = arith.constant 0 : index
    %c0_13 = arith.constant 0 : index
    %c0_14 = arith.constant 0 : index
    %12 = vector.load %arg4[%c0_12, %c0_13, %c0_14] : memref<1x2x128xf32, #tpu.memory_space<vmem>>, vector<1x1x128xf32>
    %13 = vector.shape_cast %12 : vector<1x1x128xf32> to vector<1x128xf32>
    %14 = vector.shape_cast %11 : vector<1x128xf32> to vector<1x1x128xf32>
    tpu.vector_store %arg4[%c0_12, %c0_13, %c0_14], %14 {strides = array<i32>} : memref<1x2x128xf32, #tpu.memory_space<vmem>>, vector<1x1x128xf32>,
    %15 = arith.mulf %7, %7 : vector<64x128xf32>
    %cst_15 = arith.constant dense<0.000000e+00> : vector<128xf32>
    %16 = vector.multi_reduction <add>, %15, %cst_15 [0] : vector<64x128xf32> to vector<128xf32>
    %17 = vector.shape_cast %16 : vector<128xf32> to vector<1x128xf32>
    %c0_16 = arith.constant 0 : index
    %c1 = arith.constant 1 : index
    %c0_17 = arith.constant 0 : index
    %18 = vector.load %arg4[%c0_16, %c1, %c0_17] : memref<1x2x128xf32, #tpu.memory_space<vmem>>, vector<1x1x128xf32>
    %19 = vector.shape_cast %18 : vector<1x1x128xf32> to vector<1x128xf32>
    %20 = vector.shape_cast %17 : vector<1x128xf32> to vector<1x1x128xf32>
    tpu.vector_store %arg4[%c0_16, %c1, %c0_17], %20 {strides = array<i32>} : memref<1x2x128xf32, #tpu.memory_space<vmem>>, vector<1x1x128xf32>,
    return
  }
  func.func @transform_0(%arg0: i32) -> (i32, i32, i32, i32) {
    %c0_i32 = arith.constant 0 : i32
    %c0_i32_0 = arith.constant 0 : i32
    %c0_i32_1 = arith.constant 0 : i32
    %c0_i32_2 = arith.constant 0 : i32
    return %arg0, %c0_i32, %c0_i32_0, %c0_i32_1 : i32, i32, i32, i32
  }
  func.func @transform_1(%arg0: i32) -> (i32, i32, i32) {
    %c0_i32 = arith.constant 0 : i32
    %c0_i32_0 = arith.constant 0 : i32
    %c0_i32_1 = arith.constant 0 : i32
    %c0_i32_2 = arith.constant 0 : i32
    return %c0_i32, %c0_i32_0, %c0_i32_1 : i32, i32, i32
  }
  func.func @transform_2(%arg0: i32) -> (i32, i32, i32, i32) {
    %c0_i32 = arith.constant 0 : i32
    %c0_i32_0 = arith.constant 0 : i32
    %c0_i32_1 = arith.constant 0 : i32
    %c0_i32_2 = arith.constant 0 : i32
    return %arg0, %c0_i32, %c0_i32_0, %c0_i32_1 : i32, i32, i32, i32
  }
  func.func @transform_3(%arg0: i32) -> (i32, i32, i32) {
    %c0_i32 = arith.constant 0 : i32
    %c0_i32_0 = arith.constant 0 : i32
    %c0_i32_1 = arith.constant 0 : i32
    return %arg0, %c0_i32, %c0_i32_0 : i32, i32, i32
  }
}

module attributes {stable_mosaic.version = 11 : i64} {
  func.func @_bn_relu_pad_kernel(%arg0: i32, %arg1: memref<1x8x8x128xf32, #tpu.memory_space<vmem>>, %arg2: memref<2x128xf32, #tpu.memory_space<vmem>>, %arg3: memref<1x10x10x128xbf16, #tpu.memory_space<vmem>>) attributes {dimension_semantics = [#tpu.dimension_semantics<parallel>], iteration_bounds = array<i64: 2>, scalar_prefetch = 0 : i64, scratch_operands = 0 : i64, tpu.core_type = #tpu.core_type<tc>, window_params = [{transform_indices = @transform_0, window_bounds = array<i64: 1, 8, 8, 128>}, {pipeline_mode = #tpu.pipeline_mode<synchronous>, transform_indices = @transform_1, window_bounds = array<i64: 2, 128>}, {transform_indices = @transform_2, window_bounds = array<i64: 1, 10, 10, 128>}]} {
    %c0 = arith.constant 0 : index
    %c0_0 = arith.constant 0 : index
    %c0_1 = arith.constant 0 : index
    %c0_2 = arith.constant 0 : index
    %0 = vector.load %arg1[%c0, %c0_0, %c0_1, %c0_2] : memref<1x8x8x128xf32, #tpu.memory_space<vmem>>, vector<1x8x8x128xf32>
    %1 = vector.shape_cast %0 : vector<1x8x8x128xf32> to vector<8x8x128xf32>
    %c0_3 = arith.constant 0 : index
    %c0_4 = arith.constant 0 : index
    %2 = vector.load %arg2[%c0_3, %c0_4] : memref<2x128xf32, #tpu.memory_space<vmem>>, vector<1x128xf32>
    %3 = vector.shape_cast %2 : vector<1x128xf32> to vector<1x1x128xf32>
    %4 = vector.broadcast %3 : vector<1x1x128xf32> to vector<8x8x128xf32>
    %5 = arith.mulf %1, %4 : vector<8x8x128xf32>
    %c1 = arith.constant 1 : index
    %c0_5 = arith.constant 0 : index
    %6 = vector.load %arg2[%c1, %c0_5] : memref<2x128xf32, #tpu.memory_space<vmem>>, vector<1x128xf32>
    %7 = vector.shape_cast %6 : vector<1x128xf32> to vector<1x1x128xf32>
    %8 = vector.broadcast %7 : vector<1x1x128xf32> to vector<8x8x128xf32>
    %9 = arith.addf %5, %8 : vector<8x8x128xf32>
    %cst = arith.constant 0.000000e+00 : f32
    %10 = vector.broadcast %cst : f32 to vector<8x8x128xf32>
    %11 = arith.maximumf %9, %10 : vector<8x8x128xf32>
    %cst_6 = arith.constant 0.000000e+00 : bf16
    %12 = vector.broadcast %cst_6 : bf16 to vector<1x10x10x128xbf16>
    %c0_7 = arith.constant 0 : index
    %c0_8 = arith.constant 0 : index
    %c0_9 = arith.constant 0 : index
    %c0_10 = arith.constant 0 : index
    %13 = vector.load %arg3[%c0_7, %c0_8, %c0_9, %c0_10] : memref<1x10x10x128xbf16, #tpu.memory_space<vmem>>, vector<1x10x10x128xbf16>
    tpu.vector_store %arg3[%c0_7, %c0_8, %c0_9, %c0_10], %12 {strides = array<i32>} : memref<1x10x10x128xbf16, #tpu.memory_space<vmem>>, vector<1x10x10x128xbf16>,
    %14 = arith.truncf %11 : vector<8x8x128xf32> to vector<8x8x128xbf16>
    %c0_11 = arith.constant 0 : index
    %c1_12 = arith.constant 1 : index
    %c1_13 = arith.constant 1 : index
    %c0_14 = arith.constant 0 : index
    %15 = vector.load %arg3[%c0_11, %c1_12, %c1_13, %c0_14] : memref<1x10x10x128xbf16, #tpu.memory_space<vmem>>, vector<1x8x8x128xbf16>
    %16 = vector.shape_cast %15 : vector<1x8x8x128xbf16> to vector<8x8x128xbf16>
    %17 = vector.shape_cast %14 : vector<8x8x128xbf16> to vector<1x8x8x128xbf16>
    tpu.vector_store %arg3[%c0_11, %c1_12, %c1_13, %c0_14], %17 {strides = array<i32>} : memref<1x10x10x128xbf16, #tpu.memory_space<vmem>>, vector<1x8x8x128xbf16>,
    return
  }
  func.func @transform_0(%arg0: i32) -> (i32, i32, i32, i32) {
    %c0_i32 = arith.constant 0 : i32
    %c0_i32_0 = arith.constant 0 : i32
    %c0_i32_1 = arith.constant 0 : i32
    %c0_i32_2 = arith.constant 0 : i32
    return %arg0, %c0_i32, %c0_i32_0, %c0_i32_1 : i32, i32, i32, i32
  }
  func.func @transform_1(%arg0: i32) -> (i32, i32) {
    %c0_i32 = arith.constant 0 : i32
    %c0_i32_0 = arith.constant 0 : i32
    %c0_i32_1 = arith.constant 0 : i32
    return %c0_i32, %c0_i32_0 : i32, i32
  }
  func.func @transform_2(%arg0: i32) -> (i32, i32, i32, i32) {
    %c0_i32 = arith.constant 0 : i32
    %c0_i32_0 = arith.constant 0 : i32
    %c0_i32_1 = arith.constant 0 : i32
    %c0_i32_2 = arith.constant 0 : i32
    return %arg0, %c0_i32, %c0_i32_0, %c0_i32_1 : i32, i32, i32, i32
  }
}

module attributes {stable_mosaic.version = 11 : i64} {
  func.func @_conv_stats_kernel(%arg0: i32, %arg1: memref<1x10x10x128xbf16, #tpu.memory_space<vmem>>, %arg2: memref<9x128x128xbf16, #tpu.memory_space<vmem>>, %arg3: memref<1x8x8x128xf32, #tpu.memory_space<vmem>>, %arg4: memref<1x2x128xf32, #tpu.memory_space<vmem>>) attributes {dimension_semantics = [#tpu.dimension_semantics<parallel>], iteration_bounds = array<i64: 2>, scalar_prefetch = 0 : i64, scratch_operands = 0 : i64, tpu.core_type = #tpu.core_type<tc>, window_params = [{transform_indices = @transform_0, window_bounds = array<i64: 1, 10, 10, 128>}, {pipeline_mode = #tpu.pipeline_mode<synchronous>, transform_indices = @transform_1, window_bounds = array<i64: 9, 128, 128>}, {transform_indices = @transform_2, window_bounds = array<i64: 1, 8, 8, 128>}, {transform_indices = @transform_3, window_bounds = array<i64: 1, 2, 128>}]} {
    %cst = arith.constant 0.000000e+00 : f32
    %0 = vector.broadcast %cst : f32 to vector<64x128xf32>
    %c0 = arith.constant 0 : index
    %c0_0 = arith.constant 0 : index
    %c0_1 = arith.constant 0 : index
    %c0_2 = arith.constant 0 : index
    %1 = vector.load %arg1[%c0, %c0_0, %c0_1, %c0_2] : memref<1x10x10x128xbf16, #tpu.memory_space<vmem>>, vector<1x8x8x128xbf16>
    %2 = vector.shape_cast %1 : vector<1x8x8x128xbf16> to vector<8x8x128xbf16>
    %3 = vector.shape_cast %2 : vector<8x8x128xbf16> to vector<64x128xbf16>
    %c0_3 = arith.constant 0 : index
    %c0_4 = arith.constant 0 : index
    %c0_5 = arith.constant 0 : index
    %4 = vector.load %arg2[%c0_3, %c0_4, %c0_5] : memref<9x128x128xbf16, #tpu.memory_space<vmem>>, vector<1x128x128xbf16>
    %5 = vector.shape_cast %4 : vector<1x128x128xbf16> to vector<128x128xbf16>
    %cst_6 = arith.constant dense<0.000000e+00> : vector<64x128xf32>
    %6 = tpu.matmul %3, %5, %cst_6 {dimension_numbers = #tpu.dot_dimension_numbers<[1], [0], [0], [1], [0, 0, 1, 1], [], []>} : vector<64x128xbf16>, vector<128x128xbf16>, vector<64x128xf32> -> vector<64x128xf32>
    %7 = arith.addf %0, %6 : vector<64x128xf32>
    %c0_7 = arith.constant 0 : index
    %c0_8 = arith.constant 0 : index
    %c1 = arith.constant 1 : index
    %c0_9 = arith.constant 0 : index
    %8 = vector.load %arg1[%c0_7, %c0_8, %c1, %c0_9] : memref<1x10x10x128xbf16, #tpu.memory_space<vmem>>, vector<1x8x8x128xbf16>
    %9 = vector.shape_cast %8 : vector<1x8x8x128xbf16> to vector<8x8x128xbf16>
    %10 = vector.shape_cast %9 : vector<8x8x128xbf16> to vector<64x128xbf16>
    %c1_10 = arith.constant 1 : index
    %c0_11 = arith.constant 0 : index
    %c0_12 = arith.constant 0 : index
    %11 = vector.load %arg2[%c1_10, %c0_11, %c0_12] : memref<9x128x128xbf16, #tpu.memory_space<vmem>>, vector<1x128x128xbf16>
    %12 = vector.shape_cast %11 : vector<1x128x128xbf16> to vector<128x128xbf16>
    %cst_13 = arith.constant dense<0.000000e+00> : vector<64x128xf32>
    %13 = tpu.matmul %10, %12, %cst_13 {dimension_numbers = #tpu.dot_dimension_numbers<[1], [0], [0], [1], [0, 0, 1, 1], [], []>} : vector<64x128xbf16>, vector<128x128xbf16>, vector<64x128xf32> -> vector<64x128xf32>
    %14 = arith.addf %7, %13 : vector<64x128xf32>
    %c0_14 = arith.constant 0 : index
    %c0_15 = arith.constant 0 : index
    %c2 = arith.constant 2 : index
    %c0_16 = arith.constant 0 : index
    %15 = vector.load %arg1[%c0_14, %c0_15, %c2, %c0_16] : memref<1x10x10x128xbf16, #tpu.memory_space<vmem>>, vector<1x8x8x128xbf16>
    %16 = vector.shape_cast %15 : vector<1x8x8x128xbf16> to vector<8x8x128xbf16>
    %17 = vector.shape_cast %16 : vector<8x8x128xbf16> to vector<64x128xbf16>
    %c2_17 = arith.constant 2 : index
    %c0_18 = arith.constant 0 : index
    %c0_19 = arith.constant 0 : index
    %18 = vector.load %arg2[%c2_17, %c0_18, %c0_19] : memref<9x128x128xbf16, #tpu.memory_space<vmem>>, vector<1x128x128xbf16>
    %19 = vector.shape_cast %18 : vector<1x128x128xbf16> to vector<128x128xbf16>
    %cst_20 = arith.constant dense<0.000000e+00> : vector<64x128xf32>
    %20 = tpu.matmul %17, %19, %cst_20 {dimension_numbers = #tpu.dot_dimension_numbers<[1], [0], [0], [1], [0, 0, 1, 1], [], []>} : vector<64x128xbf16>, vector<128x128xbf16>, vector<64x128xf32> -> vector<64x128xf32>
    %21 = arith.addf %14, %20 : vector<64x128xf32>
    %c0_21 = arith.constant 0 : index
    %c1_22 = arith.constant 1 : index
    %c0_23 = arith.constant 0 : index
    %c0_24 = arith.constant 0 : index
    %22 = vector.load %arg1[%c0_21, %c1_22, %c0_23, %c0_24] : memref<1x10x10x128xbf16, #tpu.memory_space<vmem>>, vector<1x8x8x128xbf16>
    %23 = vector.shape_cast %22 : vector<1x8x8x128xbf16> to vector<8x8x128xbf16>
    %24 = vector.shape_cast %23 : vector<8x8x128xbf16> to vector<64x128xbf16>
    %c3 = arith.constant 3 : index
    %c0_25 = arith.constant 0 : index
    %c0_26 = arith.constant 0 : index
    %25 = vector.load %arg2[%c3, %c0_25, %c0_26] : memref<9x128x128xbf16, #tpu.memory_space<vmem>>, vector<1x128x128xbf16>
    %26 = vector.shape_cast %25 : vector<1x128x128xbf16> to vector<128x128xbf16>
    %cst_27 = arith.constant dense<0.000000e+00> : vector<64x128xf32>
    %27 = tpu.matmul %24, %26, %cst_27 {dimension_numbers = #tpu.dot_dimension_numbers<[1], [0], [0], [1], [0, 0, 1, 1], [], []>} : vector<64x128xbf16>, vector<128x128xbf16>, vector<64x128xf32> -> vector<64x128xf32>
    %28 = arith.addf %21, %27 : vector<64x128xf32>
    %c0_28 = arith.constant 0 : index
    %c1_29 = arith.constant 1 : index
    %c1_30 = arith.constant 1 : index
    %c0_31 = arith.constant 0 : index
    %29 = vector.load %arg1[%c0_28, %c1_29, %c1_30, %c0_31] : memref<1x10x10x128xbf16, #tpu.memory_space<vmem>>, vector<1x8x8x128xbf16>
    %30 = vector.shape_cast %29 : vector<1x8x8x128xbf16> to vector<8x8x128xbf16>
    %31 = vector.shape_cast %30 : vector<8x8x128xbf16> to vector<64x128xbf16>
    %c4 = arith.constant 4 : index
    %c0_32 = arith.constant 0 : index
    %c0_33 = arith.constant 0 : index
    %32 = vector.load %arg2[%c4, %c0_32, %c0_33] : memref<9x128x128xbf16, #tpu.memory_space<vmem>>, vector<1x128x128xbf16>
    %33 = vector.shape_cast %32 : vector<1x128x128xbf16> to vector<128x128xbf16>
    %cst_34 = arith.constant dense<0.000000e+00> : vector<64x128xf32>
    %34 = tpu.matmul %31, %33, %cst_34 {dimension_numbers = #tpu.dot_dimension_numbers<[1], [0], [0], [1], [0, 0, 1, 1], [], []>} : vector<64x128xbf16>, vector<128x128xbf16>, vector<64x128xf32> -> vector<64x128xf32>
    %35 = arith.addf %28, %34 : vector<64x128xf32>
    %c0_35 = arith.constant 0 : index
    %c1_36 = arith.constant 1 : index
    %c2_37 = arith.constant 2 : index
    %c0_38 = arith.constant 0 : index
    %36 = vector.load %arg1[%c0_35, %c1_36, %c2_37, %c0_38] : memref<1x10x10x128xbf16, #tpu.memory_space<vmem>>, vector<1x8x8x128xbf16>
    %37 = vector.shape_cast %36 : vector<1x8x8x128xbf16> to vector<8x8x128xbf16>
    %38 = vector.shape_cast %37 : vector<8x8x128xbf16> to vector<64x128xbf16>
    %c5 = arith.constant 5 : index
    %c0_39 = arith.constant 0 : index
    %c0_40 = arith.constant 0 : index
    %39 = vector.load %arg2[%c5, %c0_39, %c0_40] : memref<9x128x128xbf16, #tpu.memory_space<vmem>>, vector<1x128x128xbf16>
    %40 = vector.shape_cast %39 : vector<1x128x128xbf16> to vector<128x128xbf16>
    %cst_41 = arith.constant dense<0.000000e+00> : vector<64x128xf32>
    %41 = tpu.matmul %38, %40, %cst_41 {dimension_numbers = #tpu.dot_dimension_numbers<[1], [0], [0], [1], [0, 0, 1, 1], [], []>} : vector<64x128xbf16>, vector<128x128xbf16>, vector<64x128xf32> -> vector<64x128xf32>
    %42 = arith.addf %35, %41 : vector<64x128xf32>
    %c0_42 = arith.constant 0 : index
    %c2_43 = arith.constant 2 : index
    %c0_44 = arith.constant 0 : index
    %c0_45 = arith.constant 0 : index
    %43 = vector.load %arg1[%c0_42, %c2_43, %c0_44, %c0_45] : memref<1x10x10x128xbf16, #tpu.memory_space<vmem>>, vector<1x8x8x128xbf16>
    %44 = vector.shape_cast %43 : vector<1x8x8x128xbf16> to vector<8x8x128xbf16>
    %45 = vector.shape_cast %44 : vector<8x8x128xbf16> to vector<64x128xbf16>
    %c6 = arith.constant 6 : index
    %c0_46 = arith.constant 0 : index
    %c0_47 = arith.constant 0 : index
    %46 = vector.load %arg2[%c6, %c0_46, %c0_47] : memref<9x128x128xbf16, #tpu.memory_space<vmem>>, vector<1x128x128xbf16>
    %47 = vector.shape_cast %46 : vector<1x128x128xbf16> to vector<128x128xbf16>
    %cst_48 = arith.constant dense<0.000000e+00> : vector<64x128xf32>
    %48 = tpu.matmul %45, %47, %cst_48 {dimension_numbers = #tpu.dot_dimension_numbers<[1], [0], [0], [1], [0, 0, 1, 1], [], []>} : vector<64x128xbf16>, vector<128x128xbf16>, vector<64x128xf32> -> vector<64x128xf32>
    %49 = arith.addf %42, %48 : vector<64x128xf32>
    %c0_49 = arith.constant 0 : index
    %c2_50 = arith.constant 2 : index
    %c1_51 = arith.constant 1 : index
    %c0_52 = arith.constant 0 : index
    %50 = vector.load %arg1[%c0_49, %c2_50, %c1_51, %c0_52] : memref<1x10x10x128xbf16, #tpu.memory_space<vmem>>, vector<1x8x8x128xbf16>
    %51 = vector.shape_cast %50 : vector<1x8x8x128xbf16> to vector<8x8x128xbf16>
    %52 = vector.shape_cast %51 : vector<8x8x128xbf16> to vector<64x128xbf16>
    %c7 = arith.constant 7 : index
    %c0_53 = arith.constant 0 : index
    %c0_54 = arith.constant 0 : index
    %53 = vector.load %arg2[%c7, %c0_53, %c0_54] : memref<9x128x128xbf16, #tpu.memory_space<vmem>>, vector<1x128x128xbf16>
    %54 = vector.shape_cast %53 : vector<1x128x128xbf16> to vector<128x128xbf16>
    %cst_55 = arith.constant dense<0.000000e+00> : vector<64x128xf32>
    %55 = tpu.matmul %52, %54, %cst_55 {dimension_numbers = #tpu.dot_dimension_numbers<[1], [0], [0], [1], [0, 0, 1, 1], [], []>} : vector<64x128xbf16>, vector<128x128xbf16>, vector<64x128xf32> -> vector<64x128xf32>
    %56 = arith.addf %49, %55 : vector<64x128xf32>
    %c0_56 = arith.constant 0 : index
    %c2_57 = arith.constant 2 : index
    %c2_58 = arith.constant 2 : index
    %c0_59 = arith.constant 0 : index
    %57 = vector.load %arg1[%c0_56, %c2_57, %c2_58, %c0_59] : memref<1x10x10x128xbf16, #tpu.memory_space<vmem>>, vector<1x8x8x128xbf16>
    %58 = vector.shape_cast %57 : vector<1x8x8x128xbf16> to vector<8x8x128xbf16>
    %59 = vector.shape_cast %58 : vector<8x8x128xbf16> to vector<64x128xbf16>
    %c8 = arith.constant 8 : index
    %c0_60 = arith.constant 0 : index
    %c0_61 = arith.constant 0 : index
    %60 = vector.load %arg2[%c8, %c0_60, %c0_61] : memref<9x128x128xbf16, #tpu.memory_space<vmem>>, vector<1x128x128xbf16>
    %61 = vector.shape_cast %60 : vector<1x128x128xbf16> to vector<128x128xbf16>
    %cst_62 = arith.constant dense<0.000000e+00> : vector<64x128xf32>
    %62 = tpu.matmul %59, %61, %cst_62 {dimension_numbers = #tpu.dot_dimension_numbers<[1], [0], [0], [1], [0, 0, 1, 1], [], []>} : vector<64x128xbf16>, vector<128x128xbf16>, vector<64x128xf32> -> vector<64x128xf32>
    %63 = arith.addf %56, %62 : vector<64x128xf32>
    %64 = vector.shape_cast %63 : vector<64x128xf32> to vector<1x8x8x128xf32>
    %c0_63 = arith.constant 0 : index
    %c0_64 = arith.constant 0 : index
    %c0_65 = arith.constant 0 : index
    %c0_66 = arith.constant 0 : index
    %65 = vector.load %arg3[%c0_63, %c0_64, %c0_65, %c0_66] : memref<1x8x8x128xf32, #tpu.memory_space<vmem>>, vector<1x8x8x128xf32>
    tpu.vector_store %arg3[%c0_63, %c0_64, %c0_65, %c0_66], %64 {strides = array<i32>} : memref<1x8x8x128xf32, #tpu.memory_space<vmem>>, vector<1x8x8x128xf32>,
    %cst_67 = arith.constant dense<0.000000e+00> : vector<128xf32>
    %66 = vector.multi_reduction <add>, %63, %cst_67 [0] : vector<64x128xf32> to vector<128xf32>
    %67 = vector.shape_cast %66 : vector<128xf32> to vector<1x128xf32>
    %c0_68 = arith.constant 0 : index
    %c0_69 = arith.constant 0 : index
    %c0_70 = arith.constant 0 : index
    %68 = vector.load %arg4[%c0_68, %c0_69, %c0_70] : memref<1x2x128xf32, #tpu.memory_space<vmem>>, vector<1x1x128xf32>
    %69 = vector.shape_cast %68 : vector<1x1x128xf32> to vector<1x128xf32>
    %70 = vector.shape_cast %67 : vector<1x128xf32> to vector<1x1x128xf32>
    tpu.vector_store %arg4[%c0_68, %c0_69, %c0_70], %70 {strides = array<i32>} : memref<1x2x128xf32, #tpu.memory_space<vmem>>, vector<1x1x128xf32>,
    %71 = arith.mulf %63, %63 : vector<64x128xf32>
    %cst_71 = arith.constant dense<0.000000e+00> : vector<128xf32>
    %72 = vector.multi_reduction <add>, %71, %cst_71 [0] : vector<64x128xf32> to vector<128xf32>
    %73 = vector.shape_cast %72 : vector<128xf32> to vector<1x128xf32>
    %c0_72 = arith.constant 0 : index
    %c1_73 = arith.constant 1 : index
    %c0_74 = arith.constant 0 : index
    %74 = vector.load %arg4[%c0_72, %c1_73, %c0_74] : memref<1x2x128xf32, #tpu.memory_space<vmem>>, vector<1x1x128xf32>
    %75 = vector.shape_cast %74 : vector<1x1x128xf32> to vector<1x128xf32>
    %76 = vector.shape_cast %73 : vector<1x128xf32> to vector<1x1x128xf32>
    tpu.vector_store %arg4[%c0_72, %c1_73, %c0_74], %76 {strides = array<i32>} : memref<1x2x128xf32, #tpu.memory_space<vmem>>, vector<1x1x128xf32>,
    return
  }
  func.func @transform_0(%arg0: i32) -> (i32, i32, i32, i32) {
    %c0_i32 = arith.constant 0 : i32
    %c0_i32_0 = arith.constant 0 : i32
    %c0_i32_1 = arith.constant 0 : i32
    %c0_i32_2 = arith.constant 0 : i32
    return %arg0, %c0_i32, %c0_i32_0, %c0_i32_1 : i32, i32, i32, i32
  }
  func.func @transform_1(%arg0: i32) -> (i32, i32, i32) {
    %c0_i32 = arith.constant 0 : i32
    %c0_i32_0 = arith.constant 0 : i32
    %c0_i32_1 = arith.constant 0 : i32
    %c0_i32_2 = arith.constant 0 : i32
    return %c0_i32, %c0_i32_0, %c0_i32_1 : i32, i32, i32
  }
  func.func @transform_2(%arg0: i32) -> (i32, i32, i32, i32) {
    %c0_i32 = arith.constant 0 : i32
    %c0_i32_0 = arith.constant 0 : i32
    %c0_i32_1 = arith.constant 0 : i32
    %c0_i32_2 = arith.constant 0 : i32
    return %arg0, %c0_i32, %c0_i32_0, %c0_i32_1 : i32, i32, i32, i32
  }
  func.func @transform_3(%arg0: i32) -> (i32, i32, i32) {
    %c0_i32 = arith.constant 0 : i32
    %c0_i32_0 = arith.constant 0 : i32
    %c0_i32_1 = arith.constant 0 : i32
    return %arg0, %c0_i32, %c0_i32_0 : i32, i32, i32
  }
}

module attributes {stable_mosaic.version = 11 : i64} {
  func.func @_bn2_add_relu_kernel(%arg0: i32, %arg1: memref<1x8x8x128xf32, #tpu.memory_space<vmem>>, %arg2: memref<2x128xf32, #tpu.memory_space<vmem>>, %arg3: memref<1x8x8x128xf32, #tpu.memory_space<vmem>>, %arg4: memref<2x128xf32, #tpu.memory_space<vmem>>, %arg5: memref<1x8x8x128xf32, #tpu.memory_space<vmem>>) attributes {dimension_semantics = [#tpu.dimension_semantics<parallel>], iteration_bounds = array<i64: 2>, scalar_prefetch = 0 : i64, scratch_operands = 0 : i64, tpu.core_type = #tpu.core_type<tc>, window_params = [{transform_indices = @transform_0, window_bounds = array<i64: 1, 8, 8, 128>}, {pipeline_mode = #tpu.pipeline_mode<synchronous>, transform_indices = @transform_1, window_bounds = array<i64: 2, 128>}, {transform_indices = @transform_2, window_bounds = array<i64: 1, 8, 8, 128>}, {pipeline_mode = #tpu.pipeline_mode<synchronous>, transform_indices = @transform_3, window_bounds = array<i64: 2, 128>}, {transform_indices = @transform_4, window_bounds = array<i64: 1, 8, 8, 128>}]} {
    %c0 = arith.constant 0 : index
    %c0_0 = arith.constant 0 : index
    %c0_1 = arith.constant 0 : index
    %c0_2 = arith.constant 0 : index
    %0 = vector.load %arg1[%c0, %c0_0, %c0_1, %c0_2] : memref<1x8x8x128xf32, #tpu.memory_space<vmem>>, vector<1x8x8x128xf32>
    %c0_3 = arith.constant 0 : index
    %c0_4 = arith.constant 0 : index
    %1 = vector.load %arg2[%c0_3, %c0_4] : memref<2x128xf32, #tpu.memory_space<vmem>>, vector<1x128xf32>
    %2 = vector.shape_cast %1 : vector<1x128xf32> to vector<1x1x1x128xf32>
    %3 = vector.broadcast %2 : vector<1x1x1x128xf32> to vector<1x8x8x128xf32>
    %4 = arith.mulf %0, %3 : vector<1x8x8x128xf32>
    %c1 = arith.constant 1 : index
    %c0_5 = arith.constant 0 : index
    %5 = vector.load %arg2[%c1, %c0_5] : memref<2x128xf32, #tpu.memory_space<vmem>>, vector<1x128xf32>
    %6 = vector.shape_cast %5 : vector<1x128xf32> to vector<1x1x1x128xf32>
    %7 = vector.broadcast %6 : vector<1x1x1x128xf32> to vector<1x8x8x128xf32>
    %8 = arith.addf %4, %7 : vector<1x8x8x128xf32>
    %c0_6 = arith.constant 0 : index
    %c0_7 = arith.constant 0 : index
    %c0_8 = arith.constant 0 : index
    %c0_9 = arith.constant 0 : index
    %9 = vector.load %arg3[%c0_6, %c0_7, %c0_8, %c0_9] : memref<1x8x8x128xf32, #tpu.memory_space<vmem>>, vector<1x8x8x128xf32>
    %c0_10 = arith.constant 0 : index
    %c0_11 = arith.constant 0 : index
    %10 = vector.load %arg4[%c0_10, %c0_11] : memref<2x128xf32, #tpu.memory_space<vmem>>, vector<1x128xf32>
    %11 = vector.shape_cast %10 : vector<1x128xf32> to vector<1x1x1x128xf32>
    %12 = vector.broadcast %11 : vector<1x1x1x128xf32> to vector<1x8x8x128xf32>
    %13 = arith.mulf %9, %12 : vector<1x8x8x128xf32>
    %c1_12 = arith.constant 1 : index
    %c0_13 = arith.constant 0 : index
    %14 = vector.load %arg4[%c1_12, %c0_13] : memref<2x128xf32, #tpu.memory_space<vmem>>, vector<1x128xf32>
    %15 = vector.shape_cast %14 : vector<1x128xf32> to vector<1x1x1x128xf32>
    %16 = vector.broadcast %15 : vector<1x1x1x128xf32> to vector<1x8x8x128xf32>
    %17 = arith.addf %13, %16 : vector<1x8x8x128xf32>
    %18 = arith.addf %8, %17 : vector<1x8x8x128xf32>
    %cst = arith.constant 0.000000e+00 : f32
    %19 = vector.broadcast %cst : f32 to vector<1x8x8x128xf32>
    %20 = arith.maximumf %18, %19 : vector<1x8x8x128xf32>
    %c0_14 = arith.constant 0 : index
    %c0_15 = arith.constant 0 : index
    %c0_16 = arith.constant 0 : index
    %c0_17 = arith.constant 0 : index
    %21 = vector.load %arg5[%c0_14, %c0_15, %c0_16, %c0_17] : memref<1x8x8x128xf32, #tpu.memory_space<vmem>>, vector<1x8x8x128xf32>
    tpu.vector_store %arg5[%c0_14, %c0_15, %c0_16, %c0_17], %20 {strides = array<i32>} : memref<1x8x8x128xf32, #tpu.memory_space<vmem>>, vector<1x8x8x128xf32>,
    return
  }
  func.func @transform_0(%arg0: i32) -> (i32, i32, i32, i32) {
    %c0_i32 = arith.constant 0 : i32
    %c0_i32_0 = arith.constant 0 : i32
    %c0_i32_1 = arith.constant 0 : i32
    %c0_i32_2 = arith.constant 0 : i32
    return %arg0, %c0_i32, %c0_i32_0, %c0_i32_1 : i32, i32, i32, i32
  }
  func.func @transform_1(%arg0: i32) -> (i32, i32) {
    %c0_i32 = arith.constant 0 : i32
    %c0_i32_0 = arith.constant 0 : i32
    %c0_i32_1 = arith.constant 0 : i32
    return %c0_i32, %c0_i32_0 : i32, i32
  }
  func.func @transform_2(%arg0: i32) -> (i32, i32, i32, i32) {
    %c0_i32 = arith.constant 0 : i32
    %c0_i32_0 = arith.constant 0 : i32
    %c0_i32_1 = arith.constant 0 : i32
    %c0_i32_2 = arith.constant 0 : i32
    return %arg0, %c0_i32, %c0_i32_0, %c0_i32_1 : i32, i32, i32, i32
  }
  func.func @transform_3(%arg0: i32) -> (i32, i32) {
    %c0_i32 = arith.constant 0 : i32
    %c0_i32_0 = arith.constant 0 : i32
    %c0_i32_1 = arith.constant 0 : i32
    return %c0_i32, %c0_i32_0 : i32, i32
  }
  func.func @transform_4(%arg0: i32) -> (i32, i32, i32, i32) {
    %c0_i32 = arith.constant 0 : i32
    %c0_i32_0 = arith.constant 0 : i32
    %c0_i32_1 = arith.constant 0 : i32
    %c0_i32_2 = arith.constant 0 : i32
    return %arg0, %c0_i32, %c0_i32_0, %c0_i32_1 : i32, i32, i32, i32
  }
}

</mosaic_0001>

<bundles_post_ra>
// kernel: basic_block_forward.8
= control target key start
LH: loop header
LB: loop body
LE: loop exit
PB: predicated region body
PF: predicated region fallthrough
CT: control target
= control target key end

     0   :  { %s600_s12 = smov 0   ;;  %s655_s0 = inlined_call_operand.vmem [shape: bf16[2,8,8,128], index: 0, kind: input, shape index: {}]   ;;  %s656_s1 = inlined_call_operand.vmem [shape: bf16[1,128,128], index: 1, kind: input, shape index: {}]   ;;  %s657_s2 = inlined_call_operand.vmem [shape: f32[2,8,8,128], index: 2, kind: output, shape index: {0}]   ;;  %s658_s3 = inlined_call_operand.vmem [shape: f32[2,2,128], index: 3, kind: output, shape index: {1}]  }
   0x1 LB: > { %s474_s13 = sadd.s32 4294967295, %s578_s12   ;;  %p478_p0 = scmp.ge.s32.totalorder %s578_s12, 1  ;;  %s578_s12 = sphi %s600_s12, %s14_s12  }
   0x2   : > { %p140_p1 = scmp.lt.s32.totalorder %s578_s12, 3 }
   0x4   : > { %p141_p2 = pnand %p478_p0, %p140_p1 }
   0x5   : > { %v560_v0 = vld [vmem:[%s656_s1] sm:$0xff] (!%p141_p2)   ;;  %p168_p3 = scmp.lt.s32.totalorder (!%p141_p2), %s474_s13, 1  ;;  %v561_v1 = vld [vmem:[%s656_s1 + $0x8] sm:$0xff] (!%p141_p2)   ;;  %v562_v2 = vld [vmem:[%s656_s1 + $0x10] sm:$0xff] (!%p141_p2)  }
   0x6   : > { %144 = sbr.rel (%p141_p2) target bundleno = 282 (0x11a), region = 28  ;;  %512 = vmatprep.subr.bf16.mxu0 (!%p141_p2), %v560_v0  ;;  %536 = vmatprep.subr.bf16.mxu1 (!%p141_p2), %v560_v0  ;;  %v563_v3 = vld [vmem:[%s656_s1 + $0x18] sm:$0xff] (!%p141_p2)   ;;  %v564_v6 = vld [vmem:[%s656_s1 + $0x20] sm:$0xff] (!%p141_p2)   ;;  %v565_v7 = vld [vmem:[%s656_s1 + $0x28] sm:$0xff] (!%p141_p2)  }
   0x7   : > { %513 = vmatpush3.bf16.msra.mxu0 (!%p141_p2), %v560_v0  ;;  %544 = vmatpush3.bf16.msra.mxu1 (!%p141_p2), %v560_v0  ;;  %v566_v8 = vld [vmem:[%s656_s1 + $0x30] sm:$0xff] (!%p141_p2)   ;;  %v567_v9 = vld [vmem:[%s656_s1 + $0x38] sm:$0xff] (!%p141_p2)  }
   0x8   : > { %514 = vmatprep.subr.bf16.mxu0 (!%p141_p2), %v561_v1  ;;  %537 = vmatprep.subr.bf16.mxu1 (!%p141_p2), %v561_v1 }
   0xb   : > { %515 = vmatpush3.bf16.msra.mxu0 (!%p141_p2), %v561_v1  ;;  %545 = vmatpush3.bf16.msra.mxu1 (!%p141_p2), %v561_v1 }
   0xc   : > { %516 = vmatprep.subr.bf16.mxu0 (!%p141_p2), %v562_v2  ;;  %538 = vmatprep.subr.bf16.mxu1 (!%p141_p2), %v562_v2 }
   0xd   : > { %s660_s13 = smov (!%p168_p3, %s474_s13), 1 }
   0xe   : > { %s498_s20 = sshll.u32 %s660_s13, 5  ;;  %s499_s7 = sshll.u32 %s660_s13, 6 }
   0xf   : > { %s623_s23 = scalar_lea.vmem %s655_s0, %s498_s20  ;;  %517 = vmatpush3.bf16.msra.mxu0 %v562_v2  ;;  %546 = vmatpush3.bf16.msra.mxu1 %v562_v2  ;;  %s177_s10 = scalar_lea.vmem %s657_s2, %s499_s7 }
  0x10   : > { %v568_v4 = vld [vmem:[%s623_s23] sm:$0xff]   ;;  %v570_v5 = vld [vmem:[%s623_s23 + $0x10] sm:$0xff]   ;;  %518 = vmatprep.subr.bf16.mxu0 %v563_v3  ;;  %539 = vmatprep.subr.bf16.mxu1 %v563_v3  ;;  %v569_v10 = vld [vmem:[%s623_s23 + $0x8] sm:$0xff]   ;;  %s483_s11 = sshll.u32 %s660_s13, 1 }
  0x11   : > { %528 = vmatprep.mubr.bf16.mxu0 %v568_v4  ;;  %532 = vmatprep.mubr.bf16.mxu1 %v570_v5  ;;  %v571_v11 = vld [vmem:[%s623_s23 + $0x18] sm:$0xff]   ;;  %s181_s16 = scalar_lea.vmem %s658_s3, %s483_s11 }
  0x13   : > { %519 = vmatpush3.bf16.msra.mxu0 %v563_v3  ;;  %547 = vmatpush3.bf16.msra.mxu1 %v563_v3 }
  0x14   : > { %520 = vmatprep.subr.bf16.mxu0 %v564_v6  ;;  %540 = vmatprep.subr.bf16.mxu1 %v564_v6 }
  0x17   : > { %521 = vmatpush3.bf16.msra.mxu0 %v564_v6  ;;  %548 = vmatpush3.bf16.msra.mxu1 %v564_v6 }
  0x18   : > { %522 = vmatprep.subr.bf16.mxu0 %v565_v7  ;;  %541 = vmatprep.subr.bf16.mxu1 %v565_v7 }
  0x1b   : > { %523 = vmatpush3.bf16.msra.mxu0 %v565_v7  ;;  %549 = vmatpush3.bf16.msra.mxu1 %v565_v7 }
  0x1c   : > { %524 = vmatprep.subr.bf16.mxu0 %v566_v8  ;;  %542 = vmatprep.subr.bf16.mxu1 %v566_v8 }
  0x1f   : > { %525 = vmatpush3.bf16.msra.mxu0 %v566_v8  ;;  %550 = vmatpush3.bf16.msra.mxu1 %v566_v8 }
  0x20   : > { %526 = vmatprep.subr.bf16.mxu0 %v567_v9  ;;  %543 = vmatprep.subr.bf16.mxu1 %v567_v9 }
  0x23   : > { %527 = vmatpush3.bf16.msra.mxu0 %v567_v9  ;;  %551 = vmatpush3.bf16.msra.mxu1 %v567_v9 }
  0x26   : > { %529 = vmatmul.mubr.bf16.vlgmr.msra.gmra.mrb[0].mxu0 %v569_v10  ;;  %533 = vmatmul.mubr.bf16.vlgmr.msra.gmra.mrb[0].mxu1 %v571_v11 }
  0xf9   : > { %v530_v12 = vpop.f32.mrb[0].mxu0  ;;  %v534_v13 = vpop.f32.mrb[0].mxu1 }
  0xfa   : > { %346 = vst [vmem:[%s177_s10 + $0x10] sm:$0xff] %v530_v12  ;;  %v313_v14 = vpop.f32.mrb[1].mxu0  ;;  %350 = vst [vmem:[%s177_s10 + $0x30] sm:$0xff] %v534_v13  ;;  %v329_v15 = vpop.f32.mrb[1].mxu1  ;;  %v368_v23 = vmul.f32 %v530_v12, %v530_v12  ;;  %v372_v35 = vmul.f32 %v534_v13, %v534_v13 }
  0xfb   : > { %344 = vst [vmem:[%s177_s10] sm:$0xff] %v313_v14  ;;  %v531_v16 = vpop.f32.mrb[2].mxu0  ;;  %348 = vst [vmem:[%s177_s10 + $0x20] sm:$0xff] %v329_v15  ;;  %v535_v17 = vpop.f32.mrb[2].mxu1  ;;  %v366_v20 = vmul.f32 %v313_v14, %v313_v14  ;;  %v370_v29 = vmul.f32 %v329_v15, %v329_v15 }
  0xfc   : > { %347 = vst [vmem:[%s177_s10 + $0x18] sm:$0xff] %v531_v16  ;;  %v316_v18 = vpop.f32.mrb[3].mxu0  ;;  %351 = vst [vmem:[%s177_s10 + $0x38] sm:$0xff] %v535_v17  ;;  %v332_v19 = vpop.f32.mrb[3].mxu1  ;;  %v369_v26 = vmul.f32 %v531_v16, %v531_v16  ;;  %v373_v38 = vmul.f32 %v535_v17, %v535_v17 }
  0xfd   : > { %345 = vst [vmem:[%s177_s10 + $0x8] sm:$0xff] %v316_v18  ;;  %v352_v21 = vadd.f32 %v316_v18, %v313_v14  ;;  %v367_v22 = vmul.f32 %v316_v18, %v316_v18  ;;  %349 = vst [vmem:[%s177_s10 + $0x28] sm:$0xff] %v332_v19  ;;  %v371_v34 = vmul.f32 %v332_v19, %v332_v19 }
  0xff   : > { %v353_v24 = vadd.f32 %v530_v12, %v352_v21  ;;  %v374_v25 = vadd.f32 %v367_v22, %v366_v20 }
 0x101   : > { %v375_v27 = vadd.f32 %v374_v25, %v368_v23  ;;  %v354_v28 = vadd.f32 %v531_v16, %v353_v24 }
 0x103   : > { %v355_v30 = vadd.f32 %v354_v28, %v329_v15  ;;  %v376_v31 = vadd.f32 %v375_v27, %v369_v26 }
 0x105   : > { %v377_v32 = vadd.f32 %v376_v31, %v370_v29  ;;  %v356_v33 = vadd.f32 %v355_v30, %v332_v19 }
 0x107   : > { %v357_v36 = vadd.f32 %v534_v13, %v356_v33  ;;  %v378_v37 = vadd.f32 %v377_v32, %v371_v34 }
 0x109   : > { %v358_v39 = vadd.f32 %v535_v17, %v357_v36  ;;  %v379_v40 = vadd.f32 %v378_v37, %v372_v35 }
 0x10b   : > { %v359_v41 = vrot.slane %v358_v39, 4  ;;  %v380_v42 = vadd.f32 %v379_v40, %v373_v38 }
 0x10d   : > { %v360_v43 = vadd.f32 %v359_v41, %v358_v39  ;;  %v381_v44 = vrot.slane %v380_v42, 4 }
 0x10f   : > { %v361_v45 = vrot.slane %v360_v43, 2  ;;  %v382_v46 = vadd.f32 %v381_v44, %v380_v42 }
 0x111   : > { %v362_v47 = vadd.f32 %v361_v45, %v360_v43  ;;  %v383_v48 = vrot.slane %v382_v46, 2 }
 0x113   : > { %v363_v49 = vrot.slane %v362_v47, 1  ;;  %v384_v50 = vadd.f32 %v383_v48, %v382_v46 }
 0x115   : > { %v364_v51 = vadd.f32 %v363_v49, %v362_v47  ;;  %v385_v52 = vrot.slane %v384_v50, 1 }
 0x117   : > { %365 = vst [vmem:[%s181_s16] sm:$0x1] %v364_v51  ;;  %v386_v53 = vadd.f32 %v385_v52, %v384_v50 }
 0x119   : > { %387 = vst [vmem:[%s181_s16 + $0x1] sm:$0x1] %v386_v53 }
 0x11a PF: > { %s14_s12 = sadd.s32 1, %s578_s12  }
 0x11b   : > { %p11_p4 = scmp.ge.s32.totalorder %s14_s12, 4  }
 0x11d   :  { %13 = sbr.rel (!%p11_p4) target bundleno = 1 (0x1), region = 70 }

// kernel: basic_block_forward.6
= control target key start
LH: loop header
LB: loop body
LE: loop exit
PB: predicated region body
PF: predicated region fallthrough
CT: control target
= control target key end

     0   :  { %s524_s9 = smov 0   ;;  %s676_s0 = inlined_call_operand.vmem [shape: f32[2,8,8,128], index: 0, kind: input, shape index: {}]   ;;  %s677_s1 = inlined_call_operand.vmem [shape: f32[2,128], index: 1, kind: input, shape index: {}]   ;;  %s678_s2 = inlined_call_operand.vmem [shape: bf16[2,10,10,128], index: 2, kind: output, shape index: {}]  }
   0x1 LB: > { %s429_s10 = sadd.s32 4294967295, %s506_s9   ;;  %p433_p0 = scmp.ge.s32.totalorder %s506_s9, 1  ;;  %s506_s9 = sphi %s524_s9, %s12_s9  }
   0x2   : > { %p112_p1 = scmp.lt.s32.totalorder %s506_s9, 3 }
   0x4   : > { %p113_p2 = pnand %p433_p0, %p112_p1 }
   0x5   : > { %p134_p3 = scmp.lt.s32.totalorder (!%p113_p2), %s429_s10, 1  ;;  %v437_v0 = vld [vmem:[%s677_s1] ss:$0 sm:$0xff] (!%p113_p2)  ;;  %v543_v1 = vld [vmem:[%s677_s1 + $0x1] ss:$0 sm:$0xff] (!%p113_p2)  ;;  %v508_v5 = vmov (!%p113_p2), 0  }
   0x6   : > { %116 = sbr.rel (%p113_p2) target bundleno = 49 (0x31), region = 28  ;;  %vm320_vm0 = vcmask (!%p113_p2), 1043456   ;;  %vm321_vm1 = vsmask.f32 (!%p113_p2), 7938  ;;  %vm326_vm2 = vcmask (!%p113_p2), 1040384  }
   0x7   : > { %vm327_vm3 = vsmask.f32 (!%p113_p2), 256  ;;  %vm596_vm4 = vmand (!%p113_p2), %vm320_vm0, %vm321_vm1 }
   0x8   : > { %vm603_vm5 = vmand (!%p113_p2), %vm326_vm2, %vm327_vm3 }
   0xd   : > { %s684_s10 = smov (!%p134_p3, %s429_s10), 1 }
   0xe   : > { %s490_s11 = smul.u32 80, %s684_s10  ;;  %s481_s12 = sshll.u32 %s684_s10, 6 }
   0xf   : > { %s538_s17 = scalar_lea.vmem %s676_s0, %s481_s12 }
  0x10   : > { %s548_s22 = scalar_lea.vmem %s678_s2, %s490_s11  ;;  %v145_v2 = vld [vmem:[%s538_s17] sm:$0xff]  ;;  %v146_v3 = vld [vmem:[%s538_s17 + $0x8] sm:$0xff]  ;;  %v147_v4 = vld [vmem:[%s538_s17 + $0x10] sm:$0xff] }
  0x11   : > { %189 = vst [vmem:[%s548_s22 + $0x8] sm:$0xf] %v508_v5  ;;  %187 = vst [vmem:[%s548_s22] sm:$0xf] %v508_v5  ;;  %v158_v6 = vmul.f32 %v437_v0, %v145_v2  ;;  %v159_v7 = vmul.f32 %v437_v0, %v146_v3  ;;  %v160_v8 = vmul.f32 %v437_v0, %v147_v4  ;;  %v148_v9 = vld [vmem:[%s538_s17 + $0x18] sm:$0xff]  ;;  %v149_v10 = vld [vmem:[%s538_s17 + $0x20] sm:$0xff] }
  0x12   : > { %188 = vst [vmem:[%s548_s22 + $0x4] sm:$0x1] %v508_v5  ;;  %190 = vst [vmem:[%s548_s22 + $0xc] sm:$0x1] %v508_v5  ;;  %v150_v11 = vld [vmem:[%s538_s17 + $0x28] sm:$0xff]  ;;  %v161_v12 = vmul.f32 %v437_v0, %v148_v9  ;;  %v162_v13 = vmul.f32 %v437_v0, %v149_v10  ;;  %v151_v15 = vld [vmem:[%s538_s17 + $0x30] sm:$0xff] }
  0x13   : > { %191 = vst [vmem:[%s548_s22 + $0x10] sm:$0xf] %v508_v5  ;;  %192 = vst [vmem:[%s548_s22 + $0x14] sm:$0x1] %v508_v5  ;;  %v163_v14 = vmul.f32 %v437_v0, %v150_v11  ;;  %v171_v16 = vadd.f32 %v543_v1, %v158_v6  ;;  %v172_v17 = vadd.f32 %v543_v1, %v159_v7  ;;  %v152_v20 = vld [vmem:[%s538_s17 + $0x38] sm:$0xff] }
  0x14   : > { %193 = vst [vmem:[%s548_s22 + $0x18] sm:$0xf] %v508_v5  ;;  %194 = vst [vmem:[%s548_s22 + $0x1c] sm:$0x1] %v508_v5  ;;  %v173_v18 = vadd.f32 %v543_v1, %v160_v8  ;;  %v164_v19 = vmul.f32 %v437_v0, %v151_v15  ;;  %v174_v21 = vadd.f32 %v543_v1, %v161_v12 }
  0x15   : > { %195 = vst [vmem:[%s548_s22 + $0x20] sm:$0xf] %v508_v5  ;;  %196 = vst [vmem:[%s548_s22 + $0x24] sm:$0x1] %v508_v5  ;;  %v175_v22 = vadd.f32 %v543_v1, %v162_v13  ;;  %v176_v23 = vadd.f32 %v543_v1, %v163_v14  ;;  %v179_v24 = vmax.f32 %v171_v16, 0.0  ;;  %v180_v25 = vmax.f32 %v172_v17, 0.0 }
  0x16   : > { %197 = vst [vmem:[%s548_s22 + $0x28] sm:$0xf] %v508_v5  ;;  %198 = vst [vmem:[%s548_s22 + $0x2c] sm:$0x1] %v508_v5  ;;  %v181_v26 = vmax.f32 %v173_v18, 0.0  ;;  %v177_v27 = vadd.f32 %v543_v1, %v164_v19  ;;  %v182_v28 = vmax.f32 %v174_v21, 0.0  ;;  %v165_v31 = vmul.f32 %v437_v0, %v152_v20 }
  0x17   : > { %199 = vst [vmem:[%s548_s22 + $0x30] sm:$0xf] %v508_v5  ;;  %200 = vst [vmem:[%s548_s22 + $0x34] sm:$0x1] %v508_v5  ;;  %v183_v29 = vmax.f32 %v175_v22, 0.0  ;;  %v184_v30 = vmax.f32 %v176_v23, 0.0  ;;  %v482_v32 = vpack.c.bf16 %v179_v24, %v179_v24  ;;  %v483_v33 = vpack.c.bf16 %v180_v25, %v180_v25 }
  0x18   : > { %201 = vst [vmem:[%s548_s22 + $0x38] sm:$0xf] %v508_v5  ;;  %202 = vst [vmem:[%s548_s22 + $0x3c] sm:$0x1] %v508_v5  ;;  %v484_v34 = vpack.c.bf16 %v181_v26, %v181_v26  ;;  %v185_v35 = vmax.f32 %v177_v27, 0.0  ;;  %v485_v36 = vpack.c.bf16 %v182_v28, %v182_v28  ;;  %v592_v48 = vadd.f32 %v543_v1, %v165_v31 }
  0x19   : > { %203 = vst [vmem:[%s548_s22 + $0x40] sm:$0xf] %v508_v5  ;;  %204 = vst [vmem:[%s548_s22 + $0x44] sm:$0x1] %v508_v5  ;;  %v486_v37 = vpack.c.bf16 %v183_v29, %v183_v29  ;;  %v585_v38 = vpack.c.bf16 %v184_v30, %v184_v30  ;;  %v240_v39 = vshrl.u32 %v482_v32, 16  ;;  %v243_v40 = vshll.u32 %v482_v32, 16 }
  0x1a   : > { %205 = vst [vmem:[%s548_s22 + $0x48] sm:$0xf] %v508_v5  ;;  %206 = vst [vmem:[%s548_s22 + $0x4c] sm:$0x1] %v508_v5  ;;  %v248_v41 = vshrl.u32 %v483_v33, 16  ;;  %v251_v42 = vshll.u32 %v483_v33, 16  ;;  %v589_v47 = vpack.c.bf16 %v185_v35, %v185_v35 }
  0x1b   : > { %v447_v43 = vld [vmem:[%s548_s22 + $0x8] sm:$0xf]  ;;  %v449_v44 = vld [vmem:[%s548_s22 + $0xc] sm:$0x1]  ;;  %v256_v45 = vshrl.u32 %v484_v34, 16  ;;  %v259_v46 = vshll.u32 %v484_v34, 16 }
  0x1c   : > { %v242_v49 = vrot.slane %v240_v39, 7  ;;  %v250_v51 = vrot.slane %v248_v41, 7  ;;  %v451_v52 = vld [vmem:[%s548_s22 + $0x10] sm:$0xf]  ;;  %v264_v53 = vshrl.u32 %v485_v36, 16  ;;  %v267_v54 = vshll.u32 %v485_v36, 16 }
  0x1d   : > { %v453_v56 = vld [vmem:[%s548_s22 + $0x14] sm:$0x1]  ;;  %v258_v57 = vrot.slane %v256_v45, 7  ;;  %v272_v58 = vshrl.u32 %v486_v37, 16  ;;  %v275_v59 = vshll.u32 %v486_v37, 16  ;;  %v280_v60 = vshrl.u32 %v585_v38, 16 }
  0x1e   : > { %v245_v61 = vor.u32 %v243_v40, %v242_v49  ;;  %v246_v62 = vrot.slane %v242_v49, 4  ;;  %v253_v63 = vor.u32 %v251_v42, %v250_v51  ;;  %v254_v0 = vrot.slane %v250_v51, 4  ;;  %v455_v1 = vld [vmem:[%s548_s22 + $0x18] sm:$0xf]  ;;  %v457_v2 = vld [vmem:[%s548_s22 + $0x1c] sm:$0x1] }
  0x1f   : > { %v261_v3 = vor.u32 %v259_v46, %v258_v57  ;;  %v262_v4 = vrot.slane %v258_v57, 4  ;;  %v266_v5 = vrot.slane %v264_v53, 7  ;;  %v274_v6 = vrot.slane %v272_v58, 7  ;;  %v459_v11 = vld [vmem:[%s548_s22 + $0x20] sm:$0xf] }
  0x20   : > { %v324_v7 = vsel %vm596_vm4, %v245_v61, %v447_v43  ;;  %v330_v8 = vsel %vm603_vm5, %v246_v62, %v449_v44  ;;  %v333_v9 = vsel %vm596_vm4, %v253_v63, %v451_v52  ;;  %v336_v10 = vsel %vm603_vm5, %v254_v0, %v453_v56  ;;  %v461_v12 = vld [vmem:[%s548_s22 + $0x24] sm:$0x1]  ;;  %v463_v17 = vld [vmem:[%s548_s22 + $0x28] sm:$0xf]  ;;  %v465_v18 = vld [vmem:[%s548_s22 + $0x2c] sm:$0x1] }
  0x21   : > { %448 = vst [vmem:[%s548_s22 + $0x8] sm:$0xf] %v324_v7  ;;  %450 = vst [vmem:[%s548_s22 + $0xc] sm:$0x1] %v330_v8  ;;  %v339_v13 = vsel %vm596_vm4, %v261_v3, %v455_v1  ;;  %v342_v14 = vsel %vm603_vm5, %v262_v4, %v457_v2  ;;  %v269_v15 = vor.u32 %v267_v54, %v266_v5  ;;  %v270_v16 = vrot.slane %v266_v5, 4 }
  0x22   : > { %452 = vst [vmem:[%s548_s22 + $0x10] sm:$0xf] %v333_v9  ;;  %454 = vst [vmem:[%s548_s22 + $0x14] sm:$0x1] %v336_v10  ;;  %v277_v19 = vor.u32 %v275_v59, %v274_v6  ;;  %v278_v20 = vrot.slane %v274_v6, 4  ;;  %v282_v21 = vrot.slane %v280_v60, 7 }
  0x23   : > { %456 = vst [vmem:[%s548_s22 + $0x18] sm:$0xf] %v339_v13  ;;  %458 = vst [vmem:[%s548_s22 + $0x1c] sm:$0x1] %v342_v14  ;;  %v283_v22 = vshll.u32 %v585_v38, 16  ;;  %v345_v23 = vsel %vm596_vm4, %v269_v15, %v459_v11  ;;  %v348_v24 = vsel %vm603_vm5, %v270_v16, %v461_v12  ;;  %v288_v27 = vshrl.u32 %v589_v47, 16 }
  0x24   : > { %v467_v25 = vld [vmem:[%s548_s22 + $0x30] sm:$0xf]  ;;  %v469_v26 = vld [vmem:[%s548_s22 + $0x34] sm:$0x1]  ;;  %v291_v28 = vshll.u32 %v589_v47, 16  ;;  %v351_v29 = vsel %vm596_vm4, %v277_v19, %v463_v17  ;;  %v354_v30 = vsel %vm603_vm5, %v278_v20, %v465_v18  ;;  %v286_v32 = vrot.slane %v282_v21, 4 }
  0x25   : > { %460 = vst [vmem:[%s548_s22 + $0x20] sm:$0xf] %v345_v23  ;;  %462 = vst [vmem:[%s548_s22 + $0x24] sm:$0x1] %v348_v24  ;;  %v285_v31 = vor.u32 %v283_v22, %v282_v21  ;;  %v290_v33 = vrot.slane %v288_v27, 7  ;;  %v186_v34 = vmax.f32 %v592_v48, 0.0 }
  0x26   : > { %464 = vst [vmem:[%s548_s22 + $0x28] sm:$0xf] %v351_v29  ;;  %466 = vst [vmem:[%s548_s22 + $0x2c] sm:$0x1] %v354_v30  ;;  %v360_v36 = vsel %vm603_vm5, %v286_v32, %v469_v26  ;;  %v471_v37 = vld [vmem:[%s548_s22 + $0x38] sm:$0xf] }
  0x27   : > { %v357_v35 = vsel %vm596_vm4, %v285_v31, %v467_v25  ;;  %v473_v38 = vld [vmem:[%s548_s22 + $0x3c] sm:$0x1]  ;;  %470 = vst [vmem:[%s548_s22 + $0x34] sm:$0x1] %v360_v36  ;;  %v293_v39 = vor.u32 %v291_v28, %v290_v33  ;;  %v294_v40 = vrot.slane %v290_v33, 4  ;;  %v489_v41 = vpack.c.bf16 %v186_v34, %v186_v34 }
  0x28   : > { %468 = vst [vmem:[%s548_s22 + $0x30] sm:$0xf] %v357_v35  ;;  %v475_v47 = vld [vmem:[%s548_s22 + $0x40] sm:$0xf]  ;;  %v477_v48 = vld [vmem:[%s548_s22 + $0x44] sm:$0x1] }
  0x29   : > { %v363_v42 = vsel %vm596_vm4, %v293_v39, %v471_v37  ;;  %v366_v43 = vsel %vm603_vm5, %v294_v40, %v473_v38  ;;  %v296_v44 = vshrl.u32 %v489_v41, 16  ;;  %v299_v45 = vshll.u32 %v489_v41, 16 }
  0x2a   : > { %472 = vst [vmem:[%s548_s22 + $0x38] sm:$0xf] %v363_v42  ;;  %474 = vst [vmem:[%s548_s22 + $0x3c] sm:$0x1] %v366_v43 }
  0x2b   : > { %v298_v46 = vrot.slane %v296_v44, 7 }
  0x2d   : > { %v301_v49 = vor.u32 %v299_v45, %v298_v46  ;;  %v302_v51 = vrot.slane %v298_v46, 4 }
  0x2f   : > { %v369_v52 = vsel %vm596_vm4, %v301_v49, %v475_v47  ;;  %v372_v53 = vsel %vm603_vm5, %v302_v51, %v477_v48 }
  0x30   : > { %476 = vst [vmem:[%s548_s22 + $0x40] sm:$0xf] %v369_v52  ;;  %478 = vst [vmem:[%s548_s22 + $0x44] sm:$0x1] %v372_v53 }
  0x31 PF: > { %s12_s9 = sadd.s32 1, %s506_s9  }
  0x32   : > { %p9_p4 = scmp.ge.s32.totalorder %s12_s9, 4  }
  0x34   :  { %11 = sbr.rel (!%p9_p4) target bundleno = 1 (0x1), region = 59 }

// kernel: basic_block_forward.9
= control target key start
LH: loop header
LB: loop body
LE: loop exit
PB: predicated region body
PF: predicated region fallthrough
CT: control target
= control target key end

     0   :  { %s438_s15 = smov 0   ;;  %s525_s0 = inlined_call_operand.vmem [shape: f32[2,8,8,128], index: 0, kind: input, shape index: {}]   ;;  %s526_s1 = inlined_call_operand.vmem [shape: f32[2,128], index: 1, kind: input, shape index: {}]   ;;  %s527_s2 = inlined_call_operand.vmem [shape: f32[2,8,8,128], index: 2, kind: input, shape index: {}]   ;;  %s528_s3 = inlined_call_operand.vmem [shape: f32[2,128], index: 3, kind: input, shape index: {}]   ;;  %s529_s4 = inlined_call_operand.vmem [shape: f32[2,8,8,128], index: 4, kind: output, shape index: {}]  }
   0x1 LB: > { %s377_s16 = sadd.s32 4294967295, %s411_s15   ;;  %p381_p0 = scmp.ge.s32.totalorder %s411_s15, 1  ;;  %s411_s15 = sphi %s438_s15, %s14_s15  }
   0x2   : > { %p172_p1 = scmp.lt.s32.totalorder %s411_s15, 3 }
   0x4   : > { %p173_p2 = pnand %p381_p0, %p172_p1 }
   0x5   : > { %p203_p3 = scmp.lt.s32.totalorder (!%p173_p2), %s377_s16, 1  ;;  %v388_v0 = vld [vmem:[%s526_s1] ss:$0 sm:$0xff] (!%p173_p2)  ;;  %v469_v2 = vld [vmem:[%s526_s1 + $0x1] ss:$0 sm:$0xff] (!%p173_p2) }
   0x6   : > { %176 = sbr.rel (%p173_p2) target bundleno = 35 (0x23), region = 36  ;;  %v390_v1 = vld [vmem:[%s528_s3] ss:$0 sm:$0xff] (!%p173_p2)  ;;  %v474_v3 = vld [vmem:[%s528_s3 + $0x1] ss:$0 sm:$0xff] (!%p173_p2) }
   0xd   : > { %s531_s16 = smov (!%p203_p3, %s377_s16), 1 }
   0xe   : > { %s446_s17 = sshll.u32 %s531_s16, 6 }
   0xf   : > { %s458_s24 = scalar_lea.vmem %s525_s0, %s446_s17  ;;  %s464_s27 = scalar_lea.vmem %s527_s2, %s446_s17 }
  0x10   : > { %v218_v4 = vld [vmem:[%s458_s24] sm:$0xff]  ;;  %v219_v6 = vld [vmem:[%s458_s24 + $0x8] sm:$0xff]  ;;  %v220_v11 = vld [vmem:[%s458_s24 + $0x10] sm:$0xff]  ;;  %s499_s8 = scalar_lea.vmem %s529_s4, %s446_s17 }
  0x11   : > { %v252_v5 = vld [vmem:[%s464_s27] sm:$0xff]  ;;  %v231_v7 = vmul.f32 %v388_v0, %v218_v4  ;;  %v232_v9 = vmul.f32 %v388_v0, %v219_v6  ;;  %v253_v10 = vld [vmem:[%s464_s27 + $0x8] sm:$0xff]  ;;  %v254_v12 = vld [vmem:[%s464_s27 + $0x10] sm:$0xff]  ;;  %v233_v14 = vmul.f32 %v388_v0, %v220_v11 }
  0x12   : > { %v265_v8 = vmul.f32 %v390_v1, %v252_v5  ;;  %v266_v13 = vmul.f32 %v390_v1, %v253_v10  ;;  %v267_v15 = vmul.f32 %v390_v1, %v254_v12  ;;  %v221_v16 = vld [vmem:[%s458_s24 + $0x18] sm:$0xff]  ;;  %v222_v18 = vld [vmem:[%s458_s24 + $0x20] sm:$0xff]  ;;  %v223_v24 = vld [vmem:[%s458_s24 + $0x28] sm:$0xff] }
  0x13   : > { %v255_v17 = vld [vmem:[%s464_s27 + $0x18] sm:$0xff]  ;;  %v244_v19 = vadd.f32 %v469_v2, %v231_v7  ;;  %v245_v21 = vadd.f32 %v469_v2, %v232_v9  ;;  %v234_v22 = vmul.f32 %v388_v0, %v221_v16  ;;  %v256_v23 = vld [vmem:[%s464_s27 + $0x20] sm:$0xff]  ;;  %v246_v26 = vadd.f32 %v469_v2, %v233_v14  ;;  %v257_v29 = vld [vmem:[%s464_s27 + $0x28] sm:$0xff] }
  0x14   : > { %v278_v20 = vadd.f32 %v474_v3, %v265_v8  ;;  %v279_v25 = vadd.f32 %v474_v3, %v266_v13  ;;  %v280_v27 = vadd.f32 %v474_v3, %v267_v15  ;;  %v268_v28 = vmul.f32 %v390_v1, %v255_v17  ;;  %v224_v38 = vld [vmem:[%s458_s24 + $0x30] sm:$0xff]  ;;  %v225_v44 = vld [vmem:[%s458_s24 + $0x38] sm:$0xff] }
  0x15   : > { %v247_v31 = vadd.f32 %v469_v2, %v234_v22  ;;  %v235_v32 = vmul.f32 %v388_v0, %v222_v18  ;;  %v269_v33 = vmul.f32 %v390_v1, %v256_v23  ;;  %v236_v37 = vmul.f32 %v388_v0, %v223_v24  ;;  %v258_v39 = vld [vmem:[%s464_s27 + $0x30] sm:$0xff]  ;;  %v259_v45 = vld [vmem:[%s464_s27 + $0x38] sm:$0xff] }
  0x16   : > { %v286_v30 = vadd.f32 %v278_v20, %v244_v19  ;;  %v287_v34 = vadd.f32 %v279_v25, %v245_v21  ;;  %v288_v35 = vadd.f32 %v280_v27, %v246_v26  ;;  %v281_v36 = vadd.f32 %v474_v3, %v268_v28 }
  0x17   : > { %v248_v41 = vadd.f32 %v469_v2, %v235_v32  ;;  %v282_v42 = vadd.f32 %v474_v3, %v269_v33  ;;  %v270_v43 = vmul.f32 %v390_v1, %v257_v29  ;;  %v249_v49 = vadd.f32 %v469_v2, %v236_v37 }
  0x18   : > { %v294_v40 = vmax.f32 %v286_v30, 0.0  ;;  %v295_v46 = vmax.f32 %v287_v34, 0.0  ;;  %v296_v47 = vmax.f32 %v288_v35, 0.0  ;;  %v289_v48 = vadd.f32 %v281_v36, %v247_v31 }
  0x19   : > { %v290_v50 = vadd.f32 %v282_v42, %v248_v41  ;;  %v283_v51 = vadd.f32 %v474_v3, %v270_v43  ;;  %v237_v52 = vmul.f32 %v388_v0, %v224_v38  ;;  %v271_v53 = vmul.f32 %v390_v1, %v258_v39 }
  0x1a   : > { %302 = vst [vmem:[%s499_s8] sm:$0xff] %v294_v40  ;;  %303 = vst [vmem:[%s499_s8 + $0x8] sm:$0xff] %v295_v46  ;;  %v297_v54 = vmax.f32 %v289_v48, 0.0  ;;  %v238_v55 = vmul.f32 %v388_v0, %v225_v44  ;;  %v272_v56 = vmul.f32 %v390_v1, %v259_v45 }
  0x1b   : > { %304 = vst [vmem:[%s499_s8 + $0x10] sm:$0xff] %v296_v47  ;;  %v298_v57 = vmax.f32 %v290_v50, 0.0  ;;  %v291_v58 = vadd.f32 %v283_v51, %v249_v49  ;;  %v250_v59 = vadd.f32 %v469_v2, %v237_v52  ;;  %v284_v60 = vadd.f32 %v474_v3, %v271_v53 }
  0x1c   : > { %305 = vst [vmem:[%s499_s8 + $0x18] sm:$0xff] %v297_v54  ;;  %v251_v61 = vadd.f32 %v469_v2, %v238_v55  ;;  %v285_v62 = vadd.f32 %v474_v3, %v272_v56 }
  0x1d   : > { %306 = vst [vmem:[%s499_s8 + $0x20] sm:$0xff] %v298_v57  ;;  %v299_v63 = vmax.f32 %v291_v58, 0.0  ;;  %v292_v4 = vadd.f32 %v284_v60, %v250_v59 }
  0x1e   : > { %v293_v5 = vadd.f32 %v285_v62, %v251_v61 }
  0x1f   : > { %307 = vst [vmem:[%s499_s8 + $0x28] sm:$0xff] %v299_v63  ;;  %v300_v0 = vmax.f32 %v292_v4, 0.0 }
  0x20   : > { %v301_v6 = vmax.f32 %v293_v5, 0.0 }
  0x21   : > { %308 = vst [vmem:[%s499_s8 + $0x30] sm:$0xff] %v300_v0 }
  0x22   : > { %309 = vst [vmem:[%s499_s8 + $0x38] sm:$0xff] %v301_v6 }
  0x23 PF: > { %s14_s15 = sadd.s32 1, %s411_s15  }
  0x24   : > { %p11_p4 = scmp.ge.s32.totalorder %s14_s15, 4  }
  0x26   :  { %13 = sbr.rel (!%p11_p4) target bundleno = 1 (0x1), region = 69 }

// kernel: basic_block_forward.5
= control target key start
LH: loop header
LB: loop body
LE: loop exit
PB: predicated region body
PF: predicated region fallthrough
CT: control target
= control target key end

     0   :  { %s3027_s12 = smov 0   ;;  %s3396_s0 = inlined_call_operand.vmem [shape: bf16[2,36,9,128], index: 0, kind: input, shape index: {}]   ;;  %s3397_s1 = inlined_call_operand.vmem [shape: bf16[9,128,128], index: 1, kind: input, shape index: {}]   ;;  %s3398_s2 = inlined_call_operand.vmem [shape: f32[2,8,8,128], index: 2, kind: output, shape index: {0}]   ;;  %s3399_s3 = inlined_call_operand.vmem [shape: f32[2,2,128], index: 3, kind: output, shape index: {1}]  }
   0x1 LB: > { %s2170_s13 = sadd.s32 4294967295, %s3005_s12   ;;  %p2174_p0 = scmp.ge.s32.totalorder %s3005_s12, 1  ;;  %s3005_s12 = sphi %s3027_s12, %s14_s12  }
   0x2   : > { %p140_p1 = scmp.lt.s32.totalorder %s3005_s12, 3 }
   0x4   : > { %p141_p2 = pnand %p2174_p0, %p140_p1 }
   0x5   : > { %v2903_v0 = vld [vmem:[%s3397_s1 + $0x40] sm:$0xff] (!%p141_p2)   ;;  %p168_p3 = scmp.lt.s32.totalorder (!%p141_p2), %s2170_s13, 1  ;;  %v2905_v2 = vld [vmem:[%s3397_s1 + $0x48] sm:$0xff] (!%p141_p2)   ;;  %v2907_v4 = vld [vmem:[%s3397_s1 + $0x50] sm:$0xff] (!%p141_p2)   ;;  %vm523_vm0 = vsmask.f32 (!%p141_p2), 3328 }
   0x6   : > { %144 = sbr.rel (%p141_p2) target bundleno = 413 (0x19d), region = 28  ;;  %v2904_v1 = vld [vmem:[%s3397_s1 + $0x100] sm:$0xff] (!%p141_p2)   ;;  %2598 = vmatprep.subr.bf16.mxu1 (!%p141_p2), %v2903_v0  ;;  %v2906_v3 = vld [vmem:[%s3397_s1 + $0x108] sm:$0xff] (!%p141_p2)   ;;  %v2908_v5 = vld [vmem:[%s3397_s1 + $0x110] sm:$0xff] (!%p141_p2)   ;;  %vm524_vm1 = vsmask.f32 (!%p141_p2), 7440 }
   0x7   : > { %2694 = vmatprep.subr.bf16.mxu0 (!%p141_p2), %v2904_v1  ;;  %2599 = vmatpush3.bf16.msra.mxu1 (!%p141_p2), %v2903_v0  ;;  %v2909_v6 = vld [vmem:[%s3397_s1 + $0x58] sm:$0xff] (!%p141_p2)   ;;  %v2911_v8 = vld [vmem:[%s3397_s1 + $0x60] sm:$0xff] (!%p141_p2)   ;;  %v2913_v10 = vld [vmem:[%s3397_s1 + $0x68] sm:$0xff] (!%p141_p2)  }
   0x8   : > { %2695 = vmatpush3.bf16.msra.mxu0 (!%p141_p2), %v2904_v1  ;;  %2600 = vmatprep.subr.bf16.mxu1 (!%p141_p2), %v2905_v2  ;;  %v2910_v7 = vld [vmem:[%s3397_s1 + $0x118] sm:$0xff] (!%p141_p2)   ;;  %v2912_v9 = vld [vmem:[%s3397_s1 + $0x120] sm:$0xff] (!%p141_p2)   ;;  %v2914_v12 = vld [vmem:[%s3397_s1 + $0x128] sm:$0xff] (!%p141_p2)  }
   0x9   : > { %2696 = vmatprep.subr.bf16.mxu0 (!%p141_p2), %v2906_v3  ;;  %v2915_v14 = vld [vmem:[%s3397_s1 + $0x70] sm:$0xff] (!%p141_p2)   ;;  %v2917_v16 = vld [vmem:[%s3397_s1 + $0x78] sm:$0xff] (!%p141_p2)   ;;  %v2920_v18 = vld [vmem:[%s3397_s1] sm:$0xff] (!%p141_p2)  }
   0xa   : > { %v2916_v15 = vld [vmem:[%s3397_s1 + $0x130] sm:$0xff] (!%p141_p2)   ;;  %v2918_v17 = vld [vmem:[%s3397_s1 + $0x138] sm:$0xff] (!%p141_p2)   ;;  %v2922_v19 = vld [vmem:[%s3397_s1 + $0x140] sm:$0xff] (!%p141_p2)  }
   0xb   : > { %2601 = vmatpush3.bf16.msra.mxu1 (!%p141_p2), %v2905_v2  ;;  %v2925_v22 = vld [vmem:[%s3397_s1 + $0x8] sm:$0xff] (!%p141_p2)   ;;  %v2927_v26 = vld [vmem:[%s3397_s1 + $0x10] sm:$0xff] (!%p141_p2)   ;;  %v2929_v28 = vld [vmem:[%s3397_s1 + $0x18] sm:$0xff] (!%p141_p2)  }
   0xc   : > { %2697 = vmatpush3.bf16.msra.mxu0 (!%p141_p2), %v2906_v3  ;;  %2602 = vmatprep.subr.bf16.mxu1 (!%p141_p2), %v2907_v4  ;;  %v2926_v23 = vld [vmem:[%s3397_s1 + $0x148] sm:$0xff] (!%p141_p2)   ;;  %v2928_v27 = vld [vmem:[%s3397_s1 + $0x150] sm:$0xff] (!%p141_p2)   ;;  %v2930_v31 = vld [vmem:[%s3397_s1 + $0x158] sm:$0xff] (!%p141_p2)  }
   0xd   : > { %s3403_s13 = smov (!%p168_p3, %s2170_s13), 1  ;;  %2698 = vmatprep.subr.bf16.mxu0 %v2908_v5  ;;  %v2931_v38 = vld [vmem:[%s3397_s1 + $0x20] sm:$0xff]   ;;  %v2933_v47 = vld [vmem:[%s3397_s1 + $0x28] sm:$0xff]   ;;  %vm3142_vm2 = vmor %vm523_vm0, %vm524_vm1 }
   0xe   : > { %s2894_s30 = smul.u32 288, %s3403_s13  ;;  %v2932_v43 = vld [vmem:[%s3397_s1 + $0x160] sm:$0xff]   ;;  %v2934_v50 = vld [vmem:[%s3397_s1 + $0x168] sm:$0xff]   ;;  %v2936_v2 = vld [vmem:[%s3397_s1 + $0x30] sm:$0xff]   ;;  %s2489_s16 = sshll.u32 %s3403_s13, 6 }
   0xf   : > { %2603 = vmatpush3.bf16.msra.mxu1 %v2907_v4  ;;  %s177_s19 = scalar_lea.vmem %s3398_s2, %s2489_s16  ;;  %s2178_s20 = sshll.u32 %s3403_s13, 1 }
  0x10   : > { %2699 = vmatpush3.bf16.msra.mxu0 %v2908_v5  ;;  %2604 = vmatprep.subr.bf16.mxu1 %v2909_v6  ;;  %s3071_s10 = scalar_lea.vmem %s3396_s0, %s2894_s30  ;;  %s181_s23 = scalar_lea.vmem %s3399_s3, %s2178_s20 }
  0x11   : > { %2700 = vmatprep.subr.bf16.mxu0 %v2910_v7  ;;  %v2919_v11 = vld [vmem:[%s3071_s10 + $0x48] ss:$8 sps:$4 sm:$0xff]   ;;  %v2921_v13 = vld [vmem:[%s3071_s10 + $0xd8] ss:$8 sps:$4 sm:$0xff]   ;;  %v2328_v34 = vld [vmem:[%s3071_s10 + $0x94] sm:$0x1] }
  0x12   : > { %2614 = vmatprep.mubr.bf16.mxu1 %v2919_v11  ;;  %2710 = vmatprep.mubr.bf16.mxu0 %v2921_v13  ;;  %v2923_v20 = vld [vmem:[%s3071_s10 + $0x58] ss:$8 sps:$4 sm:$0xff]   ;;  %v2924_v21 = vld [vmem:[%s3071_s10 + $0xe8] ss:$8 sps:$4 sm:$0xff]   ;;  %v2330_v39 = vld [vmem:[%s3071_s10 + $0x9c] sm:$0x1] }
  0x13   : > { %2605 = vmatpush3.bf16.msra.mxu1 %v2909_v6  ;;  %v2935_v24 = vld [vmem:[%s3071_s10 + $0x68] ss:$8 sps:$4 sm:$0xff]   ;;  %v2937_v25 = vld [vmem:[%s3071_s10 + $0xf8] ss:$8 sps:$4 sm:$0xff]   ;;  %v1160_v40 = vshll.u32 %v2328_v34, 16  ;;  %v1174_v46 = vshll.u32 %v2330_v39, 16 }
  0x14   : > { %2701 = vmatpush3.bf16.msra.mxu0 %v2910_v7  ;;  %2606 = vmatprep.subr.bf16.mxu1 %v2911_v8  ;;  %v2939_v29 = vld [vmem:[%s3071_s10 + $0x78] ss:$8 sps:$4 sm:$0xff]   ;;  %v2940_v30 = vld [vmem:[%s3071_s10 + $0x108] ss:$8 sps:$4 sm:$0xff]   ;;  %v2332_v57 = vld [vmem:[%s3071_s10 + $0xa4] sm:$0x1] }
  0x15   : > { %2702 = vmatprep.subr.bf16.mxu0 %v2912_v9  ;;  %v2943_v32 = vld [vmem:[%s3071_s10] ss:$8 sps:$4 sm:$0xff]   ;;  %v2327_v33 = vld [vmem:[%s3071_s10 + $0x90] sm:$0xf]  ;;  %v2329_v35 = vld [vmem:[%s3071_s10 + $0x98] sm:$0xf] }
  0x16   : > { %v1151_v36 = vshrl.u32 %v2327_v33, 16  ;;  %v1154_v37 = vshll.u32 %v2327_v33, 16  ;;  %v1165_v41 = vshrl.u32 %v2329_v35, 16  ;;  %v1168_v42 = vshll.u32 %v2329_v35, 16  ;;  %v2331_v56 = vld [vmem:[%s3071_s10 + $0xa0] sm:$0xf] }
  0x17   : > { %2607 = vmatpush3.bf16.msra.mxu1 %v2911_v8  ;;  %v1162_v52 = vrot.slane %v1160_v40, 5  ;;  %v1176_v55 = vrot.slane %v1174_v46, 5  ;;  %v2333_v59 = vld [vmem:[%s3071_s10 + $0xa8] sm:$0xf]  ;;  %v2334_v60 = vld [vmem:[%s3071_s10 + $0xac] sm:$0x1] }
  0x18   : > { %2703 = vmatpush3.bf16.msra.mxu0 %v2912_v9  ;;  %2608 = vmatprep.subr.bf16.mxu1 %v2913_v10  ;;  %v1153_v44 = vrot.slane %v1151_v36, 4  ;;  %v1156_v45 = vrot.slane %v1154_v37, 5  ;;  %v1167_v48 = vrot.slane %v1165_v41, 4  ;;  %v1170_v49 = vrot.slane %v1168_v42, 5  ;;  %v2938_v6 = vld [vmem:[%s3397_s1 + $0x170] sm:$0xff]  }
  0x19   : > { %2704 = vmatprep.subr.bf16.mxu0 %v2914_v12  ;;  %v1179_v61 = vshrl.u32 %v2331_v56, 16  ;;  %v1182_v63 = vshll.u32 %v2331_v56, 16  ;;  %v1188_v0 = vshll.u32 %v2332_v57, 16  ;;  %v1193_v1 = vshrl.u32 %v2333_v59, 16  ;;  %v2957_v37 = vld [vmem:[%s3071_s10 + $0x20] ss:$8 sps:$4 sm:$0xff]  }
  0x1a   : > { %v1157_v51 = vor.u32 %v1156_v45, %v1153_v44  ;;  %v1171_v54 = vor.u32 %v1170_v49, %v1167_v48  ;;  %v1196_v5 = vshll.u32 %v2333_v59, 16  ;;  %v2960_v48 = vld [vmem:[%s3071_s10 + $0x30] ss:$8 sps:$4 sm:$0xff]   ;;  %v2339_v49 = vld [vmem:[%s3071_s10 + $0xc0] sm:$0xf] }
  0x1b   : > { %2609 = vmatpush3.bf16.msra.mxu1 %v2913_v10  ;;  %v1181_v4 = vrot.slane %v1179_v61, 4  ;;  %v1184_v8 = vrot.slane %v1182_v63, 5  ;;  %v1195_v9 = vrot.slane %v1193_v1, 4  ;;  %v1202_v10 = vshll.u32 %v2334_v60, 16  ;;  %v2951_v59 = vld [vmem:[%s3397_s1 + $0x98] sm:$0xff]  }
  0x1c   : > { %2705 = vmatpush3.bf16.msra.mxu0 %v2914_v12  ;;  %2610 = vmatprep.subr.bf16.mxu1 %v2915_v14  ;;  %v1158_v58 = vrot.slane %v1157_v51, 4  ;;  %v1172_v62 = vrot.slane %v1171_v54, 4  ;;  %v1190_v12 = vrot.slane %v1188_v0, 5  ;;  %v1198_v13 = vrot.slane %v1196_v5, 5  ;;  %v2341_v51 = vld [vmem:[%s3071_s10 + $0xc8] sm:$0xf] }
  0x1d   : > { %2706 = vmatprep.subr.bf16.mxu0 %v2916_v15  ;;  %v1235_v56 = vshrl.u32 %v2339_v49, 16  ;;  %v1238_v57 = vshll.u32 %v2339_v49, 16  ;;  %v1249_v61 = vshrl.u32 %v2341_v51, 16 }
  0x1e   : > { %v1163_v3 = vsel %vm3142_vm2, %v1158_v58, %v1162_v52  ;;  %v1177_v7 = vsel %vm3142_vm2, %v1172_v62, %v1176_v55  ;;  %v2950_v52 = vld [vmem:[%s3397_s1 + $0x190] sm:$0xff]   ;;  %v2342_v55 = vld [vmem:[%s3071_s10 + $0xcc] sm:$0x1]  ;;  %v1252_v62 = vshll.u32 %v2341_v51, 16 }
  0x1f   : > { %2611 = vmatpush3.bf16.msra.mxu1 %v2915_v14  ;;  %v2359_v11 = vcombine.low %v1163_v3, %v1177_v7  ;;  %v2941_v14 = vld [vmem:[%s3397_s1 + $0x38] sm:$0xff]   ;;  %v1258_v63 = vshll.u32 %v2342_v55, 16  ;;  %v1237_v1 = vrot.slane %v1235_v56, 4 }
  0x20   : > { %2707 = vmatpush3.bf16.msra.mxu0 %v2916_v15  ;;  %2612 = vmatprep.subr.bf16.mxu1 %v2917_v16  ;;  %v1185_v15 = vor.u32 %v1184_v8, %v1181_v4  ;;  %v2952_v4 = vld [vmem:[%s3397_s1 + $0x198] sm:$0xff]   ;;  %v1254_v7 = vrot.slane %v1252_v62, 5 }
  0x21   : > { %2708 = vmatprep.subr.bf16.mxu0 %v2918_v17  ;;  %v1260_v8 = vrot.slane %v1258_v63, 5 }
  0x23   : > { %2613 = vmatpush3.bf16.msra.mxu1 %v2917_v16  ;;  %v1199_v16 = vor.u32 %v1198_v13, %v1195_v9  ;;  %v2953_v13 = vld [vmem:[%s3397_s1 + $0xa0] sm:$0xff]  }
  0x24   : > { %2709 = vmatpush3.bf16.msra.mxu0 %v2918_v17  ;;  %2622 = vmatprep.subr.bf16.mxu1 %v2920_v18  ;;  %v1186_v17 = vrot.slane %v1185_v15, 4 }
  0x25   : > { %2718 = vmatprep.subr.bf16.mxu0 %v2922_v19 }
  0x26   : > { %2615 = vmatmul.mubr.bf16.vlgmr.msra.gmra.mrb[0].mxu1 %v2923_v20  ;;  %v1200_v20 = vrot.slane %v1199_v16, 4  ;;  %v509_v16 = vld [vmem:[%s3071_s10 + $0x8] sm:$0xf] }
  0x27   : > { %2623 = vmatpush3.bf16.msra.mxu1 %v2920_v18  ;;  %2711 = vmatmul.mubr.bf16.vlgmr.msra.gmra.mrb[0].mxu0 %v2924_v21  ;;  %v1204_v18 = vrot.slane %v1202_v10, 5  ;;  %v2944_v21 = vld [vmem:[%s3397_s1 + $0x80] sm:$0xff]  }
  0x28   : > { %2719 = vmatpush3.bf16.msra.mxu0 %v2922_v19  ;;  %2624 = vmatprep.subr.bf16.mxu1 %v2925_v22  ;;  %v2942_v19 = vld [vmem:[%s3397_s1 + $0x178] sm:$0xff]  }
  0x29   : > { %2720 = vmatprep.subr.bf16.mxu0 %v2926_v23  ;;  %2618 = vmatprep.mubr.bf16.mxu1 %v2935_v24  ;;  %v2945_v24 = vld [vmem:[%s3397_s1 + $0x180] sm:$0xff]  }
  0x2a   : > { %2714 = vmatprep.mubr.bf16.mxu0 %v2937_v25  ;;  %v2946_v25 = vld [vmem:[%s3071_s10 + $0x10] ss:$8 sps:$4 sm:$0xff]  }
  0x2b   : > { %2625 = vmatpush3.bf16.msra.mxu1 %v2925_v22  ;;  %v1191_v22 = vsel %vm3142_vm2, %v1186_v17, %v1190_v12  ;;  %v508_v12 = vld [vmem:[%s3071_s10 + $0x4] sm:$0x1]  ;;  %v510_v17 = vld [vmem:[%s3071_s10 + $0xc] sm:$0x1] }
  0x2c   : > { %2721 = vmatpush3.bf16.msra.mxu0 %v2926_v23  ;;  %2626 = vmatprep.subr.bf16.mxu1 %v2927_v26  ;;  %v1205_v23 = vsel %vm3142_vm2, %v1200_v20, %v1204_v18 }
  0x2d   : > { %2722 = vmatprep.subr.bf16.mxu0 %v2928_v27 }
  0x2e   : > { %2619 = vmatmul.mubr.bf16.gmra.mrb[4].mxu1 %v2939_v29  ;;  %v2948_v29 = vld [vmem:[%s3397_s1 + $0x188] sm:$0xff]  }
  0x2f   : > { %2627 = vmatpush3.bf16.msra.mxu1 %v2927_v26  ;;  %2715 = vmatmul.mubr.bf16.gmra.mrb[4].mxu0 %v2940_v30  ;;  %v2947_v26 = vld [vmem:[%s3397_s1 + $0x88] sm:$0xff]   ;;  %v2336_v30 = vld [vmem:[%s3071_s10 + $0xb4] sm:$0x1] }
  0x30   : > { %2723 = vmatpush3.bf16.msra.mxu0 %v2928_v27  ;;  %2628 = vmatprep.subr.bf16.mxu1 %v2929_v28  ;;  %v2335_v27 = vld [vmem:[%s3071_s10 + $0xb0] sm:$0xf]  ;;  %v1216_v35 = vshll.u32 %v2336_v30, 16 }
  0x31   : > { %2724 = vmatprep.subr.bf16.mxu0 %v2930_v31  ;;  %2638 = vmatprep.mubr.bf16.mxu1 %v2943_v32  ;;  %v2338_v32 = vld [vmem:[%s3071_s10 + $0xbc] sm:$0x1]  ;;  %v1207_v33 = vshrl.u32 %v2335_v27, 16  ;;  %v1210_v34 = vshll.u32 %v2335_v27, 16  ;;  %v550_v27 = vshll.u32 %v510_v17, 16 }
  0x32   : > { %2734 = vmatprep.mubr.bf16.mxu0 %v2359_v11  ;;  %v1230_v39 = vshll.u32 %v2338_v32, 16  ;;  %v1218_v44 = vrot.slane %v1216_v35, 5  ;;  %v507_v11 = vld [vmem:[%s3071_s10] sm:$0xf]  ;;  %v2955_v32 = vld [vmem:[%s3397_s1 + $0xa8] sm:$0xff]  }
  0x33   : > { %2629 = vmatpush3.bf16.msra.mxu1 %v2929_v28  ;;  %v2360_v28 = vcombine.low %v1191_v22, %v1205_v23  ;;  %v1209_v40 = vrot.slane %v1207_v33, 4  ;;  %v1212_v41 = vrot.slane %v1210_v34, 5  ;;  %v527_v18 = vshrl.u32 %v507_v11, 16  ;;  %v518_v17 = vld [vmem:[%s3071_s10 + $0x2c] sm:$0x1] }
  0x34   : > { %2725 = vmatpush3.bf16.msra.mxu0 %v2930_v31  ;;  %2630 = vmatprep.subr.bf16.mxu1 %v2931_v38  ;;  %v2337_v31 = vld [vmem:[%s3071_s10 + $0xb8] sm:$0xf]  ;;  %v1232_v46 = vrot.slane %v1230_v39, 5  ;;  %v541_v22 = vshrl.u32 %v509_v16, 16  ;;  %v544_v23 = vshll.u32 %v509_v16, 16 }
  0x35   : > { %2726 = vmatprep.subr.bf16.mxu0 %v2932_v43  ;;  %v1221_v36 = vshrl.u32 %v2337_v31, 16  ;;  %v517_v16 = vld [vmem:[%s3071_s10 + $0x28] sm:$0xf] }
  0x36   : > { %v543_v30 = vrot.slane %v541_v22, 4  ;;  %v597_v22 = vshrl.u32 %v517_v16, 16 }
  0x37   : > { %2631 = vmatpush3.bf16.msra.mxu1 %v2931_v38  ;;  %v1224_v38 = vshll.u32 %v2337_v31, 16  ;;  %v1223_v42 = vrot.slane %v1221_v36, 4  ;;  %v546_v31 = vrot.slane %v544_v23, 5  ;;  %v552_v36 = vrot.slane %v550_v27, 5 }
  0x38   : > { %2727 = vmatpush3.bf16.msra.mxu0 %v2932_v43  ;;  %2632 = vmatprep.subr.bf16.mxu1 %v2933_v47  ;;  %v2949_v43 = vld [vmem:[%s3397_s1 + $0x90] sm:$0xff]   ;;  %v600_v23 = vshll.u32 %v517_v16, 16  ;;  %v2444_v16 = vld [vmem:[%s3071_s10 + $0xc] sm:$0x1] }
  0x39   : > { %2728 = vmatprep.subr.bf16.mxu0 %v2934_v50  ;;  %v1226_v45 = vrot.slane %v1224_v38, 5  ;;  %v2956_v38 = vld [vmem:[%s3397_s1 + $0x1a8] sm:$0xff]  }
  0x3b   : > { %2633 = vmatpush3.bf16.msra.mxu1 %v2933_v47  ;;  %v1213_v47 = vor.u32 %v1212_v41, %v1209_v40  ;;  %v1227_v54 = vor.u32 %v1226_v45, %v1223_v42  ;;  %v547_v40 = vor.u32 %v546_v31, %v543_v30  ;;  %v511_v41 = vld [vmem:[%s3071_s10 + $0x10] sm:$0xf]  ;;  %v602_v31 = vrot.slane %v600_v23, 5 }
  0x3c   : > { %2729 = vmatpush3.bf16.msra.mxu0 %v2934_v50  ;;  %2634 = vmatprep.subr.bf16.mxu1 %v2936_v2  ;;  %v2340_v50 = vld [vmem:[%s3071_s10 + $0xc4] sm:$0x1]  ;;  %v555_v45 = vshrl.u32 %v511_v41, 16  ;;  %v519_v30 = vld [vmem:[%s3071_s10 + $0x30] sm:$0xf] }
  0x3d   : > { %2730 = vmatprep.subr.bf16.mxu0 %v2938_v6  ;;  %v1244_v58 = vshll.u32 %v2340_v50, 16  ;;  %v1214_v60 = vrot.slane %v1213_v47, 4  ;;  %v1228_v0 = vrot.slane %v1227_v54, 4  ;;  %v514_v47 = vld [vmem:[%s3071_s10 + $0x1c] sm:$0x1] }
  0x3f   : > { %2635 = vmatpush3.bf16.msra.mxu1 %v2936_v2  ;;  %v1240_v2 = vrot.slane %v1238_v57, 5  ;;  %v1246_v3 = vrot.slane %v1244_v58, 5  ;;  %v1219_v5 = vsel %vm3142_vm2, %v1214_v60, %v1218_v44  ;;  %v1233_v9 = vsel %vm3142_vm2, %v1228_v0, %v1232_v46  ;;  %v513_v44 = vld [vmem:[%s3071_s10 + $0x18] sm:$0xf]  ;;  %v2959_v60 = vld [vmem:[%s3397_s1 + $0x1b0] sm:$0xff]  }
  0x40   : > { %2731 = vmatpush3.bf16.msra.mxu0 %v2938_v6  ;;  %2636 = vmatprep.subr.bf16.mxu1 %v2941_v14  ;;  %v1251_v6 = vrot.slane %v1249_v61, 4  ;;  %v548_v46 = vrot.slane %v547_v40, 4  ;;  %v569_v50 = vshrl.u32 %v513_v44, 16  ;;  %v572_v54 = vshll.u32 %v513_v44, 16 }
  0x41   : > { %2732 = vmatprep.subr.bf16.mxu0 %v2942_v19  ;;  %v1241_v10 = vor.u32 %v1240_v2, %v1237_v1  ;;  %v578_v58 = vshll.u32 %v514_v47, 16 }
  0x42   : > { %v1255_v15 = vor.u32 %v1254_v7, %v1251_v6  ;;  %v553_v55 = vsel %vm3142_vm2, %v548_v46, %v552_v36  ;;  %v571_v57 = vrot.slane %v569_v50, 4  ;;  %v574_v63 = vrot.slane %v572_v54, 5  ;;  %v2962_v6 = vld [vmem:[%s3397_s1 + $0x1b8] sm:$0xff]   ;;  %v2963_v7 = vld [vmem:[%s3397_s1 + $0xc0] sm:$0xff]  }
  0x43   : > { %2637 = vmatpush3.bf16.msra.mxu1 %v2941_v14  ;;  %v2361_v14 = vcombine.low %v1219_v5, %v1233_v9  ;;  %v1242_v20 = vrot.slane %v1241_v10, 4  ;;  %v2965_v10 = vld [vmem:[%s3397_s1 + $0x1c0] sm:$0xff]   ;;  %v2971_v50 = vld [vmem:[%s3397_s1 + $0xd8] sm:$0xff]  }
  0x44   : > { %2733 = vmatpush3.bf16.msra.mxu0 %v2942_v19  ;;  %2646 = vmatprep.subr.bf16.mxu1 %v2944_v21  ;;  %v530_v19 = vshll.u32 %v507_v11, 16  ;;  %v575_v1 = vor.u32 %v574_v63, %v571_v57  ;;  %v2966_v11 = vld [vmem:[%s3071_s10 + $0x18] ss:$8 sps:$4 sm:$0xff]  }
  0x45   : > { %2742 = vmatprep.subr.bf16.mxu0 %v2945_v24 }
  0x46   : > { %2639 = vmatmul.mubr.bf16.vlgmr.msra.gmra.mrb[0].mxu1 %v2946_v25  ;;  %v529_v25 = vrot.slane %v527_v18, 4  ;;  %v576_v5 = vrot.slane %v575_v1, 4  ;;  %v2968_v18 = vld [vmem:[%s3397_s1 + $0x1c8] sm:$0xff]   ;;  %v2973_v1 = vld [vmem:[%s3397_s1 + $0xe0] sm:$0xff]  }
  0x47   : > { %2647 = vmatpush3.bf16.msra.mxu1 %v2944_v21  ;;  %2735 = vmatmul.mubr.bf16.vlgmr.msra.gmra.mrb[0].mxu0 %v2360_v28  ;;  %v536_v21 = vshll.u32 %v508_v12, 16  ;;  %v2954_v28 = vld [vmem:[%s3397_s1 + $0x1a0] sm:$0xff]  }
  0x48   : > { %2743 = vmatpush3.bf16.msra.mxu0 %v2945_v24  ;;  %2648 = vmatprep.subr.bf16.mxu1 %v2947_v26  ;;  %v1256_v24 = vrot.slane %v1255_v15, 4  ;;  %v515_v12 = vld [vmem:[%s3071_s10 + $0x20] sm:$0xf]  ;;  %v516_v15 = vld [vmem:[%s3071_s10 + $0x24] sm:$0x1] }
  0x49   : > { %2744 = vmatprep.subr.bf16.mxu0 %v2948_v29  ;;  %2642 = vmatprep.mubr.bf16.mxu1 %v2957_v37  ;;  %v538_v35 = vrot.slane %v536_v21, 5  ;;  %v2964_v37 = vld [vmem:[%s3071_s10 + $0x8] ss:$8 sps:$4 sm:$0xff]   ;;  %v592_v21 = vshll.u32 %v516_v15, 16 }
  0x4a   : > { %2738 = vmatprep.mubr.bf16.mxu0 %v2361_v14  ;;  %v1261_v33 = vsel %vm3142_vm2, %v1256_v24, %v1260_v8  ;;  %v2967_v14 = vld [vmem:[%s3397_s1 + $0xc8] sm:$0xff]   ;;  %v606_v24 = vshll.u32 %v518_v17, 16  ;;  %v2445_v17 = vld [vmem:[%s3071_s10 + $0x10] sm:$0xf] }
  0x4b   : > { %2649 = vmatpush3.bf16.msra.mxu1 %v2947_v26  ;;  %v532_v26 = vrot.slane %v530_v19, 5  ;;  %v583_v19 = vshrl.u32 %v515_v12, 16  ;;  %v2443_v15 = vld [vmem:[%s3071_s10 + $0x8] sm:$0xf]  ;;  %v1792_v23 = vshll.u32 %v2445_v17, 16 }
  0x4c   : > { %2745 = vmatpush3.bf16.msra.mxu0 %v2948_v29  ;;  %2650 = vmatprep.subr.bf16.mxu1 %v2949_v43  ;;  %v1247_v29 = vsel %vm3142_vm2, %v1242_v20, %v1246_v3  ;;  %v580_v3 = vrot.slane %v578_v58, 5  ;;  %v586_v20 = vshll.u32 %v515_v12, 16  ;;  %v2979_v58 = vld [vmem:[%s3071_s10 + $0x38] ss:$8 sps:$4 sm:$0xff]  }
  0x4d   : > { %2746 = vmatprep.subr.bf16.mxu0 %v2950_v52  ;;  %v533_v34 = vor.u32 %v532_v26, %v529_v25  ;;  %v2362_v39 = vcombine.low %v1247_v29, %v1261_v33  ;;  %v2977_v25 = vld [vmem:[%s3071_s10 + $0x28] ss:$8 sps:$4 sm:$0xff]   ;;  %v585_v26 = vrot.slane %v583_v19, 4  ;;  %v599_v29 = vrot.slane %v597_v22, 4  ;;  %v520_v33 = vld [vmem:[%s3071_s10 + $0x34] sm:$0x1] }
  0x4e   : > { %2643 = vmatmul.mubr.bf16.gmra.mrb[4].mxu1 %v2960_v48  ;;  %v558_v48 = vshll.u32 %v511_v41, 16  ;;  %v581_v9 = vsel %vm3142_vm2, %v576_v5, %v580_v3  ;;  %v588_v27 = vrot.slane %v586_v20, 5  ;;  %v620_v40 = vshll.u32 %v520_v33, 16  ;;  %v2970_v41 = vld [vmem:[%s3397_s1 + $0x1d0] sm:$0xff]   ;;  %v2974_v5 = vld [vmem:[%s3397_s1 + $0x1e0] sm:$0xff]   ;;  %v2981_v12 = vld [vmem:[%s3397_s1 + $0xf8] sm:$0xff]  }
  0x4f   : > { %2651 = vmatpush3.bf16.msra.mxu1 %v2949_v43  ;;  %v534_v42 = vrot.slane %v533_v34, 4  ;;  %v512_v43 = vld [vmem:[%s3071_s10 + $0x14] sm:$0x1]  ;;  %2739 = vmatmul.mubr.bf16.gmra.mrb[4].mxu0 %v2362_v39  ;;  %v521_v34 = vld [vmem:[%s3071_s10 + $0x38] sm:$0xf]  ;;  %v614_v39 = vshll.u32 %v519_v30, 16 }
  0x50   : > { %2747 = vmatpush3.bf16.msra.mxu0 %v2950_v52  ;;  %2652 = vmatprep.subr.bf16.mxu1 %v2951_v59  ;;  %v564_v49 = vshll.u32 %v512_v43, 16  ;;  %v557_v52 = vrot.slane %v555_v45, 4  ;;  %v560_v56 = vrot.slane %v558_v48, 5  ;;  %v589_v36 = vor.u32 %v588_v27, %v585_v26  ;;  %v2454_v33 = vld [vmem:[%s3071_s10 + $0x34] sm:$0x1] }
  0x51   : > { %2748 = vmatprep.subr.bf16.mxu0 %v2952_v4  ;;  %v539_v51 = vsel %vm3142_vm2, %v534_v42, %v538_v35  ;;  %2758 = vmatprep.mubr.bf16.mxu0 %v2964_v37  ;;  %v2969_v35 = vld [vmem:[%s3397_s1 + $0xd0] sm:$0xff]   ;;  %v522_v37 = vld [vmem:[%s3071_s10 + $0x3c] sm:$0x1]  ;;  %v603_v42 = vor.u32 %v602_v31, %v599_v29  ;;  %v625_v43 = vshrl.u32 %v521_v34, 16  ;;  %v628_v44 = vshll.u32 %v521_v34, 16 }
  0x52   : > { %v2243_v61 = vcombine.low %v539_v51, %v553_v55  ;;  %v566_v62 = vrot.slane %v564_v49, 5  ;;  %v561_v0 = vor.u32 %v560_v56, %v557_v52  ;;  %v634_v45 = vshll.u32 %v522_v37, 16  ;;  %v2453_v29 = vld [vmem:[%s3071_s10 + $0x30] sm:$0xf]  ;;  %v2986_v34 = vld [vmem:[%s3071_s10 + $0x60] ss:$8 sps:$4 sm:$0xff]  }
  0x53   : > { %2653 = vmatpush3.bf16.msra.mxu1 %v2951_v59  ;;  %v2958_v59 = vld [vmem:[%s3397_s1 + $0xb0] sm:$0xff]   ;;  %v590_v46 = vrot.slane %v589_v36, 4  ;;  %v616_v48 = vrot.slane %v614_v39, 5  ;;  %v622_v49 = vrot.slane %v620_v40, 5  ;;  %v604_v51 = vrot.slane %v603_v42, 4  ;;  %v2988_v39 = vld [vmem:[%s3397_s1 + $0x208] sm:$0xff]  }
  0x54   : > { %2749 = vmatpush3.bf16.msra.mxu0 %v2952_v4  ;;  %2654 = vmatprep.subr.bf16.mxu1 %v2953_v13  ;;  %v562_v2 = vrot.slane %v561_v0, 4  ;;  %v2961_v4 = vld [vmem:[%s3397_s1 + $0xb8] sm:$0xff]   ;;  %v627_v52 = vrot.slane %v625_v43, 4  ;;  %v630_v54 = vrot.slane %v628_v44, 5  ;;  %v636_v55 = vrot.slane %v634_v45, 5 }
  0x55   : > { %2750 = vmatprep.subr.bf16.mxu0 %v2954_v28  ;;  %2662 = vmatprep.mubr.bf16.mxu1 %v2243_v61  ;;  %v2972_v61 = vld [vmem:[%s3397_s1 + $0x1d8] sm:$0xff]   ;;  %v1775_v19 = vshrl.u32 %v2443_v15, 16  ;;  %v1778_v20 = vshll.u32 %v2443_v15, 16  ;;  %v1789_v22 = vshrl.u32 %v2445_v17, 16  ;;  %v1848_v42 = vshll.u32 %v2453_v29, 16  ;;  %v2995_v15 = vld [vmem:[%s3397_s1 + $0x220] sm:$0xff]  }
  0x56   : > { %v567_v8 = vsel %vm3142_vm2, %v562_v2, %v566_v62  ;;  %v1854_v43 = vshll.u32 %v2454_v33, 16  ;;  %v2989_v44 = vld [vmem:[%s3071_s10 + $0xb0] ss:$8 sps:$4 sm:$0xff]  }
  0x57   : > { %2655 = vmatpush3.bf16.msra.mxu1 %v2953_v13  ;;  %v2244_v13 = vcombine.low %v567_v8, %v581_v9  ;;  %v2975_v8 = vld [vmem:[%s3397_s1 + $0xe8] sm:$0xff]   ;;  %v1777_v26 = vrot.slane %v1775_v19, 4  ;;  %v1780_v27 = vrot.slane %v1778_v20, 5  ;;  %v1791_v31 = vrot.slane %v1789_v22, 4 }
  0x58   : > { %2751 = vmatpush3.bf16.msra.mxu0 %v2954_v28  ;;  %2656 = vmatprep.subr.bf16.mxu1 %v2955_v32  ;;  %v594_v28 = vrot.slane %v592_v21, 5  ;;  %v2976_v9 = vld [vmem:[%s3397_s1 + $0x1e8] sm:$0xff]   ;;  %v1784_v21 = vshll.u32 %v2444_v16, 16 }
  0x59   : > { %2752 = vmatprep.subr.bf16.mxu0 %v2956_v38  ;;  %v2996_v20 = vld [vmem:[%s3397_s1 + $0x228] sm:$0xff]  }
  0x5a   : > { %v595_v56 = vsel %vm3142_vm2, %v590_v46, %v594_v28  ;;  %v2452_v28 = vld [vmem:[%s3071_s10 + $0x2c] sm:$0x1]  ;;  %v1786_v45 = vrot.slane %v1784_v21, 5  ;;  %v2456_v21 = vld [vmem:[%s3071_s10 + $0x3c] sm:$0x1] }
  0x5b   : > { %2657 = vmatpush3.bf16.msra.mxu1 %v2955_v32  ;;  %v608_v32 = vrot.slane %v606_v24, 5 }
  0x5c   : > { %2753 = vmatpush3.bf16.msra.mxu0 %v2956_v38  ;;  %2658 = vmatprep.subr.bf16.mxu1 %v2958_v59  ;;  %v611_v38 = vshrl.u32 %v519_v30, 16  ;;  %v2985_v30 = vld [vmem:[%s3071_s10 + $0xa0] ss:$8 sps:$4 sm:$0xff]  }
  0x5d   : > { %2754 = vmatprep.subr.bf16.mxu0 %v2959_v60 }
  0x5e   : > { %v613_v47 = vrot.slane %v611_v38, 4  ;;  %v1840_v38 = vshll.u32 %v2452_v28, 16 }
  0x5f   : > { %2659 = vmatpush3.bf16.msra.mxu1 %v2958_v59  ;;  %v609_v59 = vsel %vm3142_vm2, %v604_v51, %v608_v32  ;;  %v1794_v32 = vrot.slane %v1792_v23, 5 }
  0x60   : > { %2755 = vmatpush3.bf16.msra.mxu0 %v2959_v60  ;;  %2660 = vmatprep.subr.bf16.mxu1 %v2961_v4  ;;  %v617_v57 = vor.u32 %v616_v48, %v613_v47  ;;  %v631_v60 = vor.u32 %v630_v54, %v627_v52  ;;  %v2245_v62 = vcombine.low %v595_v56, %v609_v59  ;;  %v1850_v54 = vrot.slane %v1848_v42, 5 }
  0x61   : > { %2756 = vmatprep.subr.bf16.mxu0 %v2962_v6  ;;  %v1795_v40 = vor.u32 %v1794_v32, %v1791_v31  ;;  %v1842_v56 = vrot.slane %v1840_v38, 5  ;;  %v1856_v59 = vrot.slane %v1854_v43, 5  ;;  %v2448_v31 = vld [vmem:[%s3071_s10 + $0x1c] sm:$0x1]  ;;  %v2450_v32 = vld [vmem:[%s3071_s10 + $0x24] sm:$0x1] }
  0x62   : > { %v618_v63 = vrot.slane %v617_v57, 4  ;;  %v632_v0 = vrot.slane %v631_v60, 4  ;;  %v2993_v57 = vld [vmem:[%s3397_s1 + $0x210] sm:$0xff]  }
  0x63   : > { %2661 = vmatpush3.bf16.msra.mxu1 %v2961_v4  ;;  %v2984_v4 = vld [vmem:[%s3071_s10 + $0x50] ss:$8 sps:$4 sm:$0xff]   ;;  %v1796_v51 = vrot.slane %v1795_v40, 4 }
  0x64   : > { %2757 = vmatpush3.bf16.msra.mxu0 %v2962_v6  ;;  %2670 = vmatprep.subr.bf16.mxu1 %v2963_v7  ;;  %v623_v2 = vsel %vm3142_vm2, %v618_v63, %v622_v49  ;;  %v637_v3 = vsel %vm3142_vm2, %v632_v0, %v636_v55  ;;  %v2990_v49 = vld [vmem:[%s3071_s10 + $0x70] ss:$8 sps:$4 sm:$0xff]  }
  0x65   : > { %2766 = vmatprep.subr.bf16.mxu0 %v2965_v10  ;;  %v2246_v6 = vcombine.low %v623_v2, %v637_v3  ;;  %v2994_v3 = vld [vmem:[%s3397_s1 + $0x218] sm:$0xff]  }
  0x66   : > { %2663 = vmatmul.mubr.bf16.vlgmr.msra.gmra.mrb[0].mxu1 %v2244_v13  ;;  %v2982_v13 = vld [vmem:[%s3397_s1 + $0x1f8] sm:$0xff]  }
  0x67   : > { %2671 = vmatpush3.bf16.msra.mxu1 %v2963_v7  ;;  %2759 = vmatmul.mubr.bf16.vlgmr.msra.gmra.mrb[0].mxu0 %v2966_v11  ;;  %v2983_v7 = vld [vmem:[%s3071_s10 + $0x90] ss:$8 sps:$4 sm:$0xff]  }
  0x68   : > { %2767 = vmatpush3.bf16.msra.mxu0 %v2965_v10  ;;  %2672 = vmatprep.subr.bf16.mxu1 %v2967_v14  ;;  %v2978_v10 = vld [vmem:[%s3397_s1 + $0xf0] sm:$0xff]  }
  0x69   : > { %2768 = vmatprep.subr.bf16.mxu0 %v2968_v18  ;;  %2762 = vmatprep.mubr.bf16.mxu0 %v2977_v25  ;;  %v2980_v11 = vld [vmem:[%s3397_s1 + $0x1f0] sm:$0xff]   ;;  %v2451_v25 = vld [vmem:[%s3071_s10 + $0x28] sm:$0xf] }
  0x6a   : > { %2666 = vmatprep.mubr.bf16.mxu1 %v2245_v62  ;;  %v1831_v36 = vshrl.u32 %v2451_v25, 16  ;;  %v1834_v37 = vshll.u32 %v2451_v25, 16 }
  0x6b   : > { %2673 = vmatpush3.bf16.msra.mxu1 %v2967_v14  ;;  %v2987_v14 = vld [vmem:[%s3397_s1 + $0x200] sm:$0xff]  }
  0x6c   : > { %2769 = vmatpush3.bf16.msra.mxu0 %v2968_v18  ;;  %2674 = vmatprep.subr.bf16.mxu1 %v2969_v35  ;;  %v2446_v18 = vld [vmem:[%s3071_s10 + $0x14] sm:$0x1]  ;;  %v1833_v47 = vrot.slane %v1831_v36, 4  ;;  %v1836_v48 = vrot.slane %v1834_v37, 5 }
  0x6d   : > { %2770 = vmatprep.subr.bf16.mxu0 %v2970_v41  ;;  %v1798_v24 = vshll.u32 %v2446_v18, 16  ;;  %v2997_v37 = vld [vmem:[%s3397_s1 + $0x230] sm:$0xff]  }
  0x6e   : > { %2667 = vmatmul.mubr.bf16.gmra.mrb[4].mxu1 %v2246_v6  ;;  %v1837_v55 = vor.u32 %v1836_v48, %v1833_v47  ;;  %v2457_v6 = vld [vmem:[%s3071_s10 + $0x40] sm:$0xf] }
  0x6f   : > { %2675 = vmatpush3.bf16.msra.mxu1 %v2969_v35  ;;  %2763 = vmatmul.mubr.bf16.gmra.mrb[4].mxu0 %v2979_v58  ;;  %v1781_v35 = vor.u32 %v1780_v27, %v1777_v26  ;;  %v1800_v46 = vrot.slane %v1798_v24, 5 }
  0x70   : > { %2771 = vmatpush3.bf16.msra.mxu0 %v2970_v41  ;;  %2676 = vmatprep.subr.bf16.mxu1 %v2971_v50  ;;  %v1845_v41 = vshrl.u32 %v2453_v29, 16  ;;  %v1838_v60 = vrot.slane %v1837_v55, 4 }
  0x71   : > { %2772 = vmatprep.subr.bf16.mxu0 %v2972_v61  ;;  %2782 = vmatprep.mubr.bf16.mxu0 %v2984_v4  ;;  %v1801_v63 = vsel %vm3142_vm2, %v1796_v51, %v1800_v46  ;;  %v2998_v46 = vld [vmem:[%s3397_s1 + $0x238] sm:$0xff]  }
  0x72   : > { %2686 = vmatprep.mubr.bf16.mxu1 %v2983_v7  ;;  %v1847_v52 = vrot.slane %v1845_v41, 4  ;;  %v1843_v2 = vsel %vm3142_vm2, %v1838_v60, %v1842_v56  ;;  %v1826_v41 = vshll.u32 %v2450_v32, 16 }
  0x73   : > { %2677 = vmatpush3.bf16.msra.mxu1 %v2971_v50  ;;  %v1782_v50 = vrot.slane %v1781_v35, 4 }
  0x74   : > { %2773 = vmatpush3.bf16.msra.mxu0 %v2972_v61  ;;  %2678 = vmatprep.subr.bf16.mxu1 %v2973_v1  ;;  %v1851_v58 = vor.u32 %v1850_v54, %v1847_v52  ;;  %v2991_v61 = vld [vmem:[%s3071_s10 + $0xc0] ss:$8 sps:$4 sm:$0xff]  }
  0x75   : > { %2774 = vmatprep.subr.bf16.mxu0 %v2974_v5  ;;  %v1787_v62 = vsel %vm3142_vm2, %v1782_v50, %v1786_v45  ;;  %v1828_v50 = vrot.slane %v1826_v41, 5 }
  0x76   : > { %v1852_v0 = vrot.slane %v1851_v58, 4  ;;  %v2475_v7 = vcombine.low %v1787_v62, %v1801_v63 }
  0x77   : > { %2679 = vmatpush3.bf16.msra.mxu1 %v2973_v1  ;;  %v2992_v1 = vld [vmem:[%s3071_s10 + $0x80] ss:$8 sps:$4 sm:$0xff]  }
  0x78   : > { %2775 = vmatpush3.bf16.msra.mxu0 %v2974_v5  ;;  %2680 = vmatprep.subr.bf16.mxu1 %v2975_v8  ;;  %v1857_v4 = vsel %vm3142_vm2, %v1852_v0, %v1856_v59  ;;  %v2455_v5 = vld [vmem:[%s3071_s10 + $0x38] sm:$0xf] }
  0x79   : > { %2776 = vmatprep.subr.bf16.mxu0 %v2976_v9 }
  0x7b   : > { %2681 = vmatpush3.bf16.msra.mxu1 %v2975_v8  ;;  %v2447_v8 = vld [vmem:[%s3071_s10 + $0x18] sm:$0xf] }
  0x7c   : > { %2777 = vmatpush3.bf16.msra.mxu0 %v2976_v9  ;;  %2682 = vmatprep.subr.bf16.mxu1 %v2978_v10  ;;  %v2449_v9 = vld [vmem:[%s3071_s10 + $0x20] sm:$0xf]  ;;  %v1803_v16 = vshrl.u32 %v2447_v8, 16  ;;  %v1806_v17 = vshll.u32 %v2447_v8, 16 }
  0x7d   : > { %2778 = vmatprep.subr.bf16.mxu0 %v2980_v11  ;;  %v1817_v18 = vshrl.u32 %v2449_v9, 16  ;;  %v1820_v19 = vshll.u32 %v2449_v9, 16 }
  0x7e   : > { %v1805_v26 = vrot.slane %v1803_v16, 4  ;;  %v1808_v27 = vrot.slane %v1806_v17, 5 }
  0x7f   : > { %2683 = vmatpush3.bf16.msra.mxu1 %v2978_v10  ;;  %v2477_v10 = vcombine.low %v1843_v2, %v1857_v4  ;;  %v1819_v28 = vrot.slane %v1817_v18, 4  ;;  %v1822_v29 = vrot.slane %v1820_v19, 5 }
  0x80   : > { %2779 = vmatpush3.bf16.msra.mxu0 %v2980_v11  ;;  %2684 = vmatprep.subr.bf16.mxu1 %v2981_v12  ;;  %v1859_v11 = vshrl.u32 %v2455_v5, 16  ;;  %v1809_v38 = vor.u32 %v1808_v27, %v1805_v26 }
  0x81   : > { %2780 = vmatprep.subr.bf16.mxu0 %v2982_v13  ;;  %v1823_v40 = vor.u32 %v1822_v29, %v1819_v28 }
  0x82   : > { %v1861_v22 = vrot.slane %v1859_v11, 4  ;;  %v1810_v47 = vrot.slane %v1809_v38, 4 }
  0x83   : > { %2685 = vmatpush3.bf16.msra.mxu1 %v2981_v12  ;;  %v1862_v12 = vshll.u32 %v2455_v5, 16 }
  0x84   : > { %2781 = vmatpush3.bf16.msra.mxu0 %v2982_v13  ;;  %2814 = vmatprep.subr.bf16.mxu1 %v2987_v14  ;;  %v1873_v13 = vshrl.u32 %v2457_v6, 16 }
  0x85   : > { %2790 = vmatprep.subr.bf16.mxu0 %v2987_v14  ;;  %v1864_v23 = vrot.slane %v1862_v12, 5 }
  0x86   : > { %2687 = vmatmul.mubr.bf16.vlgmr.msra.gmra.mrb[0].mxu1 %v2985_v30  ;;  %v1875_v24 = vrot.slane %v1873_v13, 4  ;;  %v2458_v30 = vld [vmem:[%s3071_s10 + $0x44] sm:$0x1] }
  0x87   : > { %2783 = vmatmul.mubr.bf16.vlgmr.msra.gmra.mrb[0].mxu0 %v2986_v34  ;;  %2822 = vmatpush3.bf16.msra.mxu1 %v2987_v14  ;;  %v1865_v33 = vor.u32 %v1864_v23, %v1861_v22  ;;  %v1868_v34 = vshll.u32 %v2456_v21, 16  ;;  %v1882_v36 = vshll.u32 %v2458_v30, 16 }
  0x88   : > { %2791 = vmatpush3.bf16.msra.mxu0 %v2987_v14  ;;  %2815 = vmatprep.subr.bf16.mxu1 %v2988_v39  ;;  %v1876_v14 = vshll.u32 %v2457_v6, 16 }
  0x89   : > { %2792 = vmatprep.subr.bf16.mxu0 %v2988_v39  ;;  %2690 = vmatprep.mubr.bf16.mxu1 %v2989_v44  ;;  %v1866_v42 = vrot.slane %v1865_v33, 4  ;;  %v1870_v43 = vrot.slane %v1868_v34, 5  ;;  %v1884_v45 = vrot.slane %v1882_v36, 5 }
  0x8a   : > { %2786 = vmatprep.mubr.bf16.mxu0 %v2990_v49  ;;  %v1878_v25 = vrot.slane %v1876_v14, 5  ;;  %v1824_v49 = vrot.slane %v1823_v40, 4 }
  0x8b   : > { %2823 = vmatpush3.bf16.msra.mxu1 %v2988_v39  ;;  %v1871_v51 = vsel %vm3142_vm2, %v1866_v42, %v1870_v43 }
  0x8c   : > { %2793 = vmatpush3.bf16.msra.mxu0 %v2988_v39  ;;  %2816 = vmatprep.subr.bf16.mxu1 %v2993_v57  ;;  %v1879_v35 = vor.u32 %v1878_v25, %v1875_v24  ;;  %v1812_v39 = vshll.u32 %v2448_v31, 16  ;;  %v1829_v55 = vsel %vm3142_vm2, %v1824_v49, %v1828_v50 }
  0x8d   : > { %2794 = vmatprep.subr.bf16.mxu0 %v2993_v57 }
  0x8e   : > { %2691 = vmatmul.mubr.bf16.gmra.mrb[4].mxu1 %v2991_v61  ;;  %v1880_v44 = vrot.slane %v1879_v35, 4  ;;  %v1814_v48 = vrot.slane %v1812_v39, 5 }
  0x8f   : > { %2787 = vmatmul.mubr.bf16.gmra.mrb[4].mxu0 %v2992_v1  ;;  %2824 = vmatpush3.bf16.msra.mxu1 %v2993_v57 }
  0x90   : > { %2795 = vmatpush3.bf16.msra.mxu0 %v2993_v57  ;;  %2817 = vmatprep.subr.bf16.mxu1 %v2994_v3  ;;  %v1885_v52 = vsel %vm3142_vm2, %v1880_v44, %v1884_v45  ;;  %v1815_v54 = vsel %vm3142_vm2, %v1810_v47, %v1814_v48 }
  0x91   : > { %2796 = vmatprep.subr.bf16.mxu0 %v2994_v3  ;;  %2806 = vmatprep.mubr.bf16.mxu0 %v2475_v7  ;;  %v2478_v56 = vcombine.low %v1871_v51, %v1885_v52  ;;  %v2476_v57 = vcombine.low %v1815_v54, %v1829_v55 }
  0x92   : > { %2810 = vmatprep.mubr.bf16.mxu1 %v2477_v10 }
  0x93   : > { %2825 = vmatpush3.bf16.msra.mxu1 %v2994_v3 }
  0x94   : > { %2797 = vmatpush3.bf16.msra.mxu0 %v2994_v3  ;;  %2818 = vmatprep.subr.bf16.mxu1 %v2995_v15 }
  0x95   : > { %2798 = vmatprep.subr.bf16.mxu0 %v2995_v15 }
  0x97   : > { %2826 = vmatpush3.bf16.msra.mxu1 %v2995_v15 }
  0x98   : > { %2799 = vmatpush3.bf16.msra.mxu0 %v2995_v15  ;;  %2819 = vmatprep.subr.bf16.mxu1 %v2996_v20 }
  0x99   : > { %2800 = vmatprep.subr.bf16.mxu0 %v2996_v20 }
  0x9b   : > { %2827 = vmatpush3.bf16.msra.mxu1 %v2996_v20 }
  0x9c   : > { %2801 = vmatpush3.bf16.msra.mxu0 %v2996_v20  ;;  %2820 = vmatprep.subr.bf16.mxu1 %v2997_v37 }
  0x9d   : > { %2802 = vmatprep.subr.bf16.mxu0 %v2997_v37 }
  0x9f   : > { %2828 = vmatpush3.bf16.msra.mxu1 %v2997_v37 }
  0xa0   : > { %2803 = vmatpush3.bf16.msra.mxu0 %v2997_v37  ;;  %2821 = vmatprep.subr.bf16.mxu1 %v2998_v46 }
  0xa1   : > { %2804 = vmatprep.subr.bf16.mxu0 %v2998_v46 }
  0xa3   : > { %2829 = vmatpush3.bf16.msra.mxu1 %v2998_v46 }
  0xa4   : > { %2805 = vmatpush3.bf16.msra.mxu0 %v2998_v46 }
  0xa6   : > { %2811 = vmatmul.mubr.bf16.vlgmr.msra.gmra.mrb[8].mxu1 %v2478_v56 }
  0xa7   : > { %2807 = vmatmul.mubr.bf16.vlgmr.msra.gmra.mrb[0].mxu0 %v2476_v57 }
 0x159   : > { %v2688_v58 = vpop.f32.mrb[0].mxu1 }
 0x15a   : > { %v924_v59 = vpop.f32.mrb[1].mxu1 }
 0x15b   : > { %v2689_v60 = vpop.f32.mrb[2].mxu1 }
 0x15c   : > { %v927_v61 = vpop.f32.mrb[3].mxu1 }
 0x161   : > { %v2692_v62 = vpop.f32.mrb[4].mxu1 }
 0x162   : > { %v2788_v63 = vpop.f32.mrb[4].mxu0  ;;  %v940_v0 = vpop.f32.mrb[5].mxu1 }
 0x163   : > { %v2834_v1 = vadd.f32 %v2788_v63, %v2692_v62  ;;  %v1735_v2 = vpop.f32.mrb[5].mxu0  ;;  %v2693_v3 = vpop.f32.mrb[6].mxu1 }
 0x164   : > { %v2836_v53 = vadd.f32 %v1735_v2, %v940_v0  ;;  %v2789_v4 = vpop.f32.mrb[6].mxu0  ;;  %v943_v5 = vpop.f32.mrb[7].mxu1 }
 0x165   : > { %v2838_v6 = vadd.f32 %v2789_v4, %v2693_v3  ;;  %v1738_v7 = vpop.f32.mrb[7].mxu0 }
 0x166   : > { %v2840_v8 = vadd.f32 %v1738_v7, %v943_v5 }
 0x179   : > { %v2812_v9 = vpop.f32.mrb[8].mxu1 }
 0x17a   : > { %v2808_v10 = vpop.f32.mrb[0].mxu0  ;;  %v2835_v11 = vadd.f32 %v2834_v1, %v2812_v9  ;;  %v2017_v12 = vpop.f32.mrb[9].mxu1 }
 0x17b   : > { %v2830_v13 = vadd.f32 %v2808_v10, %v2688_v58  ;;  %v2001_v14 = vpop.f32.mrb[1].mxu0  ;;  %v2837_v15 = vadd.f32 %v2836_v53, %v2017_v12  ;;  %v2813_v16 = vpop.f32.mrb[10].mxu1 }
 0x17c   : > { %2046 = vst [vmem:[%s177_s19 + $0x30] sm:$0xff] %v2835_v11  ;;  %v2831_v17 = vadd.f32 %v2001_v14, %v924_v59  ;;  %v2809_v18 = vpop.f32.mrb[2].mxu0  ;;  %v2839_v19 = vadd.f32 %v2838_v6, %v2813_v16  ;;  %v2020_v20 = vpop.f32.mrb[11].mxu1  ;;  %v2068_v40 = vmul.f32 %v2835_v11, %v2835_v11 }
 0x17d   : > { %2042 = vst [vmem:[%s177_s19 + $0x10] sm:$0xff] %v2830_v13  ;;  %2044 = vst [vmem:[%s177_s19 + $0x20] sm:$0xff] %v2837_v15  ;;  %v2832_v21 = vadd.f32 %v2809_v18, %v2689_v60  ;;  %v2004_v22 = vpop.f32.mrb[3].mxu0  ;;  %v2841_v23 = vadd.f32 %v2840_v8, %v2020_v20  ;;  %v2064_v28 = vmul.f32 %v2830_v13, %v2830_v13 }
 0x17e   : > { %2040 = vst [vmem:[%s177_s19] sm:$0xff] %v2831_v17  ;;  %2047 = vst [vmem:[%s177_s19 + $0x38] sm:$0xff] %v2839_v19  ;;  %v2833_v24 = vadd.f32 %v2004_v22, %v927_v61  ;;  %v2062_v25 = vmul.f32 %v2831_v17, %v2831_v17  ;;  %v2066_v34 = vmul.f32 %v2837_v15, %v2837_v15 }
 0x17f   : > { %2043 = vst [vmem:[%s177_s19 + $0x18] sm:$0xff] %v2832_v21  ;;  %2045 = vst [vmem:[%s177_s19 + $0x28] sm:$0xff] %v2841_v23  ;;  %v2065_v31 = vmul.f32 %v2832_v21, %v2832_v21  ;;  %v2067_v38 = vmul.f32 %v2841_v23, %v2841_v23  ;;  %v2069_v43 = vmul.f32 %v2839_v19, %v2839_v19 }
 0x180   : > { %2041 = vst [vmem:[%s177_s19 + $0x8] sm:$0xff] %v2833_v24  ;;  %v2048_v26 = vadd.f32 %v2833_v24, %v2831_v17  ;;  %v2063_v27 = vmul.f32 %v2833_v24, %v2833_v24 }
 0x182   : > { %v2049_v29 = vadd.f32 %v2830_v13, %v2048_v26  ;;  %v2070_v30 = vadd.f32 %v2063_v27, %v2062_v25 }
 0x184   : > { %v2071_v32 = vadd.f32 %v2070_v30, %v2064_v28  ;;  %v2050_v33 = vadd.f32 %v2832_v21, %v2049_v29 }
 0x186   : > { %v2051_v35 = vadd.f32 %v2837_v15, %v2050_v33  ;;  %v2072_v36 = vadd.f32 %v2071_v32, %v2065_v31 }
 0x188   : > { %v2052_v37 = vadd.f32 %v2841_v23, %v2051_v35  ;;  %v2073_v39 = vadd.f32 %v2072_v36, %v2066_v34 }
 0x18a   : > { %v2053_v41 = vadd.f32 %v2835_v11, %v2052_v37  ;;  %v2074_v42 = vadd.f32 %v2073_v39, %v2067_v38 }
 0x18c   : > { %v2054_v44 = vadd.f32 %v2839_v19, %v2053_v41  ;;  %v2075_v45 = vadd.f32 %v2074_v42, %v2068_v40 }
 0x18e   : > { %v2055_v46 = vrot.slane %v2054_v44, 4  ;;  %v2076_v47 = vadd.f32 %v2075_v45, %v2069_v43 }
 0x190   : > { %v2056_v48 = vadd.f32 %v2055_v46, %v2054_v44  ;;  %v2077_v49 = vrot.slane %v2076_v47, 4 }
 0x192   : > { %v2057_v50 = vrot.slane %v2056_v48, 2  ;;  %v2078_v51 = vadd.f32 %v2077_v49, %v2076_v47 }
 0x194   : > { %v2058_v52 = vadd.f32 %v2057_v50, %v2056_v48  ;;  %v2079_v54 = vrot.slane %v2078_v51, 2 }
 0x196   : > { %v2059_v55 = vrot.slane %v2058_v52, 1  ;;  %v2080_v56 = vadd.f32 %v2079_v54, %v2078_v51 }
 0x198   : > { %v2060_v57 = vadd.f32 %v2059_v55, %v2058_v52  ;;  %v2081_v58 = vrot.slane %v2080_v56, 1 }
 0x19a   : > { %2061 = vst [vmem:[%s181_s23] sm:$0x1] %v2060_v57  ;;  %v2082_v59 = vadd.f32 %v2081_v58, %v2080_v56 }
 0x19c   : > { %2083 = vst [vmem:[%s181_s23 + $0x1] sm:$0x1] %v2082_v59 }
 0x19d PF: > { %s14_s12 = sadd.s32 1, %s3005_s12  }
 0x19e   : > { %p11_p4 = scmp.ge.s32.totalorder %s14_s12, 4  }
 0x1a0   :  { %13 = sbr.rel (!%p11_p4) target bundleno = 1 (0x1), region = 83 }

// kernel: basic_block_forward.7
= control target key start
LH: loop header
LB: loop body
LE: loop exit
PB: predicated region body
PF: predicated region fallthrough
CT: control target
= control target key end

     0   :  { %s3143_s12 = smov 0   ;;  %s3716_s0 = inlined_call_operand.vmem [shape: bf16[2,10,10,128], index: 0, kind: input, shape index: {}]   ;;  %s3717_s1 = inlined_call_operand.vmem [shape: bf16[9,128,128], index: 1, kind: input, shape index: {}]   ;;  %s3718_s2 = inlined_call_operand.vmem [shape: f32[2,8,8,128], index: 2, kind: output, shape index: {0}]   ;;  %s3719_s3 = inlined_call_operand.vmem [shape: f32[2,2,128], index: 3, kind: output, shape index: {1}]  }
   0x1 LB: > { %s2282_s13 = sadd.s32 4294967295, %s3121_s12   ;;  %p2286_p0 = scmp.ge.s32.totalorder %s3121_s12, 1  ;;  %s3121_s12 = sphi %s3143_s12, %s14_s12  }
   0x2   : > { %p140_p1 = scmp.lt.s32.totalorder %s3121_s12, 3 }
   0x4   : > { %p141_p2 = pnand %p2286_p0, %p140_p1 }
   0x5   : > { %v3031_v0 = vld [vmem:[%s3717_s1 + $0x40] sm:$0xff] (!%p141_p2)   ;;  %p168_p3 = scmp.lt.s32.totalorder (!%p141_p2), %s2282_s13, 1  ;;  %v3033_v2 = vld [vmem:[%s3717_s1 + $0x48] sm:$0xff] (!%p141_p2)   ;;  %v3035_v4 = vld [vmem:[%s3717_s1 + $0x50] sm:$0xff] (!%p141_p2)   ;;  %vm215_vm0 = vsmask.f32 (!%p141_p2), 3328 }
   0x6   : > { %144 = sbr.rel (%p141_p2) target bundleno = 418 (0x1a2), region = 28  ;;  %v3032_v1 = vld [vmem:[%s3717_s1 + $0x100] sm:$0xff] (!%p141_p2)   ;;  %2726 = vmatprep.subr.bf16.mxu1 (!%p141_p2), %v3031_v0  ;;  %v3034_v3 = vld [vmem:[%s3717_s1 + $0x108] sm:$0xff] (!%p141_p2)   ;;  %v3036_v5 = vld [vmem:[%s3717_s1 + $0x110] sm:$0xff] (!%p141_p2)   ;;  %vm216_vm1 = vsmask.f32 (!%p141_p2), 7440 }
   0x7   : > { %2822 = vmatprep.subr.bf16.mxu0 (!%p141_p2), %v3032_v1  ;;  %2727 = vmatpush3.bf16.msra.mxu1 (!%p141_p2), %v3031_v0  ;;  %v3037_v6 = vld [vmem:[%s3717_s1 + $0x58] sm:$0xff] (!%p141_p2)   ;;  %v3039_v8 = vld [vmem:[%s3717_s1 + $0x60] sm:$0xff] (!%p141_p2)   ;;  %v3041_v10 = vld [vmem:[%s3717_s1 + $0x68] sm:$0xff] (!%p141_p2)   ;;  %vm637_vm3 = vcmask (!%p141_p2), 1042432   ;;  %vm638_vm4 = vcmask (!%p141_p2), 1046532  }
   0x8   : > { %2823 = vmatpush3.bf16.msra.mxu0 (!%p141_p2), %v3032_v1  ;;  %2728 = vmatprep.subr.bf16.mxu1 (!%p141_p2), %v3033_v2  ;;  %v3038_v7 = vld [vmem:[%s3717_s1 + $0x118] sm:$0xff] (!%p141_p2)   ;;  %v3040_v9 = vld [vmem:[%s3717_s1 + $0x120] sm:$0xff] (!%p141_p2)   ;;  %v3042_v14 = vld [vmem:[%s3717_s1 + $0x128] sm:$0xff] (!%p141_p2)  }
   0x9   : > { %2824 = vmatprep.subr.bf16.mxu0 (!%p141_p2), %v3034_v3  ;;  %v3043_v22 = vld [vmem:[%s3717_s1 + $0x70] sm:$0xff] (!%p141_p2)   ;;  %v3045_v37 = vld [vmem:[%s3717_s1 + $0x78] sm:$0xff] (!%p141_p2)   ;;  %vm3232_vm2 = vmor (!%p141_p2), %vm215_vm0, %vm216_vm1 }
   0xa   : > { %v3044_v23 = vld [vmem:[%s3717_s1 + $0x130] sm:$0xff] (!%p141_p2)   ;;  %v3046_v47 = vld [vmem:[%s3717_s1 + $0x138] sm:$0xff] (!%p141_p2)   ;;  %v3047_v63 = vld [vmem:[%s3717_s1] sm:$0xff] (!%p141_p2)  }
   0xb   : > { %2729 = vmatpush3.bf16.msra.mxu1 (!%p141_p2), %v3033_v2  ;;  %v3264_v1 = vld [vmem:[%s3717_s1 + $0x140] sm:$0xff] (!%p141_p2)   ;;  %vm3406_vm5 = vmor (!%p141_p2), %vm637_vm3, %vm638_vm4 }
   0xc   : > { %2825 = vmatpush3.bf16.msra.mxu0 (!%p141_p2), %v3034_v3  ;;  %2730 = vmatprep.subr.bf16.mxu1 (!%p141_p2), %v3035_v4  ;;  %v3111_v38 = vld [vmem:[%s3717_s1 + $0x220] sm:$0xff] (!%p141_p2)  }
   0xd   : > { %s3725_s13 = smov (!%p168_p3, %s2282_s13), 1  ;;  %2826 = vmatprep.subr.bf16.mxu0 %v3036_v5 }
   0xe   : > { %s3022_s30 = smul.u32 80, %s3725_s13  ;;  %s2290_s20 = sshll.u32 %s3725_s13, 1 }
   0xf   : > { %2731 = vmatpush3.bf16.msra.mxu1 %v3035_v4  ;;  %s181_s23 = scalar_lea.vmem %s3719_s3, %s2290_s20 }
  0x10   : > { %2827 = vmatpush3.bf16.msra.mxu0 %v3036_v5  ;;  %2732 = vmatprep.subr.bf16.mxu1 %v3037_v6  ;;  %s3187_s10 = scalar_lea.vmem %s3716_s0, %s3022_s30 }
  0x11   : > { %2828 = vmatprep.subr.bf16.mxu0 %v3038_v7  ;;  %v3193_v11 = vld [vmem:[%s3187_s10] sm:$0xf]  ;;  %v3196_v12 = vld [vmem:[%s3187_s10 + $0x8] sm:$0xf]  ;;  %v3199_v13 = vld [vmem:[%s3187_s10 + $0x4] sm:$0x1] }
  0x12   : > { %v3205_v15 = vld [vmem:[%s3187_s10 + $0xc] sm:$0x1]  ;;  %v219_v16 = vshrl.u32 %v3193_v11, 16  ;;  %v222_v17 = vshll.u32 %v3193_v11, 16  ;;  %v228_v18 = vshll.u32 %v3199_v13, 16  ;;  %v233_v19 = vshrl.u32 %v3196_v12, 16 }
  0x13   : > { %2733 = vmatpush3.bf16.msra.mxu1 %v3037_v6  ;;  %v236_v20 = vshll.u32 %v3196_v12, 16  ;;  %v242_v21 = vshll.u32 %v3205_v15, 16  ;;  %v2403_v30 = vld [vmem:[%s3187_s10 + $0x8] sm:$0xf]  ;;  %v3221_v31 = vld [vmem:[%s3187_s10 + $0xc] sm:$0x1] }
  0x14   : > { %2829 = vmatpush3.bf16.msra.mxu0 %v3038_v7  ;;  %2734 = vmatprep.subr.bf16.mxu1 %v3039_v8  ;;  %v221_v24 = vrot.slane %v219_v16, 4  ;;  %v224_v25 = vrot.slane %v222_v17, 5  ;;  %v230_v26 = vrot.slane %v228_v18, 5  ;;  %v235_v27 = vrot.slane %v233_v19, 4  ;;  %v2405_v33 = vld [vmem:[%s3187_s10 + $0x10] sm:$0xf] }
  0x15   : > { %2830 = vmatprep.subr.bf16.mxu0 %v3040_v9  ;;  %v238_v28 = vrot.slane %v236_v20, 5  ;;  %v244_v29 = vrot.slane %v242_v21, 5  ;;  %v3225_v34 = vld [vmem:[%s3187_s10 + $0x14] sm:$0x1]  ;;  %v1014_v35 = vshrl.u32 %v2403_v30, 16  ;;  %v1017_v36 = vshll.u32 %v2403_v30, 16 }
  0x16   : > { %v225_v32 = vor.u32 %v224_v25, %v221_v24  ;;  %v1023_v40 = vshll.u32 %v3221_v31, 16  ;;  %v1028_v41 = vshrl.u32 %v2405_v33, 16  ;;  %v1031_v42 = vshll.u32 %v2405_v33, 16  ;;  %v3242_v51 = vld [vmem:[%s3187_s10 + $0x10] sm:$0xf] }
  0x17   : > { %2735 = vmatpush3.bf16.msra.mxu1 %v3039_v8  ;;  %v239_v39 = vor.u32 %v238_v28, %v235_v27  ;;  %v1016_v44 = vrot.slane %v1014_v35, 4  ;;  %v1019_v45 = vrot.slane %v1017_v36, 5  ;;  %v1037_v46 = vshll.u32 %v3225_v34, 16  ;;  %v3247_v55 = vld [vmem:[%s3187_s10 + $0x18] sm:$0xf] }
  0x18   : > { %2831 = vmatpush3.bf16.msra.mxu0 %v3040_v9  ;;  %2736 = vmatprep.subr.bf16.mxu1 %v3041_v10  ;;  %v226_v43 = vrot.slane %v225_v32, 4  ;;  %v1030_v49 = vrot.slane %v1028_v41, 4  ;;  %v1033_v50 = vrot.slane %v1031_v42, 5  ;;  %v1025_v54 = vrot.slane %v1023_v40, 5  ;;  %v3250_v56 = vld [vmem:[%s3187_s10 + $0x14] sm:$0x1] }
  0x19   : > { %2832 = vmatprep.subr.bf16.mxu0 %v3042_v14  ;;  %v240_v48 = vrot.slane %v239_v39, 4  ;;  %v1020_v53 = vor.u32 %v1019_v45, %v1016_v44  ;;  %v1039_v59 = vrot.slane %v1037_v46, 5  ;;  %v3255_v60 = vld [vmem:[%s3187_s10 + $0x1c] sm:$0x1]  ;;  %v247_v61 = vshrl.u32 %v3242_v51, 16 }
  0x1a   : > { %v231_v52 = vsel %vm3232_vm2, %v226_v43, %v230_v26  ;;  %v1034_v58 = vor.u32 %v1033_v50, %v1030_v49  ;;  %v250_v2 = vshll.u32 %v3242_v51, 16  ;;  %v256_v3 = vshll.u32 %v3250_v56, 16  ;;  %v2407_v8 = vld [vmem:[%s3187_s10 + $0x18] sm:$0xf]  ;;  %v3275_v16 = vld [vmem:[%s3187_s10 + $0x1c] sm:$0x1] }
  0x1b   : > { %2737 = vmatpush3.bf16.msra.mxu1 %v3041_v10  ;;  %v245_v57 = vsel %vm3232_vm2, %v240_v48, %v244_v29  ;;  %v1021_v0 = vrot.slane %v1020_v53, 4  ;;  %v249_v5 = vrot.slane %v247_v61, 4  ;;  %v261_v6 = vshrl.u32 %v3247_v55, 16  ;;  %v2409_v17 = vld [vmem:[%s3187_s10 + $0x20] sm:$0xf]  ;;  %v3049_v43 = vld [vmem:[%s3717_s1 + $0x8] sm:$0xff]  }
  0x1c   : > { %2833 = vmatpush3.bf16.msra.mxu0 %v3042_v14  ;;  %2738 = vmatprep.subr.bf16.mxu1 %v3043_v22  ;;  %v2307_v62 = vcombine.low %v231_v52, %v245_v57  ;;  %v1035_v4 = vrot.slane %v1034_v58, 4  ;;  %v264_v7 = vshll.u32 %v3247_v55, 16  ;;  %v252_v10 = vrot.slane %v250_v2, 5  ;;  %v3281_v21 = vld [vmem:[%s3187_s10 + $0x24] sm:$0x1] }
  0x1d   : > { %2834 = vmatprep.subr.bf16.mxu0 %v3044_v23  ;;  %v1026_v9 = vsel %vm3232_vm2, %v1021_v0, %v1025_v54  ;;  %v270_v14 = vshll.u32 %v3255_v60, 16  ;;  %v263_v19 = vrot.slane %v261_v6, 4  ;;  %v258_v24 = vrot.slane %v256_v3, 5  ;;  %v3050_v54 = vld [vmem:[%s3717_s1 + $0x148] sm:$0xff]   ;;  %v3311_v0 = vld [vmem:[%s3187_s10 + $0x24] sm:$0x1] }
  0x1e   : > { %2742 = vmatprep.mubr.bf16.mxu1 %v2307_v62  ;;  %v1040_v18 = vsel %vm3232_vm2, %v1035_v4, %v1039_v59  ;;  %v266_v20 = vrot.slane %v264_v7, 5  ;;  %v1042_v27 = vshrl.u32 %v2407_v8, 16  ;;  %v1045_v28 = vshll.u32 %v2407_v8, 16  ;;  %v3051_v59 = vld [vmem:[%s3717_s1 + $0x10] sm:$0xff]   ;;  %v3305_v62 = vld [vmem:[%s3187_s10 + $0x20] sm:$0xf] }
  0x1f   : > { %2739 = vmatpush3.bf16.msra.mxu1 %v3043_v22  ;;  %v2435_v22 = vcombine.low %v1026_v9, %v1040_v18  ;;  %v272_v25 = vrot.slane %v270_v14, 5  ;;  %v1051_v29 = vshll.u32 %v3275_v16, 16  ;;  %v1056_v32 = vshrl.u32 %v2409_v17, 16  ;;  %v3314_v2 = vld [vmem:[%s3187_s10 + $0x2c] sm:$0x1]  ;;  %v3052_v9 = vld [vmem:[%s3717_s1 + $0x150] sm:$0xff]  }
  0x20   : > { %2835 = vmatpush3.bf16.msra.mxu0 %v3044_v23  ;;  %2740 = vmatprep.subr.bf16.mxu1 %v3045_v37  ;;  %v253_v23 = vor.u32 %v252_v10, %v249_v5  ;;  %v267_v26 = vor.u32 %v266_v20, %v263_v19  ;;  %v1059_v33 = vshll.u32 %v2409_v17, 16  ;;  %v1065_v35 = vshll.u32 %v3281_v21, 16  ;;  %v3053_v10 = vld [vmem:[%s3717_s1 + $0x18] sm:$0xff]  }
  0x21   : > { %2836 = vmatprep.subr.bf16.mxu0 %v3046_v47  ;;  %2838 = vmatprep.mubr.bf16.mxu0 %v2435_v22  ;;  %v1047_v39 = vrot.slane %v1045_v28, 5  ;;  %v1058_v41 = vrot.slane %v1056_v32, 4  ;;  %v1053_v46 = vrot.slane %v1051_v29, 5  ;;  %v1305_v57 = vrot.slane %v3221_v31, 5  ;;  %v3054_v29 = vld [vmem:[%s3717_s1 + $0x158] sm:$0xff]  }
  0x22   : > { %v254_v30 = vrot.slane %v253_v23, 4  ;;  %v268_v36 = vrot.slane %v267_v26, 4  ;;  %v1061_v42 = vrot.slane %v1059_v33, 5  ;;  %v275_v3 = vshrl.u32 %v3305_v62, 16  ;;  %v2411_v23 = vld [vmem:[%s3187_s10 + $0x28] sm:$0xf] }
  0x23   : > { %2741 = vmatpush3.bf16.msra.mxu1 %v3045_v37  ;;  %v1044_v37 = vrot.slane %v1042_v27, 4  ;;  %v278_v4 = vshll.u32 %v3305_v62, 16  ;;  %v284_v5 = vshll.u32 %v3311_v0, 16  ;;  %v298_v8 = vshll.u32 %v3314_v2, 16  ;;  %v3335_v26 = vld [vmem:[%s3187_s10 + $0x34] sm:$0x1] }
  0x24   : > { %2837 = vmatpush3.bf16.msra.mxu0 %v3046_v47  ;;  %2750 = vmatprep.subr.bf16.mxu1 %v3047_v63  ;;  %v259_v40 = vsel %vm3232_vm2, %v254_v30, %v258_v24  ;;  %v273_v44 = vsel %vm3232_vm2, %v268_v36, %v272_v25  ;;  %v1067_v47 = vrot.slane %v1065_v35, 5  ;;  %v1062_v49 = vor.u32 %v1061_v42, %v1058_v41  ;;  %v3331_v24 = vld [vmem:[%s3187_s10 + $0x2c] sm:$0x1]  ;;  %v2413_v25 = vld [vmem:[%s3187_s10 + $0x30] sm:$0xf]  ;;  %v3055_v30 = vld [vmem:[%s3717_s1 + $0x20] sm:$0xff]  }
  0x25   : > { %2846 = vmatprep.subr.bf16.mxu0 %v3264_v1  ;;  %v1048_v45 = vor.u32 %v1047_v39, %v1044_v37  ;;  %v2308_v48 = vcombine.low %v259_v40, %v273_v44  ;;  %v277_v14 = vrot.slane %v275_v3, 4  ;;  %v280_v17 = vrot.slane %v278_v4, 5 }
  0x26   : > { %v1063_v52 = vrot.slane %v1062_v49, 4  ;;  %v286_v18 = vrot.slane %v284_v5, 5  ;;  %v300_v22 = vrot.slane %v298_v8, 5  ;;  %v1070_v27 = vshrl.u32 %v2411_v23, 16  ;;  %v2415_v5 = vld [vmem:[%s3187_s10 + $0x38] sm:$0xf] }
  0x27   : > { %v1049_v50 = vrot.slane %v1048_v45, 4  ;;  %2743 = vmatmul.mubr.bf16.vlgmr.msra.gmra.mrb[0].mxu1 %v2308_v48  ;;  %v1073_v28 = vshll.u32 %v2411_v23, 16  ;;  %v1079_v33 = vshll.u32 %v3331_v24, 16  ;;  %v1084_v35 = vshrl.u32 %v2413_v25, 16 }
  0x28   : > { %2751 = vmatpush3.bf16.msra.mxu1 %v3047_v63  ;;  %v1068_v58 = vsel %vm3232_vm2, %v1063_v52, %v1067_v47  ;;  %v3308_v63 = vld [vmem:[%s3187_s10 + $0x28] sm:$0xf]  ;;  %v1087_v36 = vshll.u32 %v2413_v25, 16  ;;  %v1072_v39 = vrot.slane %v1070_v27, 4  ;;  %v1093_v41 = vshll.u32 %v3335_v26, 16 }
  0x29   : > { %v1054_v53 = vsel %vm3232_vm2, %v1049_v50, %v1053_v46  ;;  %2752 = vmatprep.subr.bf16.mxu1 %v3049_v43  ;;  %v289_v6 = vshrl.u32 %v3308_v63, 16  ;;  %v292_v7 = vshll.u32 %v3308_v63, 16  ;;  %v1075_v40 = vrot.slane %v1073_v28, 5  ;;  %v3346_v46 = vld [vmem:[%s3187_s10 + $0x30] sm:$0xf] }
  0x2a   : > { %v2436_v61 = vcombine.low %v1054_v53, %v1068_v58  ;;  %v1086_v44 = vrot.slane %v1084_v35, 4  ;;  %v1089_v45 = vrot.slane %v1087_v36, 5  ;;  %v1095_v49 = vrot.slane %v1093_v41, 5  ;;  %v3351_v50 = vld [vmem:[%s3187_s10 + $0x38] sm:$0xf] }
  0x2b   : > { %v291_v19 = vrot.slane %v289_v6, 4  ;;  %v294_v20 = vrot.slane %v292_v7, 5  ;;  %v1076_v48 = vor.u32 %v1075_v40, %v1072_v39  ;;  %v3354_v52 = vld [vmem:[%s3187_s10 + $0x34] sm:$0x1]  ;;  %v303_v53 = vshrl.u32 %v3346_v46, 16  ;;  %v3057_v6 = vld [vmem:[%s3717_s1 + $0x28] sm:$0xff]  }
  0x2c   : > { %2839 = vmatmul.mubr.bf16.vlgmr.msra.gmra.mrb[0].mxu0 %v2436_v61  ;;  %2753 = vmatpush3.bf16.msra.mxu1 %v3049_v43  ;;  %v1081_v43 = vrot.slane %v1079_v33, 5  ;;  %v3363_v61 = vld [vmem:[%s3187_s10 + $0x3c] sm:$0x1]  ;;  %v306_v3 = vshll.u32 %v3346_v46, 16  ;;  %v312_v4 = vshll.u32 %v3354_v52, 16  ;;  %v1098_v28 = vshrl.u32 %v2415_v5, 16 }
  0x2d   : > { %2847 = vmatpush3.bf16.msra.mxu0 %v3264_v1  ;;  %2754 = vmatprep.subr.bf16.mxu1 %v3051_v59  ;;  %v281_v1 = vor.u32 %v280_v17, %v277_v14  ;;  %v295_v32 = vor.u32 %v294_v20, %v291_v19  ;;  %v1077_v8 = vrot.slane %v1076_v48, 4  ;;  %v317_v14 = vshrl.u32 %v3351_v50, 16  ;;  %v3373_v17 = vld [vmem:[%s3187_s10 + $0x3c] sm:$0x1]  ;;  %v3381_v27 = vld [vmem:[%s3187_s10 + $0x44] sm:$0x1] }
  0x2e   : > { %2848 = vmatprep.subr.bf16.mxu0 %v3050_v54  ;;  %v308_v19 = vrot.slane %v306_v3, 5  ;;  %v314_v20 = vrot.slane %v312_v4, 5  ;;  %v326_v25 = vshll.u32 %v3363_v61, 16  ;;  %v1101_v36 = vshll.u32 %v2415_v5, 16 }
  0x2f   : > { %v282_v37 = vrot.slane %v281_v1, 4  ;;  %v296_v42 = vrot.slane %v295_v32, 4  ;;  %v1082_v23 = vsel %vm3232_vm2, %v1077_v8, %v1081_v43  ;;  %v319_v1 = vrot.slane %v317_v14, 4 }
  0x30   : > { %2755 = vmatpush3.bf16.msra.mxu1 %v3051_v59  ;;  %v1090_v59 = vor.u32 %v1089_v45, %v1086_v44  ;;  %v328_v40 = vrot.slane %v326_v25, 5  ;;  %v1100_v41 = vrot.slane %v1098_v28, 4  ;;  %v1103_v45 = vrot.slane %v1101_v36, 5  ;;  %v2449_v25 = vld [vmem:[%s3187_s10 + $0x18] sm:$0xe] }
  0x31   : > { %2849 = vmatpush3.bf16.msra.mxu0 %v3050_v54  ;;  %2756 = vmatprep.subr.bf16.mxu1 %v3053_v10  ;;  %v287_v47 = vsel %vm3232_vm2, %v282_v37, %v286_v18  ;;  %v3056_v54 = vld [vmem:[%s3717_s1 + $0x160] sm:$0xff]   ;;  %v301_v58 = vsel %vm3232_vm2, %v296_v42, %v300_v22  ;;  %v320_v22 = vshll.u32 %v3351_v50, 16  ;;  %v3059_v37 = vld [vmem:[%s3717_s1 + $0x30] sm:$0xff]   ;;  %v1107_v42 = vshll.u32 %v3373_v17, 16  ;;  %v3062_v28 = vld [vmem:[%s3717_s1 + $0x178] sm:$0xff]  }
  0x32   : > { %2850 = vmatprep.subr.bf16.mxu0 %v3052_v9  ;;  %v2309_v7 = vcombine.low %v287_v47, %v301_v58  ;;  %v1091_v18 = vrot.slane %v1090_v59, 4  ;;  %v1309_v47 = vrot.slane %v3225_v34, 5  ;;  %v1313_v48 = vrot.slane %v3275_v16, 5  ;;  %v3060_v58 = vld [vmem:[%s3717_s1 + $0x170] sm:$0xff]  }
  0x33   : > { %v322_v35 = vrot.slane %v320_v22, 5  ;;  %v1104_v4 = vor.u32 %v1103_v45, %v1100_v41  ;;  %v1109_v34 = vrot.slane %v1107_v42, 5  ;;  %v1317_v22 = vrot.slane %v3281_v21, 5  ;;  %v3065_v41 = vld [vmem:[%s3717_s1 + $0x180] sm:$0xff]  }
  0x34   : > { %2757 = vmatpush3.bf16.msra.mxu1 %v3053_v10  ;;  %v305_v10 = vrot.slane %v303_v53, 4  ;;  %2746 = vmatprep.mubr.bf16.mxu1 %v2309_v7  ;;  %v1096_v32 = vsel %vm3232_vm2, %v1091_v18, %v1095_v49  ;;  %v1121_v53 = vshll.u32 %v3381_v27, 16  ;;  %v2447_v7 = vld [vmem:[%s3187_s10 + $0x8] sm:$0xe]  ;;  %v2457_v36 = vrot.slane %v2449_v25, 9 }
  0x35   : > { %2851 = vmatpush3.bf16.msra.mxu0 %v3052_v9  ;;  %2758 = vmatprep.subr.bf16.mxu1 %v3055_v30  ;;  %v2417_v9 = vld [vmem:[%s3187_s10 + $0x40] sm:$0xf]  ;;  %v2437_v39 = vcombine.low %v1082_v23, %v1096_v32  ;;  %v323_v44 = vor.u32 %v322_v35, %v319_v1  ;;  %v2455_v14 = vrot.slane %v2447_v7, 9  ;;  %v1105_v18 = vrot.slane %v1104_v4, 4 }
  0x36   : > { %2852 = vmatprep.subr.bf16.mxu0 %v3054_v29  ;;  %v309_v33 = vor.u32 %v308_v19, %v305_v10  ;;  %v1115_v49 = vshll.u32 %v2417_v9, 16  ;;  %v2448_v10 = vld [vmem:[%s3187_s10 + $0x10] sm:$0xe]  ;;  %v2319_v19 = vcombine.low %v3193_v11, %v3196_v12  ;;  %v1123_v1 = vrot.slane %v1121_v53, 5  ;;  %v2450_v12 = vld [vmem:[%s3187_s10 + $0x20] sm:$0xe] }
  0x37   : > { %2842 = vmatprep.mubr.bf16.mxu0 %v2437_v39  ;;  %v324_v3 = vrot.slane %v323_v44, 4  ;;  %v1306_v32 = vsel %vm3406_vm5, %v2455_v14, %v1305_v57  ;;  %v1110_v21 = vsel %vm3232_vm2, %v1105_v18, %v1109_v34  ;;  %v3064_v35 = vld [vmem:[%s3717_s1 + $0x80] sm:$0xff]   ;;  %v1314_v42 = vsel %vm3406_vm5, %v2457_v36, %v1313_v48  ;;  %v3069_v44 = vld [vmem:[%s3717_s1 + $0x90] sm:$0xff]  }
  0x38   : > { %2759 = vmatpush3.bf16.msra.mxu1 %v3055_v30  ;;  %v3058_v30 = vld [vmem:[%s3717_s1 + $0x168] sm:$0xff]   ;;  %v310_v43 = vrot.slane %v309_v33, 4  ;;  %v1117_v16 = vrot.slane %v1115_v49, 5  ;;  %v1321_v45 = vrot.slane %v3331_v24, 5  ;;  %v1329_v53 = vrot.slane %v3373_v17, 5  ;;  %v3073_v18 = vld [vmem:[%s3717_s1 + $0xa0] sm:$0xff]  }
  0x39   : > { %2853 = vmatpush3.bf16.msra.mxu0 %v3054_v29  ;;  %2760 = vmatprep.subr.bf16.mxu1 %v3057_v6  ;;  %v1112_v29 = vshrl.u32 %v2417_v9, 16  ;;  %v1333_v24 = vrot.slane %v3381_v27, 5  ;;  %v646_v34 = vrot.slane %v3205_v15, 5  ;;  %v650_v17 = vrot.slane %v3250_v56, 5  ;;  %v614_v15 = vld [vmem:[%s3187_s10 + $0x8] sm:$0xe] }
  0x3a   : > { %2854 = vmatprep.subr.bf16.mxu0 %v3056_v54  ;;  %v315_v59 = vsel %vm3232_vm2, %v310_v43, %v314_v20  ;;  %v2456_v20 = vrot.slane %v2448_v10, 9  ;;  %v3067_v43 = vld [vmem:[%s3717_s1 + $0x88] sm:$0xff]   ;;  %v3070_v10 = vld [vmem:[%s3717_s1 + $0x190] sm:$0xff]   ;;  %v2332_v14 = vrot.slane %v614_v15, 9  ;;  %v658_v36 = vrot.slane %v3311_v0, 5  ;;  %v3083_v0 = vld [vmem:[%s3717_s1 + $0xc0] sm:$0xff]  }
  0x3b   : > { %v1114_v5 = vrot.slane %v1112_v29, 4  ;;  %v1325_v29 = vrot.slane %v3335_v26, 5  ;;  %v2322_v26 = vcombine.low %v3346_v46, %v3351_v50  ;;  %v3071_v46 = vld [vmem:[%s3717_s1 + $0x98] sm:$0xff]   ;;  %v3088_v15 = vld [vmem:[%s3717_s1 + $0x1c8] sm:$0xff]  }
  0x3c   : > { %2761 = vmatpush3.bf16.msra.mxu1 %v3057_v6  ;;  %v3061_v6 = vld [vmem:[%s3717_s1 + $0x38] sm:$0xff]   ;;  %v1310_v11 = vsel %vm3406_vm5, %v2456_v20, %v1309_v47 }
  0x3d   : > { %2855 = vmatpush3.bf16.msra.mxu0 %v3056_v54  ;;  %2762 = vmatprep.subr.bf16.mxu1 %v3059_v37  ;;  %v329_v54 = vsel %vm3232_vm2, %v324_v3, %v328_v40  ;;  %v1118_v23 = vor.u32 %v1117_v16, %v1114_v5  ;;  %v2479_v57 = vcombine.low %v1306_v32, %v1310_v11  ;;  %v613_v16 = vld [vmem:[%s3187_s10] sm:$0xe]  ;;  %v3072_v20 = vld [vmem:[%s3717_s1 + $0x198] sm:$0xff]  }
  0x3e   : > { %2856 = vmatprep.subr.bf16.mxu0 %v3058_v30  ;;  %v2310_v9 = vcombine.low %v315_v59, %v329_v54  ;;  %v2320_v40 = vcombine.low %v3242_v51, %v3247_v55  ;;  %v2321_v51 = vcombine.low %v3305_v62, %v3308_v63  ;;  %v642_v55 = vrot.slane %v3199_v13, 5  ;;  %v3068_v62 = vld [vmem:[%s3717_s1 + $0x188] sm:$0xff]   ;;  %v2452_v63 = vld [vmem:[%s3187_s10 + $0x30] sm:$0xe]  ;;  %v2454_v59 = vld [vmem:[%s3187_s10 + $0x40] sm:$0xe] }
  0x3f   : > { %v1119_v33 = vrot.slane %v1118_v23, 4  ;;  %v2451_v13 = vld [vmem:[%s3187_s10 + $0x28] sm:$0xe]  ;;  %v2460_v49 = vrot.slane %v2452_v63, 9  ;;  %v2462_v7 = vrot.slane %v2454_v59, 9  ;;  %v2331_v56 = vrot.slane %v613_v16, 9 }
  0x40   : > { %2763 = vmatpush3.bf16.msra.mxu1 %v3059_v37  ;;  %v2458_v37 = vrot.slane %v2450_v12, 9  ;;  %v2459_v48 = vrot.slane %v2451_v13, 9  ;;  %v654_v54 = vrot.slane %v3255_v60, 5  ;;  %v615_v23 = vld [vmem:[%s3187_s10 + $0x10] sm:$0xe] }
  0x41   : > { %2857 = vmatpush3.bf16.msra.mxu0 %v3058_v30  ;;  %2747 = vmatmul.mubr.bf16.gmra.mrb[4].mxu1 %v2310_v9  ;;  %v1124_v31 = vsel %vm3232_vm2, %v1119_v33, %v1123_v1  ;;  %v1326_v4 = vsel %vm3406_vm5, %v2460_v49, %v1325_v29  ;;  %v647_v9 = vsel %vm3406_vm5, %v2332_v14, %v646_v34  ;;  %v616_v60 = vld [vmem:[%s3187_s10 + $0x18] sm:$0xe]  ;;  %v2333_v25 = vrot.slane %v615_v23, 9  ;;  %v3075_v33 = vld [vmem:[%s3717_s1 + $0xa8] sm:$0xff]  }
  0x42   : > { %2858 = vmatprep.subr.bf16.mxu0 %v3060_v58  ;;  %2764 = vmatprep.subr.bf16.mxu1 %v3061_v6  ;;  %v2438_v39 = vcombine.low %v1110_v21, %v1124_v31  ;;  %v1318_v30 = vsel %vm3406_vm5, %v2458_v37, %v1317_v22  ;;  %v1322_v3 = vsel %vm3406_vm5, %v2459_v48, %v1321_v45  ;;  %v3084_v32 = vld [vmem:[%s3187_s10 + $0x10] ss:$8 sps:$4 sm:$0xff]   ;;  %v666_v29 = vrot.slane %v3354_v52, 5  ;;  %v3087_v49 = vld [vmem:[%s3717_s1 + $0xc8] sm:$0xff]  }
  0x43   : > { %2766 = vmatprep.mubr.bf16.mxu1 %v2319_v19  ;;  %v2480_v47 = vcombine.low %v1314_v42, %v1318_v30  ;;  %v2481_v27 = vcombine.low %v1322_v3, %v1326_v4  ;;  %v643_v19 = vsel %vm3406_vm5, %v2331_v56, %v642_v55  ;;  %v651_v11 = vsel %vm3406_vm5, %v2333_v25, %v650_v17  ;;  %v3078_v31 = vld [vmem:[%s3717_s1 + $0xb0] sm:$0xff]   ;;  %v3081_v37 = vld [vmem:[%s3717_s1 + $0xb8] sm:$0xff]   ;;  %v2533_v25 = vld [vmem:[%s3187_s10 + $0x28] sm:$0xf] }
  0x44   : > { %2765 = vmatpush3.bf16.msra.mxu1 %v3061_v6  ;;  %2843 = vmatmul.mubr.bf16.gmra.mrb[4].mxu0 %v2438_v39  ;;  %v1334_v6 = vsel %vm3406_vm5, %v2462_v7, %v1333_v24  ;;  %v2355_v1 = vcombine.low %v643_v19, %v647_v9  ;;  %v617_v39 = vld [vmem:[%s3187_s10 + $0x20] sm:$0xe]  ;;  %v3082_v45 = vld [vmem:[%s3717_s1 + $0x1b8] sm:$0xff]   ;;  %v3545_v24 = vld [vmem:[%s3187_s10 + $0x14] sm:$0x1] }
  0x45   : > { %2859 = vmatpush3.bf16.msra.mxu0 %v3060_v58  ;;  %2774 = vmatprep.subr.bf16.mxu1 %v3064_v35  ;;  %v2453_v58 = vld [vmem:[%s3187_s10 + $0x38] sm:$0xe]  ;;  %v2335_v42 = vrot.slane %v617_v39, 9  ;;  %v1686_v59 = vshll.u32 %v3545_v24, 16  ;;  %v3086_v7 = vld [vmem:[%s3187_s10 + $0x20] ss:$8 sps:$4 sm:$0xff]  }
  0x46   : > { %2860 = vmatprep.subr.bf16.mxu0 %v3062_v28  ;;  %2862 = vmatprep.mubr.bf16.mxu0 %v2479_v57  ;;  %v2461_v5 = vrot.slane %v2453_v58, 9  ;;  %v3076_v57 = vld [vmem:[%s3717_s1 + $0x1a8] sm:$0xff]   ;;  %v2529_v52 = vld [vmem:[%s3187_s10 + $0x18] sm:$0xf]  ;;  %v3090_v9 = vld [vmem:[%s3717_s1 + $0x1d0] sm:$0xff]  }
  0x47   : > { %v1691_v3 = vshrl.u32 %v2529_v52, 16  ;;  %v1694_v4 = vshll.u32 %v2529_v52, 16  ;;  %v3097_v56 = vld [vmem:[%s3187_s10 + $0x30] ss:$8 sps:$4 sm:$0xff]   ;;  %v3096_v52 = vld [vmem:[%s3717_s1 + $0x1e8] sm:$0xff]  }
  0x48   : > { %v1330_v50 = vsel %vm3406_vm5, %v2461_v5, %v1329_v53  ;;  %v2527_v53 = vld [vmem:[%s3187_s10 + $0x10] sm:$0xf]  ;;  %v3091_v23 = vld [vmem:[%s3717_s1 + $0xd8] sm:$0xff]  }
  0x49   : > { %2861 = vmatpush3.bf16.msra.mxu0 %v3062_v28  ;;  %2767 = vmatmul.mubr.bf16.vlgmr.msra.gmra.mrb[0].mxu1 %v2320_v40  ;;  %v2482_v22 = vcombine.low %v1330_v50, %v1334_v6  ;;  %v2334_v28 = vrot.slane %v616_v60, 9  ;;  %v618_v40 = vld [vmem:[%s3187_s10 + $0x28] sm:$0xe]  ;;  %v1680_v58 = vshll.u32 %v2527_v53, 16  ;;  %v1693_v50 = vrot.slane %v1691_v3, 4 }
  0x4a   : > { %2870 = vmatprep.subr.bf16.mxu0 %v3065_v41  ;;  %2775 = vmatpush3.bf16.msra.mxu1 %v3064_v35  ;;  %v3074_v35 = vld [vmem:[%s3717_s1 + $0x1a0] sm:$0xff]   ;;  %v2336_v30 = vrot.slane %v618_v40, 9  ;;  %v1696_v6 = vrot.slane %v1694_v4, 5 }
  0x4b   : > { %2776 = vmatprep.subr.bf16.mxu1 %v3067_v43  ;;  %2770 = vmatprep.mubr.bf16.mxu1 %v2321_v51  ;;  %v655_v12 = vsel %vm3406_vm5, %v2334_v28, %v654_v54  ;;  %v619_v51 = vld [vmem:[%s3187_s10 + $0x30] sm:$0xe]  ;;  %v1682_v16 = vrot.slane %v1680_v58, 5  ;;  %v1688_v54 = vrot.slane %v1686_v59, 5 }
  0x4c   : > { %2863 = vmatmul.mubr.bf16.vlgmr.msra.gmra.mrb[0].mxu0 %v2480_v47  ;;  %v2356_v21 = vcombine.low %v651_v11, %v655_v12  ;;  %v670_v47 = vrot.slane %v3363_v61, 5  ;;  %v2337_v63 = vrot.slane %v619_v51, 9  ;;  %v3549_v61 = vld [vmem:[%s3187_s10 + $0x1c] sm:$0x1]  ;;  %v3099_v11 = vld [vmem:[%s3187_s10 + $0x40] ss:$8 sps:$4 sm:$0xff]  }
  0x4d   : > { %2871 = vmatpush3.bf16.msra.mxu0 %v3065_v41  ;;  %2866 = vmatprep.mubr.bf16.mxu0 %v2481_v27  ;;  %v662_v41 = vrot.slane %v3314_v2, 5  ;;  %v659_v2 = vsel %vm3406_vm5, %v2335_v42, %v658_v36  ;;  %v1700_v5 = vshll.u32 %v3549_v61, 16  ;;  %v2535_v12 = vld [vmem:[%s3187_s10 + $0x30] sm:$0xf]  ;;  %v1722_v36 = vshll.u32 %v2533_v25, 16 }
  0x4e   : > { %2777 = vmatpush3.bf16.msra.mxu1 %v3067_v43  ;;  %2872 = vmatprep.subr.bf16.mxu0 %v3068_v62  ;;  %v3079_v43 = vld [vmem:[%s3717_s1 + $0x1b0] sm:$0xff]   ;;  %v667_v34 = vsel %vm3406_vm5, %v2337_v63, %v666_v29  ;;  %v1733_v40 = vshrl.u32 %v2535_v12, 16  ;;  %v3594_v51 = vld [vmem:[%s3187_s10 + $0x24] sm:$0x1] }
  0x4f   : > { %2778 = vmatprep.subr.bf16.mxu1 %v3069_v44  ;;  %v663_v55 = vsel %vm3406_vm5, %v2336_v30, %v662_v41  ;;  %v1702_v19 = vrot.slane %v1700_v5, 5  ;;  %v1736_v41 = vshll.u32 %v2535_v12, 16  ;;  %v1724_v29 = vrot.slane %v1722_v36, 5  ;;  %v2541_v5 = vld [vmem:[%s3187_s10 + $0x48] sm:$0xf]  ;;  %v3102_v12 = vld [vmem:[%s3717_s1 + $0x1f8] sm:$0xff]  }
  0x50   : > { %v2357_v13 = vcombine.low %v659_v2, %v663_v55  ;;  %v3597_v2 = vld [vmem:[%s3187_s10 + $0x2c] sm:$0x1]  ;;  %v1714_v58 = vshll.u32 %v3594_v51, 16 }
  0x51   : > { %2771 = vmatmul.mubr.bf16.gmra.mrb[4].mxu1 %v2322_v26  ;;  %2873 = vmatpush3.bf16.msra.mxu0 %v3068_v62  ;;  %v3085_v62 = vld [vmem:[%s3717_s1 + $0x1c0] sm:$0xff]   ;;  %v1677_v26 = vshrl.u32 %v2527_v53, 16  ;;  %v1738_v63 = vrot.slane %v1736_v41, 5  ;;  %v1728_v59 = vshll.u32 %v3597_v2, 16 }
  0x52   : > { %2779 = vmatpush3.bf16.msra.mxu1 %v3069_v44  ;;  %2874 = vmatprep.subr.bf16.mxu0 %v3070_v10  ;;  %v620_v44 = vld [vmem:[%s3187_s10 + $0x38] sm:$0xe]  ;;  %v2539_v53 = vld [vmem:[%s3187_s10 + $0x40] sm:$0xf] }
  0x53   : > { %2780 = vmatprep.subr.bf16.mxu1 %v3071_v46  ;;  %2790 = vmatprep.mubr.bf16.mxu1 %v2355_v1  ;;  %v2338_v48 = vrot.slane %v620_v44, 9  ;;  %v1679_v27 = vrot.slane %v1677_v26, 4  ;;  %v2531_v1 = vld [vmem:[%s3187_s10 + $0x20] sm:$0xf]  ;;  %v3098_v26 = vld [vmem:[%s3717_s1 + $0xf0] sm:$0xff]  }
  0x54   : > { %2867 = vmatmul.mubr.bf16.gmra.mrb[4].mxu0 %v2482_v22 }
  0x55   : > { %2875 = vmatpush3.bf16.msra.mxu0 %v3070_v10  ;;  %2886 = vmatprep.mubr.bf16.mxu0 %v3084_v32  ;;  %v671_v17 = vsel %vm3406_vm5, %v2338_v48, %v670_v47  ;;  %v1683_v10 = vor.u32 %v1682_v16, %v1679_v27  ;;  %v3600_v47 = vld [vmem:[%s3187_s10 + $0x34] sm:$0x1]  ;;  %v1764_v27 = vshll.u32 %v2539_v53, 16 }
  0x56   : > { %2781 = vmatpush3.bf16.msra.mxu1 %v3071_v46  ;;  %2876 = vmatprep.subr.bf16.mxu0 %v3072_v20  ;;  %v3089_v46 = vld [vmem:[%s3717_s1 + $0xd0] sm:$0xff]   ;;  %v2358_v14 = vcombine.low %v667_v34, %v671_v17  ;;  %v1742_v3 = vshll.u32 %v3600_v47, 16  ;;  %v1761_v17 = vshrl.u32 %v2539_v53, 16  ;;  %v2572_v53 = vld [vmem:[%s3187_s10 + $0x18] sm:$0xe] }
  0x57   : > { %2782 = vmatprep.subr.bf16.mxu1 %v3073_v18  ;;  %v1684_v22 = vrot.slane %v1683_v10, 4 }
  0x59   : > { %2877 = vmatpush3.bf16.msra.mxu0 %v3072_v20  ;;  %v3103_v20 = vld [vmem:[%s3187_s10 + $0x8] ss:$8 sps:$4 sm:$0xff]   ;;  %v1689_v28 = vsel %vm3232_vm2, %v1684_v22, %v1688_v54 }
  0x5a   : > { %2783 = vmatpush3.bf16.msra.mxu1 %v3073_v18  ;;  %2878 = vmatprep.subr.bf16.mxu0 %v3074_v35  ;;  %v1697_v18 = vor.u32 %v1696_v6, %v1693_v50  ;;  %v1775_v50 = vshrl.u32 %v2541_v5, 16  ;;  %v1778_v6 = vshll.u32 %v2541_v5, 16  ;;  %v2580_v5 = vrot.slane %v2572_v53, 9 }
  0x5b   : > { %2784 = vmatprep.subr.bf16.mxu1 %v3075_v33 }
  0x5c   : > { %v1698_v60 = vrot.slane %v1697_v18, 4  ;;  %v1730_v18 = vrot.slane %v1728_v59, 5  ;;  %v3108_v59 = vld [vmem:[%s3187_s10 + $0x38] ss:$8 sps:$4 sm:$0xff]  }
  0x5d   : > { %2879 = vmatpush3.bf16.msra.mxu0 %v3074_v35  ;;  %v1705_v35 = vshrl.u32 %v2531_v1, 16 }
  0x5e   : > { %2785 = vmatpush3.bf16.msra.mxu1 %v3075_v33  ;;  %2880 = vmatprep.subr.bf16.mxu0 %v3076_v57  ;;  %v1703_v32 = vsel %vm3232_vm2, %v1698_v60, %v1702_v19  ;;  %v3093_v33 = vld [vmem:[%s3717_s1 + $0xe0] sm:$0xff]   ;;  %v3627_v60 = vld [vmem:[%s3187_s10 + $0x4c] sm:$0x1] }
  0x5f   : > { %2786 = vmatprep.subr.bf16.mxu1 %v3078_v31  ;;  %v2559_v39 = vcombine.low %v1689_v28, %v1703_v32  ;;  %v1707_v55 = vrot.slane %v1705_v35, 4  ;;  %v1777_v28 = vrot.slane %v1775_v50, 4  ;;  %v1780_v32 = vrot.slane %v1778_v6, 5  ;;  %v3104_v35 = vld [vmem:[%s3187_s10 + $0x18] ss:$8 sps:$4 sm:$0xff]   ;;  %v3112_v6 = vld [vmem:[%s3717_s1 + $0x228] sm:$0xff]  }
  0x61   : > { %2881 = vmatpush3.bf16.msra.mxu0 %v3076_v57  ;;  %v1719_v57 = vshrl.u32 %v2533_v25, 16  ;;  %v1766_v25 = vrot.slane %v1764_v27, 5 }
  0x62   : > { %2787 = vmatpush3.bf16.msra.mxu1 %v3078_v31  ;;  %2882 = vmatprep.subr.bf16.mxu0 %v3079_v43  ;;  %v1708_v31 = vshll.u32 %v2531_v1, 16  ;;  %v1763_v1 = vrot.slane %v1761_v17, 4 }
  0x63   : > { %2788 = vmatprep.subr.bf16.mxu1 %v3081_v37 }
  0x64   : > { %v1710_v44 = vrot.slane %v1708_v31, 5 }
  0x65   : > { %2883 = vmatpush3.bf16.msra.mxu0 %v3079_v43  ;;  %v3094_v43 = vld [vmem:[%s3717_s1 + $0x1e0] sm:$0xff]  }
  0x66   : > { %2789 = vmatpush3.bf16.msra.mxu1 %v3081_v37  ;;  %2884 = vmatprep.subr.bf16.mxu0 %v3082_v45  ;;  %v3092_v37 = vld [vmem:[%s3717_s1 + $0x1d8] sm:$0xff]  }
  0x67   : > { %2798 = vmatprep.subr.bf16.mxu1 %v3083_v0 }
  0x69   : > { %2791 = vmatmul.mubr.bf16.vlgmr.msra.gmra.mrb[0].mxu1 %v2356_v21  ;;  %2885 = vmatpush3.bf16.msra.mxu0 %v3082_v45  ;;  %v2537_v21 = vld [vmem:[%s3187_s10 + $0x38] sm:$0xf]  ;;  %v1721_v45 = vrot.slane %v1719_v57, 4 }
  0x6a   : > { %2799 = vmatpush3.bf16.msra.mxu1 %v3083_v0  ;;  %2794 = vmatprep.mubr.bf16.mxu1 %v2357_v13  ;;  %v1747_v42 = vshrl.u32 %v2537_v21, 16  ;;  %v1750_v30 = vshll.u32 %v2537_v21, 16  ;;  %v3095_v0 = vld [vmem:[%s3717_s1 + $0xe8] sm:$0xff]   ;;  %v1735_v13 = vrot.slane %v1733_v40, 4  ;;  %v2575_v21 = vld [vmem:[%s3187_s10 + $0x30] sm:$0xe] }
  0x6b   : > { %2800 = vmatprep.subr.bf16.mxu1 %v3087_v49  ;;  %2894 = vmatprep.subr.bf16.mxu0 %v3085_v62  ;;  %v1725_v34 = vor.u32 %v1724_v29, %v1721_v45 }
  0x6c   : > { %2887 = vmatmul.mubr.bf16.vlgmr.msra.gmra.mrb[0].mxu0 %v3086_v7  ;;  %v1749_v48 = vrot.slane %v1747_v42, 4  ;;  %v1711_v7 = vor.u32 %v1710_v44, %v1707_v55  ;;  %v1739_v16 = vor.u32 %v1738_v63, %v1735_v13  ;;  %v1767_v42 = vor.u32 %v1766_v25, %v1763_v1 }
  0x6d   : > { %2895 = vmatpush3.bf16.msra.mxu0 %v3085_v62  ;;  %2890 = vmatprep.mubr.bf16.mxu0 %v3097_v56  ;;  %v3603_v62 = vld [vmem:[%s3187_s10 + $0x3c] sm:$0x1]  ;;  %v3100_v56 = vld [vmem:[%s3717_s1 + $0x1f0] sm:$0xff]   ;;  %v1726_v54 = vrot.slane %v1725_v34, 4  ;;  %v1984_v55 = vrot.slane %v3600_v47, 5  ;;  %v1976_v25 = vrot.slane %v3594_v51, 5 }
  0x6e   : > { %2801 = vmatpush3.bf16.msra.mxu1 %v3087_v49  ;;  %2896 = vmatprep.subr.bf16.mxu0 %v3088_v15  ;;  %v1752_v49 = vrot.slane %v1750_v30, 5  ;;  %v1756_v4 = vshll.u32 %v3603_v62, 16  ;;  %v1712_v10 = vrot.slane %v1711_v7, 4  ;;  %v1740_v19 = vrot.slane %v1739_v16, 4  ;;  %v3110_v16 = vld [vmem:[%s3717_s1 + $0x218] sm:$0xff]  }
  0x6f   : > { %2802 = vmatprep.subr.bf16.mxu1 %v3089_v46  ;;  %v1731_v57 = vsel %vm3232_vm2, %v1726_v54, %v1730_v18  ;;  %v1781_v30 = vor.u32 %v1780_v32, %v1777_v28  ;;  %v1988_v45 = vrot.slane %v3603_v62, 5  ;;  %v1972_v7 = vrot.slane %v3549_v61, 5 }
  0x70   : > { %v1996_v54 = vrot.slane %v3627_v60, 5  ;;  %v1980_v32 = vrot.slane %v3597_v2, 5 }
  0x71   : > { %2795 = vmatmul.mubr.bf16.gmra.mrb[4].mxu1 %v2358_v14  ;;  %2897 = vmatpush3.bf16.msra.mxu0 %v3088_v15  ;;  %v3101_v15 = vld [vmem:[%s3717_s1 + $0xf8] sm:$0xff]   ;;  %v1716_v14 = vrot.slane %v1714_v58, 5  ;;  %v3109_v58 = vld [vmem:[%s3717_s1 + $0x210] sm:$0xff]   ;;  %v1973_v61 = vsel %vm3406_vm5, %v2580_v5, %v1972_v7 }
  0x72   : > { %2803 = vmatpush3.bf16.msra.mxu1 %v3089_v46  ;;  %2814 = vmatprep.mubr.bf16.mxu1 %v3103_v20  ;;  %v1753_v46 = vor.u32 %v1752_v49, %v1749_v48  ;;  %v1744_v20 = vrot.slane %v1742_v3, 5  ;;  %v2571_v49 = vld [vmem:[%s3187_s10 + $0x10] sm:$0xe] }
  0x73   : > { %2804 = vmatprep.subr.bf16.mxu1 %v3091_v23  ;;  %2898 = vmatprep.subr.bf16.mxu0 %v3090_v9  ;;  %v1717_v31 = vsel %vm3232_vm2, %v1712_v10, %v1716_v14  ;;  %v2579_v3 = vrot.slane %v2571_v49, 9  ;;  %v2578_v10 = vld [vmem:[%s3187_s10 + $0x48] sm:$0xe] }
  0x74   : > { %2891 = vmatmul.mubr.bf16.gmra.mrb[4].mxu0 %v3099_v11  ;;  %v1754_v22 = vrot.slane %v1753_v46, 4  ;;  %v3105_v11 = vld [vmem:[%s3717_s1 + $0x200] sm:$0xff]   ;;  %v1745_v40 = vsel %vm3232_vm2, %v1740_v19, %v1744_v20  ;;  %v2560_v29 = vcombine.low %v1717_v31, %v1731_v57  ;;  %v2586_v19 = vrot.slane %v2578_v10, 9  ;;  %v3114_v20 = vld [vmem:[%s3717_s1 + $0x238] sm:$0xff]  }
  0x75   : > { %2899 = vmatpush3.bf16.msra.mxu0 %v3090_v9  ;;  %2910 = vmatprep.mubr.bf16.mxu0 %v2559_v39  ;;  %v1758_v9 = vrot.slane %v1756_v4, 5  ;;  %v3107_v39 = vld [vmem:[%s3187_s10 + $0x28] ss:$8 sps:$4 sm:$0xff]   ;;  %v1968_v4 = vrot.slane %v3545_v24, 5 }
  0x76   : > { %2805 = vmatpush3.bf16.msra.mxu1 %v3091_v23  ;;  %2900 = vmatprep.subr.bf16.mxu0 %v3092_v37  ;;  %v3624_v23 = vld [vmem:[%s3187_s10 + $0x44] sm:$0x1] }
  0x77   : > { %2806 = vmatprep.subr.bf16.mxu1 %v3093_v33  ;;  %v1770_v36 = vshll.u32 %v3624_v23, 16  ;;  %v1759_v41 = vsel %vm3232_vm2, %v1754_v22, %v1758_v9  ;;  %v1969_v24 = vsel %vm3406_vm5, %v2579_v3, %v1968_v4  ;;  %v1992_v14 = vrot.slane %v3624_v23, 5  ;;  %v2573_v22 = vld [vmem:[%s3187_s10 + $0x20] sm:$0xe]  ;;  %v2574_v9 = vld [vmem:[%s3187_s10 + $0x28] sm:$0xe] }
  0x78   : > { %v2561_v13 = vcombine.low %v1745_v40, %v1759_v41  ;;  %v2603_v50 = vcombine.low %v1969_v24, %v1973_v61  ;;  %v1997_v23 = vsel %vm3406_vm5, %v2586_v19, %v1996_v54  ;;  %v2582_v28 = vrot.slane %v2574_v9, 9 }
  0x79   : > { %2901 = vmatpush3.bf16.msra.mxu0 %v3092_v37  ;;  %v1784_v37 = vshll.u32 %v3627_v60, 16  ;;  %v1772_v63 = vrot.slane %v1770_v36, 5  ;;  %v2581_v60 = vrot.slane %v2573_v22, 9 }
  0x7a   : > { %2807 = vmatpush3.bf16.msra.mxu1 %v3093_v33  ;;  %2902 = vmatprep.subr.bf16.mxu0 %v3094_v43  ;;  %v2576_v33 = vld [vmem:[%s3187_s10 + $0x38] sm:$0xe] }
  0x7b   : > { %2808 = vmatprep.subr.bf16.mxu1 %v3095_v0  ;;  %v2584_v44 = vrot.slane %v2576_v33, 9  ;;  %v1786_v48 = vrot.slane %v1784_v37, 5 }
  0x7d   : > { %2903 = vmatpush3.bf16.msra.mxu0 %v3094_v43  ;;  %v3106_v43 = vld [vmem:[%s3717_s1 + $0x208] sm:$0xff]   ;;  %v1989_v62 = vsel %vm3406_vm5, %v2584_v44, %v1988_v45 }
  0x7e   : > { %2809 = vmatpush3.bf16.msra.mxu1 %v3095_v0  ;;  %2904 = vmatprep.subr.bf16.mxu0 %v3096_v52  ;;  %v2583_v0 = vrot.slane %v2575_v21, 9  ;;  %v1981_v21 = vsel %vm3406_vm5, %v2582_v28, %v1980_v32 }
  0x7f   : > { %2810 = vmatprep.subr.bf16.mxu1 %v3098_v26 }
  0x80   : > { %v1985_v47 = vsel %vm3406_vm5, %v2583_v0, %v1984_v55 }
  0x81   : > { %2905 = vmatpush3.bf16.msra.mxu0 %v3096_v52  ;;  %v1768_v52 = vrot.slane %v1767_v42, 4  ;;  %v2605_v34 = vcombine.low %v1985_v47, %v1989_v62 }
  0x82   : > { %2811 = vmatpush3.bf16.msra.mxu1 %v3098_v26  ;;  %2906 = vmatprep.subr.bf16.mxu0 %v3100_v56  ;;  %v1782_v26 = vrot.slane %v1781_v30, 4 }
  0x83   : > { %2812 = vmatprep.subr.bf16.mxu1 %v3101_v15  ;;  %v1773_v17 = vsel %vm3232_vm2, %v1768_v52, %v1772_v63 }
  0x84   : > { %v1787_v27 = vsel %vm3232_vm2, %v1782_v26, %v1786_v48 }
  0x85   : > { %2907 = vmatpush3.bf16.msra.mxu0 %v3100_v56  ;;  %v2562_v46 = vcombine.low %v1773_v17, %v1787_v27  ;;  %v2577_v56 = vld [vmem:[%s3187_s10 + $0x40] sm:$0xe]  ;;  %s2617_s10 = sshll.u32 %s3725_s13, 6 }
  0x86   : > { %2813 = vmatpush3.bf16.msra.mxu1 %v3101_v15  ;;  %2908 = vmatprep.subr.bf16.mxu0 %v3102_v12  ;;  %v3113_v15 = vld [vmem:[%s3717_s1 + $0x230] sm:$0xff]   ;;  %v2585_v18 = vrot.slane %v2577_v56, 9  ;;  %s177_s19 = scalar_lea.vmem %s3718_s2, %s2617_s10 }
  0x87   : > { %2942 = vmatprep.subr.bf16.mxu1 %v3105_v11 }
  0x88   : > { %v1993_v1 = vsel %vm3406_vm5, %v2585_v18, %v1992_v14 }
  0x89   : > { %2815 = vmatmul.mubr.bf16.vlgmr.msra.gmra.mrb[0].mxu1 %v3104_v35  ;;  %2909 = vmatpush3.bf16.msra.mxu0 %v3102_v12  ;;  %v1977_v12 = vsel %vm3406_vm5, %v2581_v60, %v1976_v25 }
  0x8a   : > { %2950 = vmatpush3.bf16.msra.mxu1 %v3105_v11  ;;  %2818 = vmatprep.mubr.bf16.mxu1 %v3107_v39  ;;  %v2604_v33 = vcombine.low %v1977_v12, %v1981_v21 }
  0x8b   : > { %2943 = vmatprep.subr.bf16.mxu1 %v3106_v43  ;;  %2918 = vmatprep.subr.bf16.mxu0 %v3105_v11 }
  0x8c   : > { %2911 = vmatmul.mubr.bf16.vlgmr.msra.gmra.mrb[0].mxu0 %v2560_v29 }
  0x8d   : > { %2919 = vmatpush3.bf16.msra.mxu0 %v3105_v11  ;;  %2914 = vmatprep.mubr.bf16.mxu0 %v2561_v13  ;;  %v2606_v11 = vcombine.low %v1993_v1, %v1997_v23 }
  0x8e   : > { %2951 = vmatpush3.bf16.msra.mxu1 %v3106_v43  ;;  %2920 = vmatprep.subr.bf16.mxu0 %v3106_v43 }
  0x8f   : > { %2944 = vmatprep.subr.bf16.mxu1 %v3109_v58 }
  0x91   : > { %2819 = vmatmul.mubr.bf16.gmra.mrb[4].mxu1 %v3108_v59  ;;  %2921 = vmatpush3.bf16.msra.mxu0 %v3106_v43 }
  0x92   : > { %2952 = vmatpush3.bf16.msra.mxu1 %v3109_v58  ;;  %2938 = vmatprep.mubr.bf16.mxu1 %v2605_v34 }
  0x93   : > { %2945 = vmatprep.subr.bf16.mxu1 %v3110_v16  ;;  %2922 = vmatprep.subr.bf16.mxu0 %v3109_v58 }
  0x94   : > { %2915 = vmatmul.mubr.bf16.gmra.mrb[4].mxu0 %v2562_v46 }
  0x95   : > { %2923 = vmatpush3.bf16.msra.mxu0 %v3109_v58  ;;  %2934 = vmatprep.mubr.bf16.mxu0 %v2603_v50 }
  0x96   : > { %2953 = vmatpush3.bf16.msra.mxu1 %v3110_v16  ;;  %2924 = vmatprep.subr.bf16.mxu0 %v3110_v16 }
  0x97   : > { %2946 = vmatprep.subr.bf16.mxu1 %v3111_v38 }
  0x99   : > { %2925 = vmatpush3.bf16.msra.mxu0 %v3110_v16 }
  0x9a   : > { %2954 = vmatpush3.bf16.msra.mxu1 %v3111_v38  ;;  %2926 = vmatprep.subr.bf16.mxu0 %v3111_v38 }
  0x9b   : > { %2947 = vmatprep.subr.bf16.mxu1 %v3112_v6 }
  0x9d   : > { %2927 = vmatpush3.bf16.msra.mxu0 %v3111_v38 }
  0x9e   : > { %2955 = vmatpush3.bf16.msra.mxu1 %v3112_v6  ;;  %2928 = vmatprep.subr.bf16.mxu0 %v3112_v6 }
  0x9f   : > { %2948 = vmatprep.subr.bf16.mxu1 %v3113_v15 }
  0xa1   : > { %2929 = vmatpush3.bf16.msra.mxu0 %v3112_v6 }
  0xa2   : > { %2956 = vmatpush3.bf16.msra.mxu1 %v3113_v15  ;;  %2930 = vmatprep.subr.bf16.mxu0 %v3113_v15 }
  0xa3   : > { %2949 = vmatprep.subr.bf16.mxu1 %v3114_v20 }
  0xa5   : > { %2931 = vmatpush3.bf16.msra.mxu0 %v3113_v15 }
  0xa6   : > { %2957 = vmatpush3.bf16.msra.mxu1 %v3114_v20  ;;  %2932 = vmatprep.subr.bf16.mxu0 %v3114_v20 }
  0xa9   : > { %2939 = vmatmul.mubr.bf16.vlgmr.msra.gmra.mrb[8].mxu1 %v2606_v11  ;;  %2933 = vmatpush3.bf16.msra.mxu0 %v3114_v20 }
  0xac   : > { %2935 = vmatmul.mubr.bf16.vlgmr.msra.gmra.mrb[0].mxu0 %v2604_v33 }
 0x15c   : > { %v2816_v35 = vpop.f32.mrb[0].mxu1 }
 0x15d   : > { %v958_v51 = vpop.f32.mrb[1].mxu1 }
 0x15e   : > { %v2817_v31 = vpop.f32.mrb[2].mxu1 }
 0x15f   : > { %v961_v2 = vpop.f32.mrb[3].mxu1 }
 0x164   : > { %v2820_v57 = vpop.f32.mrb[4].mxu1 }
 0x165   : > { %v974_v36 = vpop.f32.mrb[5].mxu1 }
 0x166   : > { %v2821_v37 = vpop.f32.mrb[6].mxu1 }
 0x167   : > { %v977_v39 = vpop.f32.mrb[7].mxu1  ;;  %v2916_v40 = vpop.f32.mrb[4].mxu0 }
 0x168   : > { %v2962_v41 = vadd.f32 %v2916_v40, %v2820_v57  ;;  %v1919_v42 = vpop.f32.mrb[5].mxu0 }
 0x169   : > { %v2964_v30 = vadd.f32 %v1919_v42, %v974_v36  ;;  %v2917_v8 = vpop.f32.mrb[6].mxu0 }
 0x16a   : > { %v2966_v43 = vadd.f32 %v2917_v8, %v2821_v37  ;;  %v1922_v0 = vpop.f32.mrb[7].mxu0 }
 0x16b   : > { %v2968_v55 = vadd.f32 %v1922_v0, %v977_v39 }
 0x17c   : > { %v2940_v44 = vpop.f32.mrb[8].mxu1 }
 0x17d   : > { %v2963_v45 = vadd.f32 %v2962_v41, %v2940_v44  ;;  %v2129_v29 = vpop.f32.mrb[9].mxu1 }
 0x17e   : > { %v2965_v13 = vadd.f32 %v2964_v30, %v2129_v29  ;;  %v2941_v63 = vpop.f32.mrb[10].mxu1 }
 0x17f   : > { %2158 = vst [vmem:[%s177_s19 + $0x30] sm:$0xff] %v2963_v45  ;;  %v2967_v48 = vadd.f32 %v2966_v43, %v2941_v63  ;;  %v2132_v49 = vpop.f32.mrb[11].mxu1  ;;  %v2936_v52 = vpop.f32.mrb[0].mxu0  ;;  %v2180_v14 = vmul.f32 %v2963_v45, %v2963_v45 }
 0x180   : > { %2156 = vst [vmem:[%s177_s19 + $0x20] sm:$0xff] %v2965_v13  ;;  %v2969_v53 = vadd.f32 %v2968_v55, %v2132_v49  ;;  %v2958_v26 = vadd.f32 %v2936_v52, %v2816_v35  ;;  %v2113_v47 = vpop.f32.mrb[1].mxu0  ;;  %v2178_v38 = vmul.f32 %v2965_v13, %v2965_v13 }
 0x181   : > { %2159 = vst [vmem:[%s177_s19 + $0x38] sm:$0xff] %v2967_v48  ;;  %v2959_v62 = vadd.f32 %v2113_v47, %v958_v51  ;;  %v2937_v58 = vpop.f32.mrb[2].mxu0  ;;  %v2181_v19 = vmul.f32 %v2967_v48, %v2967_v48 }
 0x182   : > { %2157 = vst [vmem:[%s177_s19 + $0x28] sm:$0xff] %v2969_v53  ;;  %2154 = vst [vmem:[%s177_s19 + $0x10] sm:$0xff] %v2958_v26  ;;  %v2960_v59 = vadd.f32 %v2937_v58, %v2817_v31  ;;  %v2116_v3 = vpop.f32.mrb[3].mxu0  ;;  %v2176_v17 = vmul.f32 %v2958_v26, %v2958_v26  ;;  %v2179_v56 = vmul.f32 %v2969_v53, %v2969_v53 }
 0x183   : > { %2152 = vst [vmem:[%s177_s19] sm:$0xff] %v2959_v62  ;;  %v2961_v4 = vadd.f32 %v2116_v3, %v961_v2  ;;  %v2174_v5 = vmul.f32 %v2959_v62, %v2959_v62 }
 0x184   : > { %2155 = vst [vmem:[%s177_s19 + $0x18] sm:$0xff] %v2960_v59  ;;  %v2177_v24 = vmul.f32 %v2960_v59, %v2960_v59 }
 0x185   : > { %2153 = vst [vmem:[%s177_s19 + $0x8] sm:$0xff] %v2961_v4  ;;  %v2160_v7 = vadd.f32 %v2961_v4, %v2959_v62  ;;  %v2175_v34 = vmul.f32 %v2961_v4, %v2961_v4 }
 0x187   : > { %v2161_v27 = vadd.f32 %v2958_v26, %v2160_v7  ;;  %v2182_v16 = vadd.f32 %v2175_v34, %v2174_v5 }
 0x189   : > { %v2183_v61 = vadd.f32 %v2182_v16, %v2176_v17  ;;  %v2162_v46 = vadd.f32 %v2960_v59, %v2161_v27 }
 0x18b   : > { %v2163_v50 = vadd.f32 %v2965_v13, %v2162_v46  ;;  %v2184_v6 = vadd.f32 %v2183_v61, %v2177_v24 }
 0x18d   : > { %v2164_v15 = vadd.f32 %v2969_v53, %v2163_v50  ;;  %v2185_v10 = vadd.f32 %v2184_v6, %v2178_v38 }
 0x18f   : > { %v2165_v54 = vadd.f32 %v2963_v45, %v2164_v15  ;;  %v2186_v18 = vadd.f32 %v2185_v10, %v2179_v56 }
 0x191   : > { %v2166_v20 = vadd.f32 %v2967_v48, %v2165_v54  ;;  %v2187_v22 = vadd.f32 %v2186_v18, %v2180_v14 }
 0x193   : > { %v2167_v9 = vrot.slane %v2166_v20, 4  ;;  %v2188_v1 = vadd.f32 %v2187_v22, %v2181_v19 }
 0x195   : > { %v2168_v23 = vadd.f32 %v2167_v9, %v2166_v20  ;;  %v2189_v60 = vrot.slane %v2188_v1, 4 }
 0x197   : > { %v2169_v25 = vrot.slane %v2168_v23, 2  ;;  %v2190_v28 = vadd.f32 %v2189_v60, %v2188_v1 }
 0x199   : > { %v2170_v32 = vadd.f32 %v2169_v25, %v2168_v23  ;;  %v2191_v11 = vrot.slane %v2190_v28, 2 }
 0x19b   : > { %v2171_v12 = vrot.slane %v2170_v32, 1  ;;  %v2192_v21 = vadd.f32 %v2191_v11, %v2190_v28 }
 0x19d   : > { %v2172_v33 = vadd.f32 %v2171_v12, %v2170_v32  ;;  %v2193_v35 = vrot.slane %v2192_v21, 1 }
 0x19f   : > { %2173 = vst [vmem:[%s181_s23] sm:$0x1] %v2172_v33  ;;  %v2194_v51 = vadd.f32 %v2193_v35, %v2192_v21 }
 0x1a1   : > { %2195 = vst [vmem:[%s181_s23 + $0x1] sm:$0x1] %v2194_v51 }
 0x1a2 PF: > { %s14_s12 = sadd.s32 1, %s3121_s12  }
 0x1a3   : > { %p11_p4 = scmp.ge.s32.totalorder %s14_s12, 4  }
 0x1a5   :  { %13 = sbr.rel (!%p11_p4) target bundleno = 1 (0x1), region = 80 }

</bundles_post_ra>
